<compile_context>
chip_gen: v7x
topology: tpu7x:2x2x1
jax: 0.10.0
libtpu: 0.0.40
codegen_flags: <defaults>
</compile_context>

<pallas_src>
import functools

import jax
import jax.numpy as jnp
from jax.experimental import pallas as pl
from jax.experimental.pallas import tpu as pltpu

NUM_GROUPS = 32
EPS = 1e-6                      # matches Normalize(GroupNorm, eps=1e-6)
MATMUL_DTYPE = jnp.bfloat16     # MXU operand dtype (accumulation stays f32)
INTER_DTYPE = jnp.bfloat16      # dtype of the activation carried between the two kernels
VMEM_LIMIT_BYTES = 64 * 1024 * 1024


# ---------------------------------------------------------------------------
# In-kernel helpers (traced inside the Pallas kernels)
# ---------------------------------------------------------------------------
def _groupnorm_swish(x_hw_c, gamma, beta, groups):
    """x: (H*W, C) f32 -> GroupNorm (biased var) + swish, f32 out."""
    hw, c = x_hw_c.shape
    cg = c // groups
    sum_c = jnp.sum(x_hw_c, axis=0, keepdims=True)               # (1, C)
    sumsq_c = jnp.sum(x_hw_c * x_hw_c, axis=0, keepdims=True)    # (1, C)
    # per-group reduction via reshape-reduce (tiny, XLU) instead of a (C,C) matmul
    gsum = jnp.sum(sum_c.reshape(groups, cg), axis=1, keepdims=True)      # (G, 1)
    gsumsq = jnp.sum(sumsq_c.reshape(groups, cg), axis=1, keepdims=True)  # (G, 1)
    count = float(hw * cg)
    mean_g = gsum / count
    var_g = gsumsq / count - mean_g * mean_g
    inv_g = jax.lax.rsqrt(var_g + EPS)                            # EUP
    mean_c = jnp.broadcast_to(mean_g, (groups, cg)).reshape(1, c)
    inv_c = jnp.broadcast_to(inv_g, (groups, cg)).reshape(1, c)
    y = (x_hw_c - mean_c) * inv_c * gamma + beta
    return y * jax.nn.sigmoid(y)                                  # swish fused in (EUP)


def _conv3x3_im2col(y_hw_c, w_ref, hgt, wid, cin, cout):
    """3x3 'same' conv: build halo in-register, im2col, one (H*W, 9*Cin)x(9*Cin, Cout) dot."""
    y = y_hw_c.reshape(hgt, wid, cin)
    z_col = jnp.zeros((hgt, 1, cin), jnp.float32)
    yp = jnp.concatenate([z_col, y, z_col], axis=1)               # (H, W+2, Cin)
    z_row = jnp.zeros((1, wid + 2, cin), jnp.float32)
    yp = jnp.concatenate([z_row, yp, z_row], axis=0)              # (H+2, W+2, Cin)
    cols = []
    for dy in range(3):
        for dx in range(3):
            cols.append(yp[dy:dy + hgt, dx:dx + wid, :].reshape(hgt * wid, cin))
    patch = jnp.concatenate(cols, axis=-1).astype(w_ref.dtype)    # (H*W, 9*Cin)
    return jnp.dot(patch, w_ref[...], preferred_element_type=jnp.float32)


# ---------------------------------------------------------------------------
# Kernels
# ---------------------------------------------------------------------------
def _gn_swish_conv1_kernel(x_ref, gamma_ref, beta_ref, w_ref, b_ref, t_ref, o_ref,
                           *, hgt, wid, cin, cout, groups):
    # x_ref: (1, H, W, Cin); w_ref: (9*Cin, Cout) im2col-ordered HWIO weights (bf16)
    # t_ref: (1, 1, Cout) per-sample temb projection.
    xv = x_ref[0].astype(jnp.float32).reshape(hgt * wid, cin)
    y = _groupnorm_swish(xv, gamma_ref[...], beta_ref[...], groups)
    acc = _conv3x3_im2col(y, w_ref, hgt, wid, cin, cout)          # (H*W, Cout) f32
    acc = acc + b_ref[...] + t_ref[0]                             # conv bias + temb_proj(swish(temb))
    o_ref[...] = acc.reshape(1, hgt, wid, cout).astype(o_ref.dtype)


def _gn_swish_conv2_res_kernel(*refs, hgt, wid, cin, cout, groups, use_nin):
    if use_nin:
        (h_ref, x_ref, gamma_ref, beta_ref, w_ref, b_ref, nw_ref, nb_ref, o_ref) = refs
    else:
        (h_ref, x_ref, gamma_ref, beta_ref, w_ref, b_ref, o_ref) = refs
    hv = h_ref[0].astype(jnp.float32).reshape(hgt * wid, cout)
    y = _groupnorm_swish(hv, gamma_ref[...], beta_ref[...], groups)
    # TODO(synk): dropout is identity in eval mode; training-mode masking not implemented.
    acc = _conv3x3_im2col(y, w_ref, hgt, wid, cout, cout) + b_ref[...]
    xv = x_ref[0].astype(jnp.float32).reshape(hgt * wid, cin)
    if use_nin:
        sc = jnp.dot(xv.astype(nw_ref.dtype), nw_ref[...],
                     preferred_element_type=jnp.float32) + nb_ref[...]
    else:
        sc = xv                                                   # identity shortcut (Cin == Cout)
    o_ref[...] = (acc + sc).reshape(1, hgt, wid, cout).astype(o_ref.dtype)


# ---------------------------------------------------------------------------
# pallas_call wrappers
# ---------------------------------------------------------------------------
def _compiler_params():
    return pltpu.CompilerParams(dimension_semantics=("parallel",),
                                vmem_limit_bytes=VMEM_LIMIT_BYTES)


def fused_gn_swish_conv1(x, gamma, beta, w_im2col, bias, tvec):
    n, hgt, wid, cin = x.shape
    cout = w_im2col.shape[1]
    kernel = functools.partial(_gn_swish_conv1_kernel, hgt=hgt, wid=wid,
                               cin=cin, cout=cout, groups=NUM_GROUPS)
    return pl.pallas_call(
        kernel,
        out_shape=jax.ShapeDtypeStruct((n, hgt, wid, cout), INTER_DTYPE),
        grid=(n,),
        in_specs=[
            pl.BlockSpec((1, hgt, wid, cin), lambda i: (i, 0, 0, 0)),
            pl.BlockSpec((1, cin), lambda i: (0, 0)),
            pl.BlockSpec((1, cin), lambda i: (0, 0)),
            pl.BlockSpec((9 * cin, cout), lambda i: (0, 0)),
            pl.BlockSpec((1, cout), lambda i: (0, 0)),
            pl.BlockSpec((1, 1, cout), lambda i: (i, 0, 0)),
        ],
        out_specs=pl.BlockSpec((1, hgt, wid, cout), lambda i: (i, 0, 0, 0)),
        compiler_params=_compiler_params(),
    )(x, gamma.reshape(1, cin).astype(jnp.float32),
      beta.reshape(1, cin).astype(jnp.float32),
      w_im2col, bias.reshape(1, cout).astype(jnp.float32),
      tvec.reshape(n, 1, cout).astype(jnp.float32))


def fused_gn_swish_conv2_residual(h, x, gamma, beta, w_im2col, bias,
                                  nin_w=None, nin_b=None, out_dtype=jnp.float32):
    n, hgt, wid, cout = h.shape
    cin = x.shape[-1]
    use_nin = nin_w is not None
    kernel = functools.partial(_gn_swish_conv2_res_kernel, hgt=hgt, wid=wid,
                               cin=cin, cout=cout, groups=NUM_GROUPS, use_nin=use_nin)
    in_specs = [
        pl.BlockSpec((1, hgt, wid, cout), lambda i: (i, 0, 0, 0)),
        pl.BlockSpec((1, hgt, wid, cin), lambda i: (i, 0, 0, 0)),
        pl.BlockSpec((1, cout), lambda i: (0, 0)),
        pl.BlockSpec((1, cout), lambda i: (0, 0)),
        pl.BlockSpec((9 * cout, cout), lambda i: (0, 0)),
        pl.BlockSpec((1, cout), lambda i: (0, 0)),
    ]
    args = [h, x, gamma.reshape(1, cout).astype(jnp.float32),
            beta.reshape(1, cout).astype(jnp.float32), w_im2col,
            bias.reshape(1, cout).astype(jnp.float32)]
    if use_nin:
        in_specs += [pl.BlockSpec((cin, cout), lambda i: (0, 0)),
                     pl.BlockSpec((1, cout), lambda i: (0, 0))]
        args += [nin_w, nin_b.reshape(1, cout).astype(jnp.float32)]
    return pl.pallas_call(
        kernel,
        out_shape=jax.ShapeDtypeStruct((n, hgt, wid, cout), out_dtype),
        grid=(n,),
        in_specs=in_specs,
        out_specs=pl.BlockSpec((1, hgt, wid, cout), lambda i: (i, 0, 0, 0)),
        compiler_params=_compiler_params(),
    )(*args)


def resnet_block_pallas(x_nchw, temb, p):
    """ResnetBlock forward (eval mode). x_nchw: (N, Cin, H, W); temb: (N, Tc). Returns NCHW."""
    x = jnp.transpose(x_nchw, (0, 2, 3, 1))                        # NCHW -> NHWC
    n, hgt, wid, cin = x.shape
    cout = p["conv1_w"].shape[0]

    # temb path: swish(temb) @ W^T + b -- tiny matmul, plain JAX (no dedicated pallas_call).
    t = temb.astype(jnp.float32)
    t = t * jax.nn.sigmoid(t)
    t = t @ p["temb_w"].T.astype(jnp.float32) + p["temb_b"].astype(jnp.float32)   # (N, Cout)

    # conv weights -> im2col layout (ky, kx, Cin) x Cout, cast once to MXU dtype.
    w1 = jnp.transpose(p["conv1_w"], (2, 3, 1, 0)).reshape(9 * cin, cout).astype(MATMUL_DTYPE)
    w2 = jnp.transpose(p["conv2_w"], (2, 3, 1, 0)).reshape(9 * cout, cout).astype(MATMUL_DTYPE)

    h = fused_gn_swish_conv1(x, p["norm1_gamma"], p["norm1_beta"], w1, p["conv1_b"], t)

    if cin != cout:
        # TODO(synk): conv_shortcut=True (3x3 shortcut conv) variant not implemented; nin 1x1 only.
        nin_w = p["nin_w"].reshape(cout, cin).T.astype(MATMUL_DTYPE)     # (Cin, Cout)
        out = fused_gn_swish_conv2_residual(h, x, p["norm2_gamma"], p["norm2_beta"],
                                            w2, p["conv2_b"], nin_w, p["nin_b"],
                                            out_dtype=x_nchw.dtype)
    else:
        out = fused_gn_swish_conv2_residual(h, x, p["norm2_gamma"], p["norm2_beta"],
                                            w2, p["conv2_b"], out_dtype=x_nchw.dtype)
    return jnp.transpose(out, (0, 3, 1, 2))                        # NHWC -> NCHW


# ---------------------------------------------------------------------------
# Pure-JAX reference (f32) for correctness check
# ---------------------------------------------------------------------------
def _ref_groupnorm(x, gamma, beta):
    n, c, hgt, wid = x.shape
    xg = x.reshape(n, NUM_GROUPS, c // NUM_GROUPS, hgt, wid)
    mean = xg.mean(axis=(2, 3, 4), keepdims=True)
    var = xg.var(axis=(2, 3, 4), keepdims=True)
    xn = ((xg - mean) / jnp.sqrt(var + EPS)).reshape(n, c, hgt, wid)
    return xn * gamma[None, :, None, None] + beta[None, :, None, None]


def _ref_conv(x, w, b, pad):
    y = jax.lax.conv_general_dilated(x, w, (1, 1), [(pad, pad), (pad, pad)],
                                     dimension_numbers=("NCHW", "OIHW", "NCHW"))
    return y + b[None, :, None, None]


def resnet_block_ref(x, temb, p):
    h = _ref_groupnorm(x, p["norm1_gamma"], p["norm1_beta"])
    h = h * jax.nn.sigmoid(h)
    h = _ref_conv(h, p["conv1_w"], p["conv1_b"], 1)
    t = temb * jax.nn.sigmoid(temb)
    t = t @ p["temb_w"].T + p["temb_b"]
    h = h + t[:, :, None, None]
    h = _ref_groupnorm(h, p["norm2_gamma"], p["norm2_beta"])
    h = h * jax.nn.sigmoid(h)
    h = _ref_conv(h, p["conv2_w"], p["conv2_b"], 1)
    xs = _ref_conv(x, p["nin_w"], p["nin_b"], 0)
    return xs + h


# ---------------------------------------------------------------------------
# Main
# ---------------------------------------------------------------------------
if __name__ == "__main__":
    N, Cin, Cout, H, W, Tc = 2, 32, 64, 16, 16, 64   # GroupNorm(32): channels % 32 == 0

    key = jax.random.PRNGKey(0)
    ks = jax.random.split(key, 12)

    def rnd(k, shape, scale=0.05):
        return (scale * jax.random.normal(k, shape)).astype(jnp.float32)

    params = {
        "norm1_gamma": jnp.ones((Cin,), jnp.float32),
        "norm1_beta": jnp.zeros((Cin,), jnp.float32),
        "conv1_w": rnd(ks[0], (Cout, Cin, 3, 3)),
        "conv1_b": rnd(ks[1], (Cout,)),
        "temb_w": rnd(ks[2], (Cout, Tc)),
        "temb_b": rnd(ks[3], (Cout,)),
        "norm2_gamma": jnp.ones((Cout,), jnp.float32),
        "norm2_beta": jnp.zeros((Cout,), jnp.float32),
        "conv2_w": rnd(ks[4], (Cout, Cout, 3, 3)),
        "conv2_b": rnd(ks[5], (Cout,)),
        "nin_w": rnd(ks[6], (Cout, Cin, 1, 1)),
        "nin_b": rnd(ks[7], (Cout,)),
    }

    x = jax.random.normal(ks[8], (N, Cin, H, W), jnp.float32)
    temb = jax.random.normal(ks[9], (N, Tc), jnp.float32)

    out = jax.block_until_ready(resnet_block_pallas(x, temb, params))
    ref = jax.block_until_ready(resnet_block_ref(x, temb, params))

    assert out.shape == (N, Cout, H, W), out.shape
    # Tolerance accounts for bf16 MXU operands / bf16 inter-kernel activation (f32 reference).
    max_err = float(jnp.max(jnp.abs(out - ref)))
    assert jnp.allclose(out, ref, atol=5e-2, rtol=5e-2), max_err
    print("KERNEL_OK")
</pallas_src>

<mosaic_0001>
module attributes {stable_mosaic.version = 11 : i64} {
  func.func @_gn_swish_conv1_kernel(%arg0: i32, %arg1: memref<1x16x16x32xf32, #tpu.memory_space<vmem>>, %arg2: memref<1x32xf32, #tpu.memory_space<vmem>>, %arg3: memref<1x32xf32, #tpu.memory_space<vmem>>, %arg4: memref<288x64xbf16, #tpu.memory_space<vmem>>, %arg5: memref<1x64xf32, #tpu.memory_space<vmem>>, %arg6: memref<1x1x64xf32, #tpu.memory_space<vmem>>, %arg7: memref<1x16x16x64xbf16, #tpu.memory_space<vmem>>) attributes {dimension_semantics = [#tpu.dimension_semantics<parallel>], iteration_bounds = array<i64: 2>, scalar_prefetch = 0 : i64, scratch_operands = 0 : i64, tpu.core_type = #tpu.core_type<tc>, window_params = [{transform_indices = @transform_0, window_bounds = array<i64: 1, 16, 16, 32>}, {pipeline_mode = #tpu.pipeline_mode<synchronous>, transform_indices = @transform_1, window_bounds = array<i64: 1, 32>}, {pipeline_mode = #tpu.pipeline_mode<synchronous>, transform_indices = @transform_2, window_bounds = array<i64: 1, 32>}, {pipeline_mode = #tpu.pipeline_mode<synchronous>, transform_indices = @transform_3, window_bounds = array<i64: 288, 64>}, {pipeline_mode = #tpu.pipeline_mode<synchronous>, transform_indices = @transform_4, window_bounds = array<i64: 1, 64>}, {transform_indices = @transform_5, window_bounds = array<i64: 1, 1, 64>}, {transform_indices = @transform_6, window_bounds = array<i64: 1, 16, 16, 64>}]} {
    %c0 = arith.constant 0 : index
    %c0_0 = arith.constant 0 : index
    %c0_1 = arith.constant 0 : index
    %c0_2 = arith.constant 0 : index
    %0 = vector.load %arg1[%c0, %c0_0, %c0_1, %c0_2] : memref<1x16x16x32xf32, #tpu.memory_space<vmem>>, vector<1x16x16x32xf32>
    %1 = vector.shape_cast %0 : vector<1x16x16x32xf32> to vector<16x16x32xf32>
    %2 = vector.shape_cast %1 : vector<16x16x32xf32> to vector<256x32xf32>
    %c0_3 = arith.constant 0 : index
    %c0_4 = arith.constant 0 : index
    %3 = vector.load %arg2[%c0_3, %c0_4] : memref<1x32xf32, #tpu.memory_space<vmem>>, vector<1x32xf32>
    %c0_5 = arith.constant 0 : index
    %c0_6 = arith.constant 0 : index
    %4 = vector.load %arg3[%c0_5, %c0_6] : memref<1x32xf32, #tpu.memory_space<vmem>>, vector<1x32xf32>
    %cst = arith.constant dense<0.000000e+00> : vector<32xf32>
    %5 = vector.multi_reduction <add>, %2, %cst [0] : vector<256x32xf32> to vector<32xf32>
    %6 = vector.shape_cast %5 : vector<32xf32> to vector<1x32xf32>
    %7 = arith.mulf %2, %2 : vector<256x32xf32>
    %cst_7 = arith.constant dense<0.000000e+00> : vector<32xf32>
    %8 = vector.multi_reduction <add>, %7, %cst_7 [0] : vector<256x32xf32> to vector<32xf32>
    %9 = vector.shape_cast %8 : vector<32xf32> to vector<1x32xf32>
    %10 = vector.shape_cast %6 : vector<1x32xf32> to vector<32x1xf32>
    %cst_8 = arith.constant dense<0.000000e+00> : vector<32xf32>
    %11 = vector.multi_reduction <add>, %10, %cst_8 [1] : vector<32x1xf32> to vector<32xf32>
    %12 = vector.shape_cast %11 : vector<32xf32> to vector<32x1xf32>
    %13 = vector.shape_cast %9 : vector<1x32xf32> to vector<32x1xf32>
    %cst_9 = arith.constant dense<0.000000e+00> : vector<32xf32>
    %14 = vector.multi_reduction <add>, %13, %cst_9 [1] : vector<32x1xf32> to vector<32xf32>
    %15 = vector.shape_cast %14 : vector<32xf32> to vector<32x1xf32>
    %cst_10 = arith.constant 2.560000e+02 : f32
    %16 = vector.broadcast %cst_10 : f32 to vector<32x1xf32>
    %17 = arith.divf %12, %16 : vector<32x1xf32>
    %cst_11 = arith.constant 2.560000e+02 : f32
    %18 = vector.broadcast %cst_11 : f32 to vector<32x1xf32>
    %19 = arith.divf %15, %18 : vector<32x1xf32>
    %20 = arith.mulf %17, %17 : vector<32x1xf32>
    %21 = arith.subf %19, %20 : vector<32x1xf32>
    %cst_12 = arith.constant 9.99999997E-7 : f32
    %22 = vector.broadcast %cst_12 : f32 to vector<32x1xf32>
    %23 = arith.addf %21, %22 : vector<32x1xf32>
    %24 = math.rsqrt %23 : vector<32x1xf32>
    %25 = vector.shape_cast %17 : vector<32x1xf32> to vector<1x32xf32>
    %26 = vector.shape_cast %24 : vector<32x1xf32> to vector<1x32xf32>
    %27 = vector.broadcast %25 : vector<1x32xf32> to vector<256x32xf32>
    %28 = arith.subf %2, %27 : vector<256x32xf32>
    %29 = vector.broadcast %26 : vector<1x32xf32> to vector<256x32xf32>
    %30 = arith.mulf %28, %29 : vector<256x32xf32>
    %31 = vector.broadcast %3 : vector<1x32xf32> to vector<256x32xf32>
    %32 = arith.mulf %30, %31 : vector<256x32xf32>
    %33 = vector.broadcast %4 : vector<1x32xf32> to vector<256x32xf32>
    %34 = arith.addf %32, %33 : vector<256x32xf32>
    %35 = arith.negf %34 : vector<256x32xf32>
    %36 = math.exp %35 : vector<256x32xf32>
    %cst_13 = arith.constant 1.000000e+00 : f32
    %37 = vector.broadcast %cst_13 : f32 to vector<256x32xf32>
    %38 = arith.addf %37, %36 : vector<256x32xf32>
    %39 = arith.divf %37, %38 : vector<256x32xf32>
    %40 = arith.mulf %34, %39 : vector<256x32xf32>
    %41 = vector.shape_cast %40 : vector<256x32xf32> to vector<16x16x32xf32>
    %cst_14 = arith.constant 0.000000e+00 : f32
    %42 = vector.broadcast %cst_14 : f32 to vector<16x1x32xf32>
    %43 = tpu.concatenate %42, %41, %42 in 1 : vector<16x1x32xf32>, vector<16x16x32xf32>, vector<16x1x32xf32> -> vector<16x18x32xf32>
    %cst_15 = arith.constant 0.000000e+00 : f32
    %44 = vector.broadcast %cst_15 : f32 to vector<1x18x32xf32>
    %45 = tpu.concatenate %44, %43, %44 in 0 : vector<1x18x32xf32>, vector<16x18x32xf32>, vector<1x18x32xf32> -> vector<18x18x32xf32>
    %46 = vector.extract_strided_slice %45 {offsets = [0, 0, 0], sizes = [16, 16, 32], strides = [1, 1, 1]} : vector<18x18x32xf32> to vector<16x16x32xf32>
    %47 = vector.shape_cast %46 : vector<16x16x32xf32> to vector<256x32xf32>
    %48 = vector.extract_strided_slice %45 {offsets = [0, 1, 0], sizes = [16, 16, 32], strides = [1, 1, 1]} : vector<18x18x32xf32> to vector<16x16x32xf32>
    %49 = vector.shape_cast %48 : vector<16x16x32xf32> to vector<256x32xf32>
    %50 = vector.extract_strided_slice %45 {offsets = [0, 2, 0], sizes = [16, 16, 32], strides = [1, 1, 1]} : vector<18x18x32xf32> to vector<16x16x32xf32>
    %51 = vector.shape_cast %50 : vector<16x16x32xf32> to vector<256x32xf32>
    %52 = vector.extract_strided_slice %45 {offsets = [1, 0, 0], sizes = [16, 16, 32], strides = [1, 1, 1]} : vector<18x18x32xf32> to vector<16x16x32xf32>
    %53 = vector.shape_cast %52 : vector<16x16x32xf32> to vector<256x32xf32>
    %54 = vector.extract_strided_slice %45 {offsets = [1, 1, 0], sizes = [16, 16, 32], strides = [1, 1, 1]} : vector<18x18x32xf32> to vector<16x16x32xf32>
    %55 = vector.shape_cast %54 : vector<16x16x32xf32> to vector<256x32xf32>
    %56 = vector.extract_strided_slice %45 {offsets = [1, 2, 0], sizes = [16, 16, 32], strides = [1, 1, 1]} : vector<18x18x32xf32> to vector<16x16x32xf32>
    %57 = vector.shape_cast %56 : vector<16x16x32xf32> to vector<256x32xf32>
    %58 = vector.extract_strided_slice %45 {offsets = [2, 0, 0], sizes = [16, 16, 32], strides = [1, 1, 1]} : vector<18x18x32xf32> to vector<16x16x32xf32>
    %59 = vector.shape_cast %58 : vector<16x16x32xf32> to vector<256x32xf32>
    %60 = vector.extract_strided_slice %45 {offsets = [2, 1, 0], sizes = [16, 16, 32], strides = [1, 1, 1]} : vector<18x18x32xf32> to vector<16x16x32xf32>
    %61 = vector.shape_cast %60 : vector<16x16x32xf32> to vector<256x32xf32>
    %62 = vector.extract_strided_slice %45 {offsets = [2, 2, 0], sizes = [16, 16, 32], strides = [1, 1, 1]} : vector<18x18x32xf32> to vector<16x16x32xf32>
    %63 = vector.shape_cast %62 : vector<16x16x32xf32> to vector<256x32xf32>
    %64 = tpu.concatenate %47, %49, %51, %53, %55, %57, %59, %61, %63 in 1 : vector<256x32xf32>, vector<256x32xf32>, vector<256x32xf32>, vector<256x32xf32>, vector<256x32xf32>, vector<256x32xf32>, vector<256x32xf32>, vector<256x32xf32>, vector<256x32xf32> -> vector<256x288xf32>
    %65 = arith.truncf %64 : vector<256x288xf32> to vector<256x288xbf16>
    %c0_16 = arith.constant 0 : index
    %c0_17 = arith.constant 0 : index
    %66 = vector.load %arg4[%c0_16, %c0_17] : memref<288x64xbf16, #tpu.memory_space<vmem>>, vector<288x64xbf16>
    %cst_18 = arith.constant dense<0.000000e+00> : vector<256x64xf32>
    %67 = tpu.matmul %65, %66, %cst_18 {dimension_numbers = #tpu.dot_dimension_numbers<[1], [0], [0], [1], [0, 0, 1, 1], [], []>} : vector<256x288xbf16>, vector<288x64xbf16>, vector<256x64xf32> -> vector<256x64xf32>
    %c0_19 = arith.constant 0 : index
    %c0_20 = arith.constant 0 : index
    %68 = vector.load %arg5[%c0_19, %c0_20] : memref<1x64xf32, #tpu.memory_space<vmem>>, vector<1x64xf32>
    %69 = vector.broadcast %68 : vector<1x64xf32> to vector<256x64xf32>
    %70 = arith.addf %67, %69 : vector<256x64xf32>
    %c0_21 = arith.constant 0 : index
    %c0_22 = arith.constant 0 : index
    %c0_23 = arith.constant 0 : index
    %71 = vector.load %arg6[%c0_21, %c0_22, %c0_23] : memref<1x1x64xf32, #tpu.memory_space<vmem>>, vector<1x1x64xf32>
    %72 = vector.shape_cast %71 : vector<1x1x64xf32> to vector<1x64xf32>
    %73 = vector.broadcast %72 : vector<1x64xf32> to vector<256x64xf32>
    %74 = arith.addf %70, %73 : vector<256x64xf32>
    %75 = vector.shape_cast %74 : vector<256x64xf32> to vector<1x16x16x64xf32>
    %76 = arith.truncf %75 : vector<1x16x16x64xf32> to vector<1x16x16x64xbf16>
    %c0_24 = arith.constant 0 : index
    %c0_25 = arith.constant 0 : index
    %c0_26 = arith.constant 0 : index
    %c0_27 = arith.constant 0 : index
    %77 = vector.load %arg7[%c0_24, %c0_25, %c0_26, %c0_27] : memref<1x16x16x64xbf16, #tpu.memory_space<vmem>>, vector<1x16x16x64xbf16>
    tpu.vector_store %arg7[%c0_24, %c0_25, %c0_26, %c0_27], %76 {strides = array<i32>} : memref<1x16x16x64xbf16, #tpu.memory_space<vmem>>, vector<1x16x16x64xbf16>,
    return
  }
  func.func @transform_0(%arg0: i32) -> (i32, i32, i32, i32) {
    %c0_i32 = arith.constant 0 : i32
    %c0_i32_0 = arith.constant 0 : i32
    %c0_i32_1 = arith.constant 0 : i32
    %c0_i32_2 = arith.constant 0 : i32
    return %arg0, %c0_i32, %c0_i32_0, %c0_i32_1 : i32, i32, i32, i32
  }
  func.func @transform_1(%arg0: i32) -> (i32, i32) {
    %c0_i32 = arith.constant 0 : i32
    %c0_i32_0 = arith.constant 0 : i32
    %c0_i32_1 = arith.constant 0 : i32
    return %c0_i32, %c0_i32_0 : i32, i32
  }
  func.func @transform_2(%arg0: i32) -> (i32, i32) {
    %c0_i32 = arith.constant 0 : i32
    %c0_i32_0 = arith.constant 0 : i32
    %c0_i32_1 = arith.constant 0 : i32
    return %c0_i32, %c0_i32_0 : i32, i32
  }
  func.func @transform_3(%arg0: i32) -> (i32, i32) {
    %c0_i32 = arith.constant 0 : i32
    %c0_i32_0 = arith.constant 0 : i32
    %c0_i32_1 = arith.constant 0 : i32
    return %c0_i32, %c0_i32_0 : i32, i32
  }
  func.func @transform_4(%arg0: i32) -> (i32, i32) {
    %c0_i32 = arith.constant 0 : i32
    %c0_i32_0 = arith.constant 0 : i32
    %c0_i32_1 = arith.constant 0 : i32
    return %c0_i32, %c0_i32_0 : i32, i32
  }
  func.func @transform_5(%arg0: i32) -> (i32, i32, i32) {
    %c0_i32 = arith.constant 0 : i32
    %c0_i32_0 = arith.constant 0 : i32
    %c0_i32_1 = arith.constant 0 : i32
    return %arg0, %c0_i32, %c0_i32_0 : i32, i32, i32
  }
  func.func @transform_6(%arg0: i32) -> (i32, i32, i32, i32) {
    %c0_i32 = arith.constant 0 : i32
    %c0_i32_0 = arith.constant 0 : i32
    %c0_i32_1 = arith.constant 0 : i32
    %c0_i32_2 = arith.constant 0 : i32
    return %arg0, %c0_i32, %c0_i32_0, %c0_i32_1 : i32, i32, i32, i32
  }
}

</mosaic_0001>

<bundles_post_ra>
// kernel: tpu_custom_call.1
= control target key start
LH: loop header
LB: loop body
LE: loop exit
PB: predicated region body
PF: predicated region fallthrough
CT: control target
= control target key end

     0   :  { %s6991_s0 = inlined_call_operand.hbm [shape: f32[2,16,16,32], index: 0, kind: input, shape index: {}]   ;;  %s6992_s1 = inlined_call_operand.hbm [shape: f32[1,32], index: 1, kind: input, shape index: {}]   ;;  %s6993_s2 = inlined_call_operand.hbm [shape: f32[1,32], index: 2, kind: input, shape index: {}]   ;;  %s6994_s3 = inlined_call_operand.hbm [shape: bf16[288,64], index: 3, kind: input, shape index: {}]   ;;  %s6995_s4 = inlined_call_operand.hbm [shape: f32[1,64], index: 4, kind: input, shape index: {}]   ;;  %s6996_s5 = inlined_call_operand.hbm [shape: f32[2,1,64], index: 5, kind: input, shape index: {}]   ;;  %s6997_s6 = inlined_call_operand.hbm [shape: bf16[2,16,16,64], index: 6, kind: output, shape index: {}]  }
   0x1   :  { %7125 = sst [smem:[#allocation99_spill]] %s6991_s0 }
   0x2   :  { %7126 = sst [smem:[#allocation100_spill]] %s6992_s1 }
   0x3   :  { %11 = vsyncpa [#allocation3], 0 }
   0x4   :  { %13 = vsyncpa [#allocation3 + $0x1], 0 }
   0x5   :  { %14 = vsyncpa [#allocation6], 0 }
   0x6   :  { %15 = vsyncpa [#allocation9], 0 }
   0x7   :  { %16 = vsyncpa [#allocation12], 0 }
   0x8   :  { %18 = vsyncpa [#allocation12 + $0x1], 0 }
   0x9   :  { %19 = vsyncpa [#allocation4], 0 }
   0xa   :  { %21 = vsyncpa [#allocation4 + $0x1], 0  ;;  %s4516_s21 = smov 0   ;;  %s4518_s22 = smov 0  }
   0xb   :  { %s4520_s23 = smov 0   ;;  %s4522_s24 = smov 0  }
   0xc LB: > { %s4537_s25 = sadd.s32 4294967295, %s4463_s24   ;;  %s3149_s26 = sadd.s32 4294967294, %s4463_s24   ;;  %s4463_s24 = sphi %s4522_s24, %s7383_s24   ;;  %s4459_s23 = sphi %s4520_s23, %s7382_s23   ;;  %s4455_s22 = sphi %s4518_s22, %s7381_s22   ;;  %s4451_s21 = sphi %s4516_s21, %s7380_s21  }
   0xd   : > { %p47_p0 = scmp.ne.s32.totalorder %s4455_s22, %s4451_s21  ;;  %p6998_p1 = scmp.eq.s32.totalorder %s4537_s25, 0 }
   0xe   : > { %p187_p3 = scmp.eq.s32.totalorder %s3149_s26, 1  ;;  %p3150_p5 = scmp.ge.s32.totalorder %s4463_s24, 1 }
   0xf   : > { %p4546_p4 = por %p6998_p1, %p47_p0  ;;  %p194_p7 = scmp.lt.s32.totalorder %s4463_s24, 3 }
  0x10   : > { %p4551_p6 = por %p187_p3, %p47_p0  ;;  %s4465_s30 = smov [#allocation5]  }
  0x11   : > { %s7127_s27 = scalar_select %p4546_p4, 1, 0 }
  0x12   : > { %s7128_s28 = scalar_select %p4551_p6, 1, 0 }
  0x13   : > { %p4556_p8 = pnand %p3150_p5, %p194_p7  ;;  %s207_s7 = sshll.u32 %s4465_s30, 4  ;;  %s208_s7 = int_to_ptr.vmem [resolvable:$true] %s207_s7 }
  0x14   : > { %s4466_s8 = smov [#allocation8]   ;;  %s4467_s11 = smov [#allocation7]  }
  0x15   : > { %s7129_s29 = scalar_select %p4556_p8, 1, 0 }
  0x16   : > { %p3512_p10 = pneg %p4556_p8  ;;  %s228_s9 = sshll.u32 %s4466_s8, 4  ;;  %s4569_s9 = int_to_ptr.vmem [resolvable:$true] %s228_s9 }
  0x17   : > { %s4571_s12 = sshll.u32 %s4467_s11, 4  ;;  %s7131_s1 = sld [smem:[#allocation100_spill]]  ;;  %s219_s12 = int_to_ptr.vmem [resolvable:$true] %s4571_s12 }
  0x18   : > { %p4565_p11 = pnand %p3512_p10, %p6998_p1 }
  0x1a   : > { %p4581_p13 = pneg %p4565_p11 }
  0x1d   : > { %s4213_s15 = scalar_lea.hbm %s7131_s1, 16 }
  0x1e   : > { %p4214_p12 = scmp.ne.s32.totalorder %s7131_s1, %s4213_s15  ;;  %p4220_p5 = scmp.lt.u32.totalorder %s4213_s15, %s7131_s1 }
  0x20   : > { %p4216_p0 = pnand %p4581_p13, %p4214_p12 }
  0x22   : > { %p4217_p3 = pneg %p4216_p0 }
  0x24   : > { %p4222_p7 = pnand %p4220_p5, %p4217_p3 }
  0x26   : > { %4225 = shalt.err (!%p4222_p7)
}
  0x27   : > { %s4226_s26 = scalar_lea.vmem %s208_s7, 16  ;;  %s4233_s30 = scalar_lea.vmem %s208_s7, 32 }
  0x28   : > { %p4227_p10 = scmp.ne.s32.totalorder %s208_s7, %s4226_s26  ;;  %p4234_p2 = scmp.lt.s32.totalorder %s208_s7, %s208_s7 }
  0x29   : > { %p4235_p6 = scmp.lt.s32.totalorder %s4233_s30, %s4226_s26 }
  0x2a   : > { %p4229_p9 = pnand %p4227_p10, %p4581_p13 }
  0x2b   : > { %p4236_p4 = por %p4235_p6, %p4234_p2 }
  0x2c   : > { %p4230_p1 = pneg %p4229_p9 }
  0x2e   : > { %p4237_p8 = pnand %p4236_p4, %p4230_p1 }
  0x30   : > { %4240 = shalt.err (!%p4237_p8)
}
  0x31   : > { %3515 = dma.hbm_to_vmem [thread:$0]  (!%p4565_p11), %s7131_s1, 16, %s208_s7, [#allocation6]  }
  0x32   : > { %s4241_s15 = scalar_lea.hbm %s6994_s3, 2304 }
  0x33   : > { %p4242_p9 = scmp.ne.s32.totalorder %s6994_s3, %s4241_s15  ;;  %p4248_p1 = scmp.lt.u32.totalorder %s4241_s15, %s6994_s3 }
  0x35   : > { %p4244_p12 = pnand %p4242_p9, %p4581_p13 }
  0x37   : > { %p4245_p2 = pneg %p4244_p12 }
  0x39   : > { %p4250_p4 = pnand %p4248_p1, %p4245_p2 }
  0x3b   : > { %4253 = shalt.err (!%p4250_p4)
}
  0x3c   : > { %s4254_s7 = scalar_lea.vmem %s4569_s9, 2304  ;;  %p4262_p3 = scmp.lt.s32.totalorder %s4569_s9, %s4569_s9 }
  0x3d   : > { %p4255_p6 = scmp.ne.s32.totalorder %s4569_s9, %s4254_s7  ;;  %p4263_p5 = scmp.lt.s32.totalorder %s4254_s7, %s4254_s7 }
  0x3f   : > { %p4257_p8 = pnand %p4255_p6, %p4581_p13  ;;  %p4264_p7 = por %p4263_p5, %p4262_p3 }
  0x41   : > { %p4258_p0 = pneg %p4257_p8 }
  0x43   : > { %p4265_p10 = pnand %p4264_p7, %p4258_p0 }
  0x45   : > { %4268 = shalt.err (!%p4265_p10)
}
  0x46   : > { %s4468_s26 = smov 64   ;;  %s4469_s30 = smov 4  }
  0x47   : > { %3521 = dma.hbm_to_vmem [thread:$0]  (!%p4565_p11), %s6994_s3, 2304, %s4569_s9, [#allocation9], %s4468_s26, %s4468_s26, %s4469_s30  }
  0x48   : > { %s4269_s15 = scalar_lea.hbm %s6993_s2, 16 }
  0x49   : > { %p4270_p9 = scmp.ne.s32.totalorder %s6993_s2, %s4269_s15  ;;  %p4276_p1 = scmp.lt.u32.totalorder %s4269_s15, %s6993_s2 }
  0x4b   : > { %p4272_p12 = pnand %p4270_p9, %p4581_p13 }
  0x4d   : > { %p4273_p2 = pneg %p4272_p12 }
  0x4f   : > { %p4278_p4 = pnand %p4276_p1, %p4273_p2 }
  0x51   : > { %4281 = shalt.err (!%p4278_p4)
}
  0x52   : > { %s4282_s7 = scalar_lea.vmem %s219_s12, 16  ;;  %s4289_s9 = scalar_lea.vmem %s219_s12, 32 }
  0x53   : > { %p4283_p6 = scmp.ne.s32.totalorder %s219_s12, %s4282_s7  ;;  %p4290_p3 = scmp.lt.s32.totalorder %s219_s12, %s219_s12 }
  0x54   : > { %p4291_p5 = scmp.lt.s32.totalorder %s4289_s9, %s4282_s7 }
  0x55   : > { %p4285_p8 = pnand %p4283_p6, %p4581_p13 }
  0x56   : > { %p4292_p7 = por %p4291_p5, %p4290_p3 }
  0x57   : > { %p4286_p0 = pneg %p4285_p8 }
  0x59   : > { %p4293_p10 = pnand %p4292_p7, %p4286_p0 }
  0x5b   : > { %4296 = shalt.err (!%p4293_p10)
}
  0x5c   : > { %3518 = dma.hbm_to_vmem [thread:$0]  (!%p4565_p11), %s6993_s2, 16, %s219_s12, [#allocation6]  }
  0x5d   : > { %s4470_s8 = smov [#allocation10]   ;;  %s4297_s15 = scalar_lea.hbm %s6995_s4, 16 }
  0x5e   : > { %s242_s11 = sshll.u32 %s4470_s8, 4  ;;  %p4298_p9 = scmp.ne.s32.totalorder %s6995_s4, %s4297_s15  ;;  %s243_s11 = int_to_ptr.vmem [resolvable:$true] %s242_s11 }
  0x5f   : > { %p4304_p1 = scmp.lt.u32.totalorder %s4297_s15, %s6995_s4 }
  0x60   : > { %p4300_p12 = pnand %p4298_p9, %p4581_p13 }
  0x62   : > { %p4301_p2 = pneg %p4300_p12 }
  0x64   : > { %p4306_p4 = pnand %p4304_p1, %p4301_p2 }
  0x66   : > { %4309 = shalt.err (!%p4306_p4)
}
  0x67   : > { %s4310_s12 = scalar_lea.vmem %s243_s11, 16  ;;  %s4317_s7 = scalar_lea.vmem %s243_s11, 32 }
  0x68   : > { %p4311_p6 = scmp.ne.s32.totalorder %s243_s11, %s4310_s12  ;;  %p4318_p3 = scmp.lt.s32.totalorder %s243_s11, %s243_s11 }
  0x69   : > { %p4319_p5 = scmp.lt.s32.totalorder %s4317_s7, %s4310_s12 }
  0x6a   : > { %p4313_p8 = pnand %p4311_p6, %p4581_p13 }
  0x6b   : > { %p4320_p7 = por %p4319_p5, %p4318_p3 }
  0x6c   : > { %p4314_p0 = pneg %p4313_p8 }
  0x6e   : > { %p4321_p10 = pnand %p4320_p7, %p4314_p0 }
  0x70   : > { %4324 = shalt.err (!%p4321_p10)
}
  0x71   : > { %3524 = dma.hbm_to_vmem [thread:$0]  (!%p4565_p11), %s6995_s4, 16, %s243_s11, [#allocation9]  }
  0x72   : > { %s4658_s18 = sadd.s32 1, %s4463_s24   ;;  %s34_s30 = sadd.s32 1, %s4459_s23 }
  0x73   : > { %s31_s10 = ssub.s32 %s4463_s24, %s4658_s18  ;;  %p41_p13 = scmp.ne.s32.totalorder %s4459_s23, %s4455_s22 }
  0x74   : > { %p32_p9 = scmp.eq.s32.totalorder %s31_s10, 0  ;;  %p42_p12 = scmp.eq.s32.totalorder %s4463_s24, 0 }
  0x75   : > { %p7133_p2 = scmp.eq.s32.totalorder %s4537_s25, 1  ;;  %p3540_p4 = scmp.lt.s32.totalorder %s4463_s24, 2 }
  0x76   : > { %s4674_s13 = scalar_select %p32_p9, %s4459_s23, %s34_s30  }
  0x77   : > { %p4668_p1 = por %p7133_p2, %p41_p13  ;;  %p43_p6 = por %p42_p12, %p41_p13 }
  0x78   : > { %s4677_s14 = sand.u32 1, %s4459_s23   ;;  %s3274_s15 = sshll.u32 %s4463_s24, 12 }
  0x79   : > { %s7134_s8 = scalar_select %p4668_p1, 1, 0 }
  0x7a   : > { %s3156_s11 = sshll.u32 %s4677_s14, 8  ;;  %s7135_s0 = sld [smem:[#allocation99_spill]] }
  0x7b   : > { %s257_s20 = scalar_lea.vmem [#allocation2], %s3156_s11  ;;  %p4688_p11 = pnand %p3540_p4, %p43_p6 }
  0x7c   : > { %s264_s12 = sshll.u32 %s257_s20, 4  ;;  %s254_s9 = scalar_lea.sflag [#allocation3], %s4677_s14  ;;  %s4686_s12 = int_to_ptr.vmem [resolvable:$true] %s264_s12 }
  0x7d   : > { %p4327_p0 = pneg %p4688_p11 }
  0x80   : > { %s4684_s19 = scalar_lea.hbm %s7135_s0, %s3274_s15  ;;  %s4330_s11 = scalar_lea.hbm %s7135_s0, 8192 }
  0x81   : > { %s4325_s26 = scalar_lea.hbm %s4684_s19, 4096  ;;  %p4331_p7 = scmp.lt.u32.totalorder %s4684_s19, %s7135_s0 }
  0x82   : > { %p4326_p8 = scmp.ne.s32.totalorder %s4684_s19, %s4325_s26  ;;  %p4332_p10 = scmp.lt.u32.totalorder %s4330_s11, %s4325_s26 }
  0x83   : > { %p4334_p9 = scmp.lt.u32.totalorder %s4325_s26, %s4684_s19 }
  0x84   : > { %p4328_p3 = pnand %p4327_p0, %p4326_p8  ;;  %p4333_p13 = por %p4332_p10, %p4331_p7 }
  0x86   : > { %p4329_p5 = pneg %p4328_p3  ;;  %p4335_p12 = por %p4334_p9, %p4333_p13 }
  0x88   : > { %p4336_p2 = pnand %p4335_p12, %p4329_p5 }
  0x8a   : > { %4339 = shalt.err (!%p4336_p2)
}
  0x8b   : > { %s4340_s17 = scalar_lea.vmem %s4686_s12, 4096  ;;  %s4471_s20 = smov [#allocation2]  }
  0x8c   : > { %p4341_p4 = scmp.ne.s32.totalorder %s4686_s12, %s4340_s17  ;;  %s4345_s30 = sshll.u32 %s4471_s20, 4  ;;  %s4346_s30 = int_to_ptr.vmem [resolvable:$false] %s4345_s30 }
  0x8d   : > { %s4347_s10 = scalar_lea.vmem %s4346_s30, 8192  ;;  %p4348_p3 = scmp.lt.s32.totalorder %s4686_s12, %s4346_s30 }
  0x8e   : > { %p4343_p6 = pnand %p4341_p4, %p4327_p0  ;;  %p4349_p7 = scmp.lt.s32.totalorder %s4347_s10, %s4340_s17 }
  0x90   : > { %p4344_p8 = pneg %p4343_p6  ;;  %p4350_p10 = por %p4349_p7, %p4348_p3 }
  0x92   : > { %p4351_p13 = pnand %p4350_p10, %p4344_p8 }
  0x94   : > { %4354 = shalt.err (!%p4351_p13)
}
  0x95   : > { %s4472_s26 = smov 128   ;;  %s4473_s11 = smov 8  }
  0x96   : > { %3528 = dma.hbm_to_vmem [thread:$0]  (!%p4688_p11), %s4684_s19, 4096, %s4686_s12, %s254_s9, %s4472_s26, %s4472_s26, %s4473_s11  }
  0x97   : > { %s3159_s15 = sshll.u32 %s4463_s24, 4  ;;  %s277_s30 = scalar_lea.vmem [#allocation11], %s4677_s14 }
  0x98   : > { %s4724_s17 = scalar_lea.hbm %s6996_s5, %s3159_s15  ;;  %s284_s10 = sshll.u32 %s277_s30, 4  ;;  %s285_s10 = int_to_ptr.vmem [resolvable:$true] %s284_s10 }
  0x99   : > { %s275_s0 = scalar_lea.sflag [#allocation12], %s4677_s14  ;;  %s4355_s1 = scalar_lea.hbm %s4724_s17, 16 }
  0x9a   : > { %p4356_p5 = scmp.ne.s32.totalorder %s4724_s17, %s4355_s1  ;;  %s4360_s9 = scalar_lea.hbm %s6996_s5, 32 }
  0x9b   : > { %p4361_p2 = scmp.lt.u32.totalorder %s4724_s17, %s6996_s5  ;;  %p4362_p4 = scmp.lt.u32.totalorder %s4360_s9, %s4355_s1 }
  0x9c   : > { %p4358_p9 = pnand %p4356_p5, %p4327_p0  ;;  %p4364_p8 = scmp.lt.u32.totalorder %s4355_s1, %s4724_s17 }
  0x9d   : > { %p4363_p6 = por %p4362_p4, %p4361_p2 }
  0x9e   : > { %p4359_p12 = pneg %p4358_p9 }
  0x9f   : > { %p4365_p3 = por %p4364_p8, %p4363_p6 }
  0xa1   : > { %p4366_p7 = pnand %p4365_p3, %p4359_p12 }
  0xa3   : > { %4369 = shalt.err (!%p4366_p7)
}
  0xa4   : > { %s4370_s14 = scalar_lea.vmem %s285_s10, 16  ;;  %s4474_s15 = smov [#allocation11]  }
  0xa5   : > { %p4371_p10 = scmp.ne.s32.totalorder %s285_s10, %s4370_s14  ;;  %s4375_s16 = sshll.u32 %s4474_s15, 4  ;;  %s4376_s16 = int_to_ptr.vmem [resolvable:$false] %s4375_s16 }
  0xa6   : > { %s4377_s20 = scalar_lea.vmem %s4376_s16, 32  ;;  %p4378_p9 = scmp.lt.s32.totalorder %s285_s10, %s4376_s16 }
  0xa7   : > { %p4373_p13 = pnand %p4371_p10, %p4327_p0  ;;  %p4379_p1 = scmp.lt.s32.totalorder %s4377_s20, %s4370_s14 }
  0xa9   : > { %p4374_p5 = pneg %p4373_p13  ;;  %p4380_p2 = por %p4379_p1, %p4378_p9 }
  0xab   : > { %p4381_p4 = pnand %p4380_p2, %p4374_p5 }
  0xad   : > { %4384 = shalt.err (!%p4381_p4)
}
  0xae   : > { %3531 = dma.hbm_to_vmem [thread:$0]  (!%p4688_p11), %s4724_s17, 16, %s285_s10, %s275_s0  }
  0xaf   : > { %p7137_p12 = scmp.ne.s32.totalorder %s7129_s29, 0 }
  0xb1   : > { %293 = sbr.rel (%p7137_p12) target bundleno = 1036 (0x40c), region = 44 }
  0xb8   : > { %s4750_s1 = sand.u32 1, %s4455_s22   ;;  %p7138_p1 = scmp.ne.s32.totalorder %s7127_s27, 0 }
  0xb9   : > { %s3161_s30 = sshll.u32 %s4750_s1, 8  ;;  %s296_s19 = scalar_lea.sflag [#allocation3], %s4750_s1 }
  0xba   : > { %s4754_s12 = scalar_lea.vmem [#allocation2], %s3161_s30 }
  0xbb   : > { %4430 = dma.done.wait (%p7138_p1), %s296_s19, 4096  }
  0xbc   : > { %4432 = vsyncadd (%p7138_p1), %s296_s19, 4294963200  ;;  %p7139_p11 = scmp.eq.s32.totalorder %s4537_s25, 0 }
  0xbe   : > { %4434 = dma.done.wait (%p7139_p11), [#allocation6], 32   ;;  %p7140_p0 = pmov %p7139_p11 }
  0xc0   : > { %4436 = vsyncadd (%p7140_p0), [#allocation6], 4294967264  ;;  %p7141_p6 = pmov %p7140_p0 }
  0xc1   : > { %p7142_p8 = pmov %p7140_p0 }
  0xc2   : > { %4438 = dma.done.wait (%p7141_p6), [#allocation9], 2320  }
  0xc3   : > { %4440 = vsyncadd (%p7142_p8), [#allocation9], 4294964976  ;;  %s321_s0 = scalar_lea.sflag [#allocation12], %s4750_s1  ;;  %s323_s29 = scalar_lea.vmem [#allocation11], %s4750_s1 }
  0xc4   : > { %4442 = dma.done.wait (%p7138_p1), %s321_s0, 16  }
  0xc5   : > { %4444 = vsyncadd (%p7138_p1), %s321_s0, 4294967280  ;;  %vm391_vm0 = vcmask 261120   ;;  %v4775_v0 = vld [vmem:[%s4754_s12] sm:$0xff]  ;;  %v4778_v1 = vld [vmem:[%s4754_s12 + $0x8] sm:$0xff]  ;;  %vm634_vm1 = vcmask 130112   ;;  %vm641_vm2 = vcmask 195712  }
  0xc6   : > { %v4781_v2 = vld [vmem:[%s4754_s12 + $0x10] sm:$0xff]  ;;  %v4784_v3 = vld [vmem:[%s4754_s12 + $0x18] sm:$0xff]  ;;  %v392_v4 = vsel %vm391_vm0, %v4775_v0, 0.0  ;;  %v393_v5 = vsel %vm391_vm0, %v4778_v1, 0.0  ;;  %v4793_v7 = vld [vmem:[%s4754_s12 + $0x20] sm:$0xff]  ;;  %v461_v31 = vmul.f32 %v4775_v0, %v4775_v0  ;;  %v462_v32 = vmul.f32 %v4778_v1, %v4778_v1  ;;  %s4476_s27 = smov 64  }
  0xc7   : > { %v395_v6 = vsel %vm391_vm0, %v4781_v2, 0.0  ;;  %v394_v8 = vadd.f32 %v393_v5, %v392_v4  ;;  %v397_v9 = vsel %vm391_vm0, %v4784_v3, 0.0  ;;  %v4798_v10 = vld [vmem:[%s4754_s12 + $0x28] sm:$0xff]  ;;  %v399_v12 = vsel %vm391_vm0, %v4793_v7, 0.0  ;;  %v4803_v13 = vld [vmem:[%s4754_s12 + $0x30] sm:$0xff]  ;;  %v4806_v15 = vld [vmem:[%s4754_s12 + $0x38] sm:$0xff] }
  0xc8   : > { %v365_v16 = vld [vmem:[%s4754_s12 + $0x40] sm:$0xff]  ;;  %v366_v17 = vld [vmem:[%s4754_s12 + $0x48] sm:$0xff]  ;;  %v401_v18 = vsel %vm391_vm0, %v4798_v10, 0.0  ;;  %v4813_v19 = vld [vmem:[%s4754_s12 + $0x50] sm:$0xff]  ;;  %v403_v22 = vsel %vm391_vm0, %v4803_v13, 0.0  ;;  %v405_v24 = vsel %vm391_vm0, %v4806_v15, 0.0  ;;  %v463_v33 = vmul.f32 %v4781_v2, %v4781_v2 }
  0xc9   : > { %v396_v11 = vadd.f32 %v395_v6, %v394_v8  ;;  %v4816_v20 = vld [vmem:[%s4754_s12 + $0x58] sm:$0xff]  ;;  %v407_v25 = vsel %vm391_vm0, %v365_v16, 0.0  ;;  %v409_v26 = vsel %vm391_vm0, %v366_v17, 0.0  ;;  %v411_v27 = vsel %vm391_vm0, %v4813_v19, 0.0  ;;  %v4835_v34 = vld [vmem:[%s4754_s12 + $0x60] sm:$0xff]  ;;  %v4845_v42 = vld [vmem:[%s4754_s12 + $0x68] sm:$0xff] }
  0xca   : > { %v413_v28 = vsel %vm391_vm0, %v4816_v20, 0.0  ;;  %v464_v36 = vmul.f32 %v4784_v3, %v4784_v3  ;;  %v465_v38 = vmul.f32 %v4793_v7, %v4793_v7  ;;  %v493_v39 = vsel %vm391_vm0, %v461_v31, 0.0  ;;  %v4853_v48 = vld [vmem:[%s4754_s12 + $0x70] sm:$0xff]  ;;  %v4861_v54 = vld [vmem:[%s4754_s12 + $0x78] sm:$0xff]  ;;  %v4869_v60 = vld [vmem:[%s4754_s12 + $0x80] sm:$0xff]  ;;  %s4477_s7 = smov 96  }
  0xcb   : > { %v398_v14 = vadd.f32 %v397_v9, %v396_v11  ;;  %v494_v40 = vsel %vm391_vm0, %v462_v32, 0.0  ;;  %v496_v41 = vsel %vm391_vm0, %v463_v33, 0.0  ;;  %v415_v45 = vsel %vm391_vm0, %v4835_v34, 0.0  ;;  %v4875_v6 = vld [vmem:[%s4754_s12 + $0x88] sm:$0xff]  ;;  %s4478_s17 = smov 32   ;;  %s3166_s10 = sshll.u32 %s4750_s1, 7 }
  0xcc   : > { %v495_v44 = vadd.f32 %v494_v40, %v493_v39  ;;  %v466_v46 = vmul.f32 %v4798_v10, %v4798_v10  ;;  %v498_v47 = vsel %vm391_vm0, %v464_v36, 0.0  ;;  %v417_v51 = vsel %vm391_vm0, %v4845_v42, 0.0  ;;  %s6801_s9 = scalar_lea.vmem [#allocation13], %s3166_s10  ;;  %s3307_s26 = sshll.u32 %s4537_s25, 11 }
  0xcd   : > { %v400_v21 = vadd.f32 %v399_v12, %v398_v14  ;;  %v467_v52 = vmul.f32 %v4803_v13, %v4803_v13  ;;  %v500_v53 = vsel %vm391_vm0, %v465_v38, 0.0  ;;  %v419_v57 = vsel %vm391_vm0, %v4853_v48, 0.0  ;;  %s3018_s11 = sshll.u32 %s6801_s9, 4  ;;  %s6939_s16 = scalar_lea.hbm %s6997_s6, %s3307_s26  ;;  %s6943_s11 = int_to_ptr.vmem [resolvable:$true] %s3018_s11 }
  0xce   : > { %v497_v50 = vadd.f32 %v496_v41, %v495_v44  ;;  %v468_v58 = vmul.f32 %v4806_v15, %v4806_v15  ;;  %v502_v59 = vsel %vm391_vm0, %v466_v46, 0.0  ;;  %v421_v63 = vsel %vm391_vm0, %v4861_v54, 0.0  ;;  %v4913_v44 = vld [vmem:[%s4754_s12 + $0xb0] sm:$0xff]  ;;  %s3005_s25 = scalar_lea.sflag [#allocation4], %s4750_s1  ;;  %s4385_s20 = scalar_lea.vmem %s6943_s11, 2048 }
  0xcf   : > { %v402_v23 = vadd.f32 %v401_v18, %v400_v21  ;;  %v469_v4 = vmul.f32 %v365_v16, %v365_v16  ;;  %v504_v5 = vsel %vm391_vm0, %v467_v52, 0.0  ;;  %v423_v11 = vsel %vm391_vm0, %v4869_v60, 0.0  ;;  %v4881_v18 = vld [vmem:[%s4754_s12 + $0x90] sm:$0xff]  ;;  %p4386_p3 = scmp.ne.s32.totalorder %s6943_s11, %s4385_s20  ;;  %p7377_p7 = scmp.ne.s32.totalorder %s7134_s8, 0 }
  0xd0   : > { %v499_v56 = vadd.f32 %v498_v47, %v497_v50  ;;  %v470_v12 = vmul.f32 %v366_v17, %v366_v17  ;;  %v506_v14 = vsel %vm391_vm0, %v468_v58, 0.0  ;;  %v425_v16 = vsel %vm391_vm0, %v4875_v6, 0.0  ;;  %v4929_v58 = vld [vmem:[%s4754_s12 + $0xc0] sm:$0xff]  ;;  %s4479_s30 = smov [#allocation13]  }
  0xd1   : > { %v404_v29 = vadd.f32 %v403_v22, %v402_v23  ;;  %v471_v23 = vmul.f32 %v4813_v19, %v4813_v19  ;;  %v427_v17 = vsel %vm391_vm0, %v4881_v18, 0.0  ;;  %v474_v41 = vmul.f32 %v4845_v42, %v4845_v42  ;;  %p4387_p10 = pnand %p4386_p3, %p7377_p7  ;;  %s4389_s19 = sshll.u32 %s4479_s30, 4  ;;  %s4390_s19 = int_to_ptr.vmem [resolvable:$false] %s4389_s19 }
  0xd2   : > { %v501_v62 = vadd.f32 %v500_v53, %v499_v56  ;;  %v476_v56 = vmul.f32 %v4861_v54, %v4861_v54  ;;  %vm648_vm3 = vcmask 261312   ;;  %vm1089_vm4 = vcmask 1040384   ;;  %p4392_p5 = scmp.lt.s32.totalorder %s6943_s11, %s4390_s19 }
  0xd3   : > { %v406_v30 = vadd.f32 %v405_v24, %v404_v29  ;;  %v508_v24 = vsel %vm391_vm0, %v469_v4, 0.0  ;;  %v510_v29 = vsel %vm391_vm0, %v470_v12, 0.0  ;;  %v512_v36 = vsel %vm391_vm0, %v471_v23, 0.0  ;;  %p4388_p13 = pneg %p4387_p10 }
  0xd4   : > { %v503_v9 = vadd.f32 %v502_v59, %v501_v62  ;;  %v478_v12 = vmul.f32 %v4875_v6, %v4875_v6  ;;  %vm1248_vm5 = vcmask 1046528   ;;  %vm1326_vm6 = vcmask 1045504  }
  0xd5   : > { %v408_v35 = vadd.f32 %v407_v25, %v406_v30  ;;  %v4889_v25 = vld [vmem:[%s4754_s12 + $0x98] sm:$0xff]  ;;  %v4897_v30 = vld [vmem:[%s4754_s12 + $0xa0] sm:$0xff]  ;;  %vm2074_vm7 = vcmask 523264   ;;  %vm2106_vm8 = vcmask 785408   ;;  %vm2971_vm9 = vcmask 519168  }
  0xd6   : > { %v505_v22 = vadd.f32 %v504_v5, %v503_v9  ;;  %v429_v33 = vsel %vm391_vm0, %v4889_v25, 0.0  ;;  %v431_v40 = vsel %vm391_vm0, %v4897_v30, 0.0  ;;  %v4937_v5 = vld [vmem:[%s4754_s12 + $0xc8] sm:$0xff] }
  0xd7   : > { %v410_v37 = vadd.f32 %v409_v26, %v408_v35  ;;  %v473_v35 = vmul.f32 %v4835_v34, %v4835_v34  ;;  %v441_v23 = vsel %vm391_vm0, %v4937_v5, 0.0 }
  0xd9   : > { %v412_v43 = vadd.f32 %v411_v27, %v410_v37  ;;  %v507_v27 = vadd.f32 %v506_v14, %v505_v22  ;;  %v4905_v37 = vld [vmem:[%s4754_s12 + $0xa8] sm:$0xff]  ;;  %v516_v50 = vsel %vm391_vm0, %v473_v35, 0.0  ;;  %v522_v14 = vsel %vm391_vm0, %v476_v56, 0.0 }
  0xda   : > { %v433_v47 = vsel %vm391_vm0, %v4905_v37, 0.0  ;;  %v483_v56 = vmul.f32 %v4913_v44, %v4913_v44 }
  0xdb   : > { %v414_v49 = vadd.f32 %v413_v28, %v412_v43  ;;  %v472_v28 = vmul.f32 %v4816_v20, %v4816_v20  ;;  %v509_v32 = vadd.f32 %v508_v24, %v507_v27  ;;  %v479_v24 = vmul.f32 %v4881_v18, %v4881_v18  ;;  %v4953_v27 = vld [vmem:[%s4754_s12 + $0xd8] sm:$0xff] }
  0xdd   : > { %v416_v55 = vadd.f32 %v415_v45, %v414_v49  ;;  %v511_v39 = vadd.f32 %v510_v29, %v509_v32  ;;  %v514_v43 = vsel %vm391_vm0, %v472_v28, 0.0  ;;  %v475_v49 = vmul.f32 %v4853_v48, %v4853_v48 }
  0xde   : > { %v526_v32 = vsel %vm391_vm0, %v478_v12, 0.0 }
  0xdf   : > { %v418_v61 = vadd.f32 %v417_v51, %v416_v55  ;;  %v513_v46 = vadd.f32 %v512_v36, %v511_v39  ;;  %v4921_v51 = vld [vmem:[%s4754_s12 + $0xb8] sm:$0xff]  ;;  %v435_v55 = vsel %vm391_vm0, %v4913_v44, 0.0  ;;  %v520_v4 = vsel %vm391_vm0, %v475_v49, 0.0 }
  0xe0   : > { %v437_v62 = vsel %vm391_vm0, %v4921_v51, 0.0  ;;  %v481_v39 = vmul.f32 %v4897_v30, %v4897_v30 }
  0xe1   : > { %v420_v8 = vadd.f32 %v419_v57, %v418_v61  ;;  %v515_v53 = vadd.f32 %v514_v43, %v513_v46  ;;  %v518_v57 = vsel %vm391_vm0, %v474_v41, 0.0  ;;  %v4969_v41 = vld [vmem:[%s4754_s12 + $0xe8] sm:$0xff] }
  0xe3   : > { %v422_v21 = vadd.f32 %v421_v63, %v420_v8  ;;  %v517_v61 = vadd.f32 %v516_v50, %v515_v53  ;;  %v477_v63 = vmul.f32 %v4869_v60, %v4869_v60  ;;  %v4977_v50 = vld [vmem:[%s4754_s12 + $0xf0] sm:$0xff] }
  0xe5   : > { %v424_v26 = vadd.f32 %v423_v11, %v422_v21  ;;  %v519_v9 = vadd.f32 %v518_v57, %v517_v61  ;;  %v439_v11 = vsel %vm391_vm0, %v4929_v58, 0.0  ;;  %v4945_v21 = vld [vmem:[%s4754_s12 + $0xd0] sm:$0xff]  ;;  %v532_v57 = vsel %vm391_vm0, %v481_v39, 0.0 }
  0xe6   : > { %v443_v29 = vsel %vm391_vm0, %v4945_v21, 0.0 }
  0xe7   : > { %v426_v31 = vadd.f32 %v425_v16, %v424_v26  ;;  %v521_v16 = vadd.f32 %v520_v4, %v519_v9  ;;  %v524_v26 = vsel %vm391_vm0, %v477_v63, 0.0  ;;  %v451_v63 = vsel %vm391_vm0, %v4977_v50, 0.0 }
  0xe8   : > { %v484_v4 = vmul.f32 %v4921_v51, %v4921_v51 }
  0xe9   : > { %v428_v38 = vadd.f32 %v427_v17, %v426_v31  ;;  %v523_v28 = vadd.f32 %v522_v14, %v521_v16  ;;  %v480_v31 = vmul.f32 %v4889_v25, %v4889_v25  ;;  %v485_v14 = vmul.f32 %v4929_v58, %v4929_v58 }
  0xeb   : > { %v430_v45 = vadd.f32 %v429_v33, %v428_v38  ;;  %v4961_v33 = vld [vmem:[%s4754_s12 + $0xe0] sm:$0xff]  ;;  %v525_v36 = vadd.f32 %v524_v26, %v523_v28  ;;  %v445_v38 = vsel %vm391_vm0, %v4953_v27, 0.0  ;;  %v530_v49 = vsel %vm391_vm0, %v480_v31, 0.0 }
  0xec   : > { %v447_v46 = vsel %vm391_vm0, %v4961_v33, 0.0  ;;  %v538_v26 = vsel %vm391_vm0, %v484_v4, 0.0  ;;  %v540_v31 = vsel %vm391_vm0, %v485_v14, 0.0 }
  0xed   : > { %v432_v52 = vadd.f32 %v431_v40, %v430_v45  ;;  %v528_v40 = vsel %vm391_vm0, %v479_v24, 0.0  ;;  %v527_v45 = vadd.f32 %v526_v32, %v525_v36  ;;  %v486_v24 = vmul.f32 %v4937_v5, %v4937_v5 }
  0xee   : > { %v488_v36 = vmul.f32 %v4953_v27, %v4953_v27 }
  0xef   : > { %v434_v59 = vadd.f32 %v433_v47, %v432_v52  ;;  %v482_v47 = vmul.f32 %v4905_v37, %v4905_v37  ;;  %v529_v53 = vadd.f32 %v528_v40, %v527_v45 }
  0xf1   : > { %v436_v8 = vadd.f32 %v435_v55, %v434_v59  ;;  %v449_v55 = vsel %vm391_vm0, %v4969_v41, 0.0  ;;  %v388_v59 = vld [vmem:[%s4754_s12 + $0xf8] sm:$0xff] }
  0xf2   : > { %v453_v12 = vsel %vm391_vm0, %v388_v59, 0.0 }
  0xf3   : > { %v438_v22 = vadd.f32 %v437_v62, %v436_v8  ;;  %v531_v62 = vadd.f32 %v530_v49, %v529_v53  ;;  %v534_v8 = vsel %vm391_vm0, %v482_v47, 0.0  ;;  %v490_v49 = vmul.f32 %v4969_v41, %v4969_v41 }
  0xf5   : > { %v440_v17 = vadd.f32 %v439_v11, %v438_v22  ;;  %v533_v11 = vadd.f32 %v532_v57, %v531_v62  ;;  %v536_v22 = vsel %vm391_vm0, %v483_v56, 0.0  ;;  %v491_v56 = vmul.f32 %v4977_v50, %v4977_v50 }
  0xf6   : > { %v550_v4 = vsel %vm391_vm0, %v490_v49, 0.0 }
  0xf7   : > { %v442_v35 = vadd.f32 %v441_v23, %v440_v17  ;;  %v535_v23 = vadd.f32 %v534_v8, %v533_v11  ;;  %v552_v11 = vsel %vm391_vm0, %v491_v56, 0.0 }
  0xf9   : > { %v444_v43 = vadd.f32 %v443_v29, %v442_v35  ;;  %v537_v28 = vadd.f32 %v536_v22, %v535_v23  ;;  %v487_v29 = vmul.f32 %v4945_v21, %v4945_v21 }
  0xfb   : > { %v446_v52 = vadd.f32 %v445_v38, %v444_v43  ;;  %v539_v35 = vadd.f32 %v538_v26, %v537_v28  ;;  %v542_v38 = vsel %vm391_vm0, %v486_v24, 0.0  ;;  %v489_v43 = vmul.f32 %v4961_v33, %v4961_v33 }
  0xfc   : > { %v544_v45 = vsel %vm391_vm0, %v487_v29, 0.0 }
  0xfd   : > { %v448_v61 = vadd.f32 %v447_v46, %v446_v52  ;;  %v541_v40 = vadd.f32 %v540_v31, %v539_v35  ;;  %v546_v52 = vsel %vm391_vm0, %v488_v36, 0.0  ;;  %v548_v57 = vsel %vm391_vm0, %v489_v43, 0.0 }
  0xff   : > { %v450_v9 = vadd.f32 %v449_v55, %v448_v61  ;;  %v543_v47 = vadd.f32 %v542_v38, %v541_v40 }
 0x101   : > { %v452_v16 = vadd.f32 %v451_v63, %v450_v9  ;;  %v545_v55 = vadd.f32 %v544_v45, %v543_v47  ;;  %v492_v63 = vmul.f32 %v388_v59, %v388_v59 }
 0x103   : > { %v454_v17 = vadd.f32 %v453_v12, %v452_v16  ;;  %v547_v62 = vadd.f32 %v546_v52, %v545_v55  ;;  %v554_v14 = vsel %vm391_vm0, %v492_v63, 0.0 }
 0x105   : > { %v455_v32 = vrot.slane %v454_v17, 4  ;;  %v549_v9 = vadd.f32 %v548_v57, %v547_v62 }
 0x107   : > { %v456_v39 = vadd.f32 %v455_v32, %v454_v17  ;;  %v551_v12 = vadd.f32 %v550_v4, %v549_v9  ;;  %v623_v32 = vlaneseq }
 0x109   : > { %v457_v46 = vrot.slane %v456_v39, 2  ;;  %v553_v22 = vadd.f32 %v552_v11, %v551_v12  ;;  %v624_v38 = vand.u32 127, %v623_v32  ;;  %v626_v45 = vshrl.u32 %v623_v32, 7 }
 0x10b   : > { %v458_v53 = vadd.f32 %v457_v46, %v456_v39  ;;  %v555_v16 = vadd.f32 %v554_v14, %v553_v22  ;;  %v629_v43 = vadd.s32 4294967288, %v624_v38  ;;  %v627_v9 = vsub.s32 %v624_v38, %v626_v45 }
 0x10c   : > { %v643_v11 = vadd.s32 4294967272, %v624_v38 }
 0x10d   : > { %v459_v61 = vrot.slane %v458_v53, 1  ;;  %v556_v23 = vrot.slane %v555_v16, 4  ;;  %v632_v62 = vsub.s32 %v629_v43, %v626_v45 }
 0x10e   : > { %v646_v32 = vsub.s32 %v643_v11, %v626_v45 }
 0x10f   : > { %v460_v8 = vadd.f32 %v459_v61, %v458_v53  ;;  %v557_v24 = vadd.f32 %v556_v23, %v555_v16  ;;  %v636_v61 = vadd.s32 4294967280, %v624_v38 }
 0x111   : > { %572 = vbcast.lane.b32.xlu1 %v460_v8, 272  ;;  %564 = vbcast.lane.b32.xlu0 %v460_v8, 256  ;;  %v558_v26 = vrot.slane %v557_v24, 2 }
 0x113   : > { %v559_v17 = vadd.f32 %v558_v26, %v557_v24 }
 0x115   : > { %576 = vbcast.lane.b32.xlu1 %v460_v8, 280  ;;  %568 = vbcast.lane.b32.xlu0 %v460_v8, 264  ;;  %v560_v59 = vrot.slane %v559_v17, 1 }
 0x117   : > { %v561_v28 = vadd.f32 %v560_v59, %v559_v17  ;;  %v639_v17 = vsub.s32 %v636_v61, %v626_v45 }
 0x119   : > { %584 = vbcast.lane.b32.xlu1 %v561_v28, 264  ;;  %580 = vbcast.lane.b32.xlu0 %v561_v28, 256 }
 0x11d   : > { %592 = vbcast.lane.b32.xlu1 %v561_v28, 280  ;;  %588 = vbcast.lane.b32.xlu0 %v561_v28, 272 }
 0x183   : > { %v573_v29 = vpop.permute.xlu1 %572  ;;  %v565_v31 = vpop.permute.xlu0 %564 }
 0x184   : > { %v595_v39 = vmul.f32 0.00390625, %v565_v31  ;;  %v597_v46 = vmul.f32 0.00390625, %v573_v29 }
 0x186   : > { %v603_v53 = vmul.f32 %v595_v39, %v595_v39  ;;  %v605_v8 = vmul.f32 %v597_v46, %v597_v46  ;;  %v628_v31 = vrot.slane %v595_v39, %v627_v9  ;;  %v640_v43 = vrot.slane %v597_v46, %v639_v17 }
 0x187   : > { %v577_v35 = vpop.permute.xlu1 %576  ;;  %v569_v36 = vpop.permute.xlu0 %568 }
 0x188   : > { %v596_v40 = vmul.f32 0.00390625, %v569_v36  ;;  %v598_v47 = vmul.f32 0.00390625, %v577_v35 }
 0x18a   : > { %v604_v55 = vmul.f32 %v596_v40, %v596_v40  ;;  %v606_v12 = vmul.f32 %v598_v47, %v598_v47  ;;  %v633_v59 = vrot.slane %v596_v40, %v632_v62 }
 0x18b   : > { %v585_v49 = vpop.permute.xlu1 %584  ;;  %v581_v52 = vpop.permute.xlu0 %580 }
 0x18c   : > { %v600_v56 = vmul.f32 0.00390625, %v585_v49  ;;  %v599_v57 = vmul.f32 0.00390625, %v581_v52  ;;  %v635_v38 = vsel %vm634_vm1, %v633_v59, %v628_v31  ;;  %v647_v49 = vrot.slane %v598_v47, %v646_v32 }
 0x18d   : > { %v642_v52 = vsel %vm641_vm2, %v640_v43, %v635_v38 }
 0x18e   : > { %v608_v63 = vsub.f32 %v600_v56, %v604_v55  ;;  %v607_v4 = vsub.f32 %v599_v57, %v603_v53  ;;  %v5018_v40 = vsel %vm648_vm3, %v647_v49, %v642_v52  ;;  %v7002_v56 = vmov 0.0  }
 0x18f   : > { %v593_v14 = vpop.permute.xlu1 %592  ;;  %v589_v22 = vpop.permute.xlu0 %588  ;;  %v692_v39 = vsub.f32 %v4969_v41, %v5018_v40  ;;  %v689_v45 = vsub.f32 %v4945_v21, %v5018_v40  ;;  %v5025_v46 = vrot.slane %v7002_v56, 2  ;;  %v665_v61 = vsub.f32 %v4781_v2, %v5018_v40 }
 0x190   : > { %v612_v16 = vadd.f32 1e-06, %v608_v63  ;;  %v611_v23 = vadd.f32 1e-06, %v607_v4  ;;  %v602_v24 = vmul.f32 0.00390625, %v593_v14  ;;  %v601_v26 = vmul.f32 0.00390625, %v589_v22 }
 0x191   : > { %7143 = vst [vmem:[#allocation19_spill] sm:$0xff] %v5025_v46  ;;  %v666_v63 = vsub.f32 %v4784_v3, %v5018_v40  ;;  %v684_v11 = vsub.f32 %v4905_v37, %v5018_v40  ;;  %v663_v21 = vsub.f32 %v4775_v0, %v5018_v40  ;;  %v687_v2 = vsub.f32 %v4929_v58, %v5018_v40 }
 0x192   : > { %4074 = vrsqrt.f32 %v612_v16  ;;  %v610_v28 = vsub.f32 %v602_v24, %v606_v12  ;;  %v609_v29 = vsub.f32 %v601_v26, %v605_v8  ;;  %v683_v8 = vsub.f32 %v4897_v30, %v5018_v40 }
 0x193   : > { %4076 = vrsqrt.f32 %v611_v23  ;;  %v688_v3 = vsub.f32 %v4937_v5, %v5018_v40  ;;  %v690_v30 = vsub.f32 %v4953_v27, %v5018_v40  ;;  %v685_v37 = vsub.f32 %v4913_v44, %v5018_v40 }
 0x194   : > { %v614_v35 = vadd.f32 1e-06, %v610_v28  ;;  %v613_v36 = vadd.f32 1e-06, %v609_v29  ;;  %v686_v0 = vsub.f32 %v4921_v51, %v5018_v40  ;;  %v668_v58 = vsub.f32 %v4798_v10, %v5018_v40  ;;  %v5068_v10 = vld [vmem:[#allocation5] ss:$0 sm:$0xff] }
 0x195   : > { %v691_v5 = vsub.f32 %v4961_v33, %v5018_v40  ;;  %v669_v27 = vsub.f32 %v4803_v13, %v5018_v40  ;;  %v670_v44 = vsub.f32 %v4806_v15, %v5018_v40  ;;  %v693_v51 = vsub.f32 %v4977_v50, %v5018_v40 }
 0x196   : > { %4078 = vrsqrt.f32 %v614_v35  ;;  %v674_v24 = vsub.f32 %v4816_v20, %v5018_v40  ;;  %v675_v26 = vsub.f32 %v4835_v34, %v5018_v40 }
 0x197   : > { %4080 = vrsqrt.f32 %v613_v36 }
 0x19c   : > { %v4075_v53 = vpop.eup %4074 }
 0x19d   : > { %v4077_v55 = vpop.eup %4076  ;;  %v706_v47 = vrot.slane %v4075_v53, %v632_v62  ;;  %v664_v62 = vsub.f32 %v4778_v1, %v5018_v40  ;;  %v667_v1 = vsub.f32 %v4793_v7, %v5018_v40  ;;  %v673_v7 = vsub.f32 %v4813_v19, %v5018_v40 }
 0x19e   : > { %v702_v57 = vrot.slane %v4077_v55, %v627_v9 }
 0x1a0   : > { %v4079_v4 = vpop.eup %4078  ;;  %v707_v22 = vsel %vm634_vm1, %v706_v47, %v702_v57 }
 0x1a1   : > { %v4081_v9 = vpop.eup %4080  ;;  %v716_v12 = vrot.slane %v4079_v4, %v646_v32  ;;  %v5080_v32 = vld [vmem:[#allocation7] ss:$0 sm:$0xff] }
 0x1a2   : > { %v711_v14 = vrot.slane %v4081_v9, %v639_v17  ;;  %v676_v17 = vsub.f32 %v4845_v42, %v5018_v40 }
 0x1a4   : > { %v712_v16 = vsel %vm641_vm2, %v711_v14, %v707_v22 }
 0x1a5   : > { %v5066_v23 = vsel %vm648_vm3, %v716_v12, %v712_v16 }
 0x1a6   : > { %v751_v59 = vmul.f32 %v5066_v23, %v689_v45  ;;  %v727_v28 = vmul.f32 %v5066_v23, %v665_v61  ;;  %v728_v29 = vmul.f32 %v5066_v23, %v666_v63  ;;  %v745_v31 = vmul.f32 %v5066_v23, %v683_v8 }
 0x1a7   : > { %v746_v35 = vmul.f32 %v5066_v23, %v684_v11  ;;  %v725_v36 = vmul.f32 %v5066_v23, %v663_v21  ;;  %v726_v38 = vmul.f32 %v5066_v23, %v664_v62  ;;  %v749_v43 = vmul.f32 %v5066_v23, %v687_v2 }
 0x1a8   : > { %v789_v49 = vmul.f32 %v5068_v10, %v751_v59  ;;  %v765_v52 = vmul.f32 %v5068_v10, %v727_v28  ;;  %v766_v53 = vmul.f32 %v5068_v10, %v728_v29  ;;  %v783_v55 = vmul.f32 %v5068_v10, %v745_v31 }
 0x1a9   : > { %v784_v45 = vmul.f32 %v5068_v10, %v746_v35  ;;  %v763_v47 = vmul.f32 %v5068_v10, %v725_v36  ;;  %v764_v57 = vmul.f32 %v5068_v10, %v726_v38  ;;  %v750_v61 = vmul.f32 %v5066_v23, %v688_v3 }
 0x1aa   : > { %v5095_v63 = vadd.f32 %v5080_v32, %v789_v49  ;;  %v5098_v4 = vadd.f32 %v5080_v32, %v765_v52  ;;  %v5101_v8 = vadd.f32 %v5080_v32, %v766_v53  ;;  %v5104_v11 = vadd.f32 %v5080_v32, %v783_v55 }
 0x1ab   : > { %v5107_v21 = vadd.f32 %v5080_v32, %v784_v45  ;;  %v5110_v62 = vadd.f32 %v5080_v32, %v763_v47  ;;  %v5113_v9 = vadd.f32 %v5080_v32, %v764_v57  ;;  %v787_v12 = vmul.f32 %v5068_v10, %v749_v43 }
 0x1ac   : > { %v3195_v2 = vmul.f32 -1.442695, %v5095_v63  ;;  %v3171_v3 = vmul.f32 -1.442695, %v5098_v4  ;;  %v3172_v14 = vmul.f32 -1.442695, %v5101_v8  ;;  %v788_v22 = vmul.f32 %v5068_v10, %v750_v61 }
 0x1ad   : > { %v3189_v16 = vmul.f32 -1.442695, %v5104_v11  ;;  %v3190_v59 = vmul.f32 -1.442695, %v5107_v21  ;;  %v3169_v28 = vmul.f32 -1.442695, %v5110_v62  ;;  %v5124_v29 = vadd.f32 %v5080_v32, %v787_v12 }
 0x1ae   : > { %4082 = vpow2.f32 %v3195_v2  ;;  %v3170_v31 = vmul.f32 -1.442695, %v5113_v9  ;;  %v5128_v35 = vadd.f32 %v5080_v32, %v788_v22  ;;  %v752_v36 = vmul.f32 %v5066_v23, %v690_v30 }
 0x1af   : > { %4084 = vpow2.f32 %v3171_v3  ;;  %v3193_v38 = vmul.f32 -1.442695, %v5124_v29  ;;  %v747_v43 = vmul.f32 %v5066_v23, %v685_v37  ;;  %v748_v49 = vmul.f32 %v5066_v23, %v686_v0 }
 0x1b0   : > { %4086 = vpow2.f32 %v3172_v14  ;;  %v3194_v52 = vmul.f32 -1.442695, %v5128_v35  ;;  %v790_v53 = vmul.f32 %v5068_v10, %v752_v36  ;;  %v729_v55 = vmul.f32 %v5066_v23, %v667_v1 }
 0x1b1   : > { %4088 = vpow2.f32 %v3189_v16  ;;  %v785_v45 = vmul.f32 %v5068_v10, %v747_v43  ;;  %v786_v47 = vmul.f32 %v5068_v10, %v748_v49  ;;  %v730_v30 = vmul.f32 %v5066_v23, %v668_v58 }
 0x1b2   : > { %4090 = vpow2.f32 %v3190_v59  ;;  %v5141_v57 = vadd.f32 %v5080_v32, %v790_v53  ;;  %v767_v37 = vmul.f32 %v5068_v10, %v729_v55  ;;  %v753_v0 = vmul.f32 %v5066_v23, %v691_v5 }
 0x1b3   : > { %4092 = vpow2.f32 %v3169_v28  ;;  %v5149_v1 = vadd.f32 %v5080_v32, %v785_v45  ;;  %v5152_v61 = vadd.f32 %v5080_v32, %v786_v47  ;;  %v768_v58 = vmul.f32 %v5068_v10, %v730_v30 }
 0x1b4   : > { %4094 = vpow2.f32 %v3170_v31  ;;  %v3196_v12 = vmul.f32 -1.442695, %v5141_v57  ;;  %v5157_v2 = vadd.f32 %v5080_v32, %v767_v37  ;;  %v754_v33 = vmul.f32 %v5066_v23, %v692_v39 }
 0x1b5   : > { %4096 = vpow2.f32 %v3193_v38  ;;  %v3191_v5 = vmul.f32 -1.442695, %v5149_v1  ;;  %v3192_v3 = vmul.f32 -1.442695, %v5152_v61  ;;  %v677_v14 = vsub.f32 %v4853_v48, %v5018_v40 }
 0x1b6   : > { %4098 = vpow2.f32 %v3194_v52  ;;  %v3173_v22 = vmul.f32 -1.442695, %v5157_v2  ;;  %v791_v16 = vmul.f32 %v5068_v10, %v753_v0  ;;  %v678_v59 = vsub.f32 %v4861_v54, %v5018_v40 }
 0x1b7   : > { %4100 = vpow2.f32 %v3196_v12  ;;  %v5172_v41 = vadd.f32 %v5080_v32, %v768_v58  ;;  %v792_v39 = vmul.f32 %v5068_v10, %v754_v33  ;;  %v731_v28 = vmul.f32 %v5066_v23, %v669_v27 }
 0x1b8   : > { %v4083_v31 = vpop.eup %4082  ;;  %4102 = vpow2.f32 %v3191_v5  ;;  %v732_v36 = vmul.f32 %v5066_v23, %v670_v44  ;;  %v5188_v13 = vadd.f32 %v5080_v32, %v791_v16  ;;  %v755_v27 = vmul.f32 %v5066_v23, %v693_v51 }
 0x1b9   : > { %v4085_v49 = vpop.eup %4084  ;;  %v955_v52 = vadd.f32 1.0, %v4083_v31  ;;  %4104 = vpow2.f32 %v3192_v3  ;;  %v769_v44 = vmul.f32 %v5068_v10, %v731_v28  ;;  %v3174_v30 = vmul.f32 -1.442695, %v5172_v41 }
 0x1ba   : > { %v4087_v15 = vpop.eup %4086  ;;  %v931_v53 = vadd.f32 1.0, %v4085_v49  ;;  %4106 = vpow2.f32 %v3173_v22  ;;  %v5199_v37 = vadd.f32 %v5080_v32, %v792_v39  ;;  %v770_v51 = vmul.f32 %v5068_v10, %v732_v36 }
 0x1bb   : > { %v4089_v45 = vpop.eup %4088  ;;  %4108 = vrcp.f32 %v955_v52  ;;  %v932_v47 = vadd.f32 1.0, %v4087_v15  ;;  %v735_v58 = vmul.f32 %v5066_v23, %v673_v7  ;;  %v5207_v5 = vmul.f32 -1.442695, %v5188_v13 }
 0x1bc   : > { %v4091_v0 = vpop.eup %4090  ;;  %4110 = vrcp.f32 %v931_v53  ;;  %v949_v50 = vadd.f32 1.0, %v4089_v45  ;;  %v793_v3 = vmul.f32 %v5068_v10, %v755_v27  ;;  %v5211_v39 = vadd.f32 %v5080_v32, %v769_v44 }
 0x1bd   : > { %v4093_v12 = vpop.eup %4092  ;;  %4112 = vrcp.f32 %v932_v47  ;;  %v950_v33 = vadd.f32 1.0, %v4091_v0  ;;  %v736_v19 = vmul.f32 %v5066_v23, %v674_v24  ;;  %v773_v31 = vmul.f32 %v5068_v10, %v735_v58 }
 0x1be   : > { %v4095_v22 = vpop.eup %4094  ;;  %4114 = vrcp.f32 %v949_v50  ;;  %v929_v16 = vadd.f32 1.0, %v4093_v12  ;;  %v737_v36 = vmul.f32 %v5066_v23, %v675_v26  ;;  %v5223_v27 = vadd.f32 %v5080_v32, %v770_v51 }
 0x1bf   : > { %v4097_v7 = vpop.eup %4096  ;;  %4116 = vrcp.f32 %v950_v33  ;;  %v930_v28 = vadd.f32 1.0, %v4095_v22  ;;  %v774_v20 = vmul.f32 %v5068_v10, %v736_v19  ;;  %v5227_v53 = vadd.f32 %v5080_v32, %v793_v3 }
 0x1c0   : > { %v4099_v49 = vpop.eup %4098  ;;  %4118 = vrcp.f32 %v929_v16  ;;  %v953_v52 = vadd.f32 1.0, %v4097_v7  ;;  %v738_v34 = vmul.f32 %v5066_v23, %v676_v17  ;;  %v5234_v45 = vadd.f32 %v5080_v32, %v773_v31 }
 0x1c1   : > { %v4101_v24 = vpop.eup %4100  ;;  %4120 = vrcp.f32 %v930_v28  ;;  %v954_v15 = vadd.f32 1.0, %v4099_v49  ;;  %v775_v47 = vmul.f32 %v5068_v10, %v737_v36  ;;  %v5238_v51 = vadd.f32 %v5080_v32, %v774_v20 }
 0x1c2   : > { %v4103_v26 = vpop.eup %4102  ;;  %4122 = vrcp.f32 %v953_v52  ;;  %v956_v44 = vadd.f32 1.0, %v4101_v24  ;;  %v776_v58 = vmul.f32 %v5068_v10, %v738_v34  ;;  %v3198_v17 = vmul.f32 -1.442695, %v5199_v37 }
 0x1c3   : > { %v4105_v0 = vpop.eup %4104  ;;  %4124 = vrcp.f32 %v954_v15  ;;  %v951_v50 = vadd.f32 1.0, %v4103_v26  ;;  %v5243_v33 = vmul.f32 -1.442695, %v5211_v39  ;;  %v5246_v16 = vmul.f32 -1.442695, %v5223_v27 }
 0x1c4   : > { %v4107_v12 = vpop.eup %4106  ;;  %4126 = vrcp.f32 %v956_v44  ;;  %v952_v42 = vadd.f32 1.0, %v4105_v0  ;;  %v5249_v19 = vadd.f32 %v5080_v32, %v775_v47  ;;  %v5255_v31 = vmul.f32 -1.442695, %v5227_v53 }
 0x1c5   : > { %v4109_v3 = vpop.eup %4108  ;;  %4128 = vrcp.f32 %v951_v50  ;;  %v933_v22 = vadd.f32 1.0, %v4107_v12  ;;  %v5258_v36 = vmul.f32 -1.442695, %v5234_v45  ;;  %v5262_v20 = vmul.f32 -1.442695, %v5238_v51 }
 0x1c6   : > { %v4111_v7 = vpop.eup %4110  ;;  %v5252_v28 = vmul.f32 %v4109_v3, %v5095_v63  ;;  %4130 = vrcp.f32 %v952_v42  ;;  %v5265_v24 = vadd.f32 %v5080_v32, %v776_v58  ;;  %v5278_v47 = vmul.f32 -1.442695, %v5249_v19 }
 0x1c7   : > { %v4113_v49 = vpop.eup %4112  ;;  %v1027_v52 = vmul.f32 %v4111_v7, %v5098_v4  ;;  %4132 = vpow2.f32 %v3174_v30  ;;  %v739_v4 = vmul.f32 %v5066_v23, %v677_v14 }
 0x1c8   : > { %v4115_v63 = vpop.eup %4114  ;;  %v7004_v15 = vrot.slane %v5252_v28, 7  ;;  %v1028_v34 = vmul.f32 %v4113_v49, %v5101_v8  ;;  %4134 = vrcp.f32 %v933_v22 }
 0x1c9   : > { %v4117_v26 = vpop.eup %4116  ;;  %v1093_v30 = vrot.slane %v1027_v52, 7  ;;  %v5274_v44 = vmul.f32 %v4115_v63, %v5104_v11  ;;  %4136 = vpow2.f32 %v5207_v5  ;;  %v5292_v11 = vmul.f32 %v5066_v23, %v678_v59 }
 0x1ca   : > { %v4119_v0 = vpop.eup %4118  ;;  %v5283_v8 = vsel %vm1089_vm4, 0.0, %v7004_v15  ;;  %v1094_v50 = vrot.slane %v1028_v34, 7  ;;  %v5286_v48 = vmul.f32 %v4117_v26, %v5107_v21  ;;  %4138 = vpow2.f32 %v3198_v17 }
 0x1cb   : > { %7144 = vst [vmem:[#allocation20_spill] sm:$0xff] %v5283_v8  ;;  %v4121_v14 = vpop.eup %4120  ;;  %v3596_v5 = vpack.i.bf16 %v5283_v8, %v5025_v46  ;;  %v5297_v58 = vsel %vm1089_vm4, 0.0, %v1093_v30  ;;  %v1025_v12 = vmul.f32 %v4119_v0, %v5110_v62  ;;  %v5308_v59 = vmul.f32 %v5068_v10, %v739_v4 }
 0x1cc   : > { %7145 = vst [vmem:[#allocation21_spill] sm:$0xff] %v5286_v48  ;;  %7146 = vst [vmem:[#allocation22_spill] sm:$0xff] %v5297_v58  ;;  %v4123_v42 = vpop.eup %4122  ;;  %v5301_v21 = vsel %vm1089_vm4, %v1093_v30, %v1094_v50  ;;  %v1026_v3 = vmul.f32 %v4121_v14, %v5113_v9  ;;  %v5305_v54 = vsel %vm1089_vm4, %v1094_v50, 0.0  ;;  %v7007_v17 = vrot.slane %v5274_v44, 7 }
 0x1cd   : > { %7147 = vst [vmem:[#allocation23_spill] sm:$0xff] %v5301_v21  ;;  %v4125_v22 = vpop.eup %4124  ;;  %3597 = vrot.lane.b32.xlu1 %v3596_v5, %s4476_s27  ;;  %v5313_v62 = vpack.i.bf16 %v5301_v21, %v5297_v58  ;;  %v1090_v7 = vrot.slane %v1025_v12, 7  ;;  %v1049_v49 = vmul.f32 %v4123_v42, %v5124_v29  ;;  %v7006_v52 = vrot.slane %v5286_v48, 7 }
 0x1ce   : > { %v4127_v9 = vpop.eup %4126  ;;  %v1091_v63 = vrot.slane %v1026_v3, 7  ;;  %v1050_v34 = vmul.f32 %v4125_v22, %v5128_v35  ;;  %v1256_v4 = vrot.slane %v5297_v58, 1  ;;  %v1257_v50 = vrot.slane %v5301_v21, 1 }
 0x1cf   : > { %v4129_v26 = vpop.eup %4128  ;;  %3592 = vrot.lane.b32.xlu0 %v5313_v62, %s4476_s27  ;;  %v5323_v30 = vsel %vm1089_vm4, 0.0, %v1090_v7  ;;  %v1126_v0 = vrot.slane %v1049_v49, 7  ;;  %v1259_v29 = vrot.slane %v5305_v54, 1  ;;  %v1052_v38 = vmul.f32 %v4127_v9, %v5141_v57 }
 0x1d0   : > { %7148 = vst [vmem:[#allocation24_spill] sm:$0xff] %v5323_v30  ;;  %v4131_v14 = vpop.eup %4130  ;;  %v5328_v5 = vsel %vm1089_vm4, %v1090_v7, %v1091_v63  ;;  %v1127_v12 = vrot.slane %v1050_v34, 7  ;;  %v5331_v35 = vsel %vm1089_vm4, %v1091_v63, 0.0  ;;  %v1329_v42 = vrot.slane %v5323_v30, 2 }
 0x1d1   : > { %7149 = vst [vmem:[#allocation25_spill] sm:$0xff] %v5328_v5  ;;  %v4133_v3 = vpop.eup %4132  ;;  %v3601_v22 = vpack.i.bf16 %v5328_v5, %v5323_v30  ;;  %v5337_v49 = vsel %vm1089_vm4, 0.0, %v1126_v0  ;;  %v1330_v56 = vrot.slane %v5328_v5, 2  ;;  %v1332_v55 = vrot.slane %v5331_v35, 2 }
 0x1d2   : > { %7150 = vst [vmem:[#allocation26_spill] sm:$0xff] %v5337_v49  ;;  %v4135_v43 = vpop.eup %4134  ;;  %v5346_v7 = vsel %vm1089_vm4, %v7007_v17, %v7006_v52  ;;  %v5349_v63 = vsel %vm1089_vm4, %v1126_v0, %v1127_v12  ;;  %v5352_v34 = vsel %vm1248_vm5, %v1256_v4, %v1257_v50  ;;  %v5365_v0 = vsel %vm1248_vm5, %v1257_v50, %v1259_v29 }
 0x1d3   : > { %7151 = vst [vmem:[#allocation27_spill] sm:$0xff] %v5346_v7  ;;  %7152 = vst [vmem:[#allocation28_spill] sm:$0xff] %v5349_v63  ;;  %v4137_v15 = vpop.eup %4136  ;;  %1707 = vrot.lane.b32.xlu0 %v5346_v7, %s4477_s7  ;;  %3602 = vrot.lane.b32.xlu1 %v3601_v22, %s4477_s7  ;;  %v5359_v46 = vsel %vm1326_vm6, %v1329_v42, %v1330_v56  ;;  %v5362_v52 = vsel %vm1326_vm6, %v1330_v56, %v1332_v55  ;;  %v5368_v4 = vsel %vm1089_vm4, %v1127_v12, 0.0 }
 0x1d4   : > { %7153 = vst [vmem:[#allocation29_spill] sm:$0xff] %v5352_v34  ;;  %7154 = vst [vmem:[#allocation30_spill] sm:$0xff] %v5365_v0  ;;  %v5372_v57 = vpack.i.bf16 %v5349_v63, %v5337_v49  ;;  %v3681_v9 = vpack.i.bf16 %v5362_v52, %v5359_v46  ;;  %v1130_v22 = vrot.slane %v1052_v38, 7  ;;  %v1047_v42 = vmul.f32 %v4129_v26, %v5149_v1  ;;  %v4139_v17 = vpop.eup %4138 }
 0x1d5   : > { %v5378_v56 = vmul.f32 %v4131_v14, %v5152_v61  ;;  %v7014_v55 = vrot.slane %v5349_v63, 2  ;;  %v1392_v50 = vrot.slane %v5368_v4, 2  ;;  %v934_v29 = vadd.f32 1.0, %v4133_v3 }
 0x1d6   : > { %v1123_v12 = vrot.slane %v1047_v42, 7  ;;  %v5383_v48 = vmul.f32 %v4135_v43, %v5157_v2  ;;  %v957_v7 = vadd.f32 1.0, %v4137_v15  ;;  %v3691_v1 = vpack.i.bf16 %v5365_v0, %v5352_v34 }
 0x1d7   : > { %3607 = vrot.lane.b32.xlu1 %v5372_v57, %s4477_s7  ;;  %3682 = vrot.lane.b32.xlu0 %v3681_v9, %s4478_s17  ;;  %v7155_v61 = vrot.slane %v5252_v28, 7  ;;  %v7012_v26 = vrot.slane %v5378_v56, 7  ;;  %4140 = vrcp.f32 %v934_v29  ;;  %v5402_v43 = vsel %vm1326_vm6, %v7014_v55, %v1392_v50 }
 0x1d8   : > { %v5397_v2 = vsel %vm1089_vm4, 0.0, %v1123_v12  ;;  %7158 = vst [vmem:[#allocation33_spill] sm:$0xff] %v5402_v43  ;;  %v958_v15 = vadd.f32 1.0, %v4139_v17  ;;  %4142 = vrcp.f32 %v957_v7  ;;  %v5412_v9 = vsel %vm1089_vm4, %v1130_v22, 0.0 }
 0x1d9   : > { %v5393_v38 = vsel %vm1089_vm4, %v7155_v61, %v1130_v22  ;;  %7157 = vst [vmem:[#allocation32_spill] sm:$0xff] %v5397_v2  ;;  %v5407_v28 = vsel %vm1089_vm4, %v1123_v12, %v7012_v26  ;;  %v1306_v14 = vrot.slane %v5397_v2, 1  ;;  %v1384_v3 = vrot.slane %v5397_v2, 2 }
 0x1da   : > { %7156 = vst [vmem:[#allocation31_spill] sm:$0xff] %v5393_v38  ;;  %7159 = vst [vmem:[#allocation34_spill] sm:$0xff] %v5407_v28  ;;  %v7011_v42 = vrot.slane %v5407_v28, 1  ;;  %v1096_v29 = vrot.slane %v5383_v48, 7  ;;  %v7013_v50 = vrot.slane %v5407_v28, 2  ;;  %4144 = vrcp.f32 %v958_v15 }
 0x1db   : > { %3612 = vrot.lane.b32.xlu1 %v5313_v62, %s4477_s7  ;;  %3692 = vrot.lane.b32.xlu0 %v3691_v1, %s4477_s7  ;;  %v1316_v17 = vrot.slane %v5283_v8, 1  ;;  %v1317_v7 = vrot.slane %v5393_v38, 1  ;;  %v1319_v12 = vrot.slane %v5412_v9, 1  ;;  %4146 = vpow2.f32 %v5243_v33 }
 0x1dc   : > { %v3616_v22 = vpack.i.bf16 %v5393_v38, %v5283_v8  ;;  %v5429_v48 = vsel %vm1248_vm5, %v1306_v14, %v7011_v42  ;;  %4148 = vpow2.f32 %v5246_v16  ;;  %v3182_v62 = vmul.f32 -1.442695, %v5265_v24 }
 0x1dd   : > { %7160 = vst [vmem:[#allocation35_spill] sm:$0xff] %v5429_v48  ;;  %v3696_v1 = vpack.i.bf16 %v5429_v48, %v5402_v43  ;;  %v5438_v61 = vsel %vm1326_vm6, %v1384_v3, %v7013_v50  ;;  %v5441_v33 = vsel %vm1248_vm5, %v1316_v17, %v1317_v7  ;;  %v5444_v15 = vsel %vm1248_vm5, %v1317_v7, %v1319_v12 }
 0x1de   : > { %7161 = vst [vmem:[#allocation36_spill] sm:$0xff] %v5438_v61  ;;  %7162 = vst [vmem:[#allocation37_spill] sm:$0xff] %v5441_v33  ;;  %v5447_v14 = vsel %vm1089_vm4, 0.0, %v1096_v29  ;;  %v1251_v16 = vrot.slane %v5323_v30, 1  ;;  %v778_v42 = vmul.f32 %v5068_v10, %v5292_v11  ;;  %v5454_v26 = vadd.f32 %v5080_v32, %v5308_v59 }
 0x1df   : > { %7163 = vst [vmem:[#allocation38_spill] sm:$0xff] %v5444_v15  ;;  %7164 = vst [vmem:[#allocation39_spill] sm:$0xff] %v5447_v14  ;;  %3617 = vrot.lane.b32.xlu1 %v3616_v22, %s4477_s7  ;;  %3697 = vrot.lane.b32.xlu0 %v3696_v1, %s4478_s17  ;;  %v7016_v3 = vrot.slane %v5328_v5, 1  ;;  %v1337_v7 = vrot.slane %v5305_v54, 2  ;;  %4150 = vpow2.f32 %v5255_v31  ;;  %v3706_v12 = vpack.i.bf16 %v5438_v61, %v5393_v38 }
 0x1e0   : > { %v3716_v11 = vpack.i.bf16 %v5444_v15, %v5441_v33  ;;  %4152 = vpow2.f32 %v5258_v36  ;;  %v1261_v1 = vrot.slane %v5447_v14, 1  ;;  %v1311_v54 = vrot.slane %v5337_v49, 1 }
 0x1e1   : > { %v4141_v22 = vpop.eup %4140  ;;  %4154 = vpow2.f32 %v5262_v20  ;;  %v5476_v17 = vadd.f32 %v5080_v32, %v778_v42  ;;  %v3183_v36 = vmul.f32 -1.442695, %v5454_v26  ;;  %v5484_v59 = vsel %vm1248_vm5, %v1251_v16, %v7016_v3 }
 0x1e2   : > { %v4143_v50 = vpop.eup %4142  ;;  %v1030_v55 = vmul.f32 %v4141_v22, %v5172_v41  ;;  %4156 = vpow2.f32 %v5278_v47  ;;  %7165 = vst [vmem:[#allocation40_spill] sm:$0xff] %v5484_v59  ;;  %v7166_v31 = vrot.slane %v5301_v21, 2  ;;  %v1397_v16 = vrot.slane %v5412_v9, 2 }
 0x1e3   : > { %3707 = vrot.lane.b32.xlu0 %v3706_v12, %s4476_s27  ;;  %v1053_v20 = vmul.f32 %v4143_v50, %v5188_v13  ;;  %4158 = vpow2.f32 %v3182_v62  ;;  %v3184_v12 = vmul.f32 -1.442695, %v5476_v17  ;;  %v7168_v3 = vsub.f32 %v4869_v60, %v5018_v40 }
 0x1e4   : > { %v5489_v41 = vsel %vm1326_vm6, %v7166_v31, %v1337_v7  ;;  %v4145_v47 = vpop.eup %4144  ;;  %v1097_v42 = vrot.slane %v1030_v55, 7  ;;  %4160 = vpow2.f32 %v3183_v36  ;;  %v7172_v22 = vrot.slane %v5349_v63, 1 }
 0x1e5   : > { %7167 = vst [vmem:[#allocation41_spill] sm:$0xff] %v5489_v41  ;;  %v4147_v30 = vpop.eup %4146  ;;  %v1054_v13 = vmul.f32 %v4145_v47, %v5199_v37  ;;  %v1132_v50 = vrot.slane %v1053_v20, 7  ;;  %v741_v7 = vmul.f32 %v5066_v23, %v7168_v3  ;;  %4162 = vpow2.f32 %v3184_v12 }
 0x1e6   : > { %v4149_v31 = vpop.eup %4148  ;;  %v5500_v62 = vsel %vm1089_vm4, %v1096_v29, %v1097_v42  ;;  %v935_v55 = vadd.f32 1.0, %v4147_v30  ;;  %v5503_v36 = vsel %vm1089_vm4, %v1097_v42, 0.0  ;;  %v3721_v60 = vpack.i.bf16 %v5484_v59, %v5489_v41  ;;  %v4212_v41 = vld [vmem:[%s4754_s12 + $0x48] sm:$0xff] }
 0x1e7   : > { %7169 = vst [vmem:[#allocation42_spill] sm:$0xff] %v5500_v62  ;;  %v3621_v37 = vpack.i.bf16 %v5500_v62, %v5447_v14  ;;  %v1133_v20 = vrot.slane %v1054_v13, 7  ;;  %3717 = vrot.lane.b32.xlu0 %v3716_v11, %s4477_s7  ;;  %v936_v9 = vadd.f32 1.0, %v4149_v31  ;;  %v5511_v3 = vsel %vm1089_vm4, 0.0, %v1132_v50 }
 0x1e8   : > { %7170 = vst [vmem:[#allocation43_spill] sm:$0xff] %v5511_v3  ;;  %4164 = vrcp.f32 %v935_v55  ;;  %v1262_v30 = vrot.slane %v5500_v62, 1  ;;  %v1264_v29 = vrot.slane %v5503_v36, 1  ;;  %v7171_v11 = vsub.f32 %v4875_v6, %v5018_v40 }
 0x1e9   : > { %v4151_v47 = vpop.eup %4150  ;;  %3622 = vrot.lane.b32.xlu1 %v3621_v37, %s4477_s7  ;;  %v5517_v42 = vsel %vm1089_vm4, %v1132_v50, %v1133_v20  ;;  %4166 = vrcp.f32 %v936_v9  ;;  %v779_v13 = vmul.f32 %v5068_v10, %v741_v7  ;;  %v5527_v61 = vsel %vm1248_vm5, %v1311_v54, %v7172_v22 }
 0x1ea   : > { %v742_v12 = vmul.f32 %v5066_v23, %v7171_v11  ;;  %v4153_v31 = vpop.eup %4152  ;;  %v959_v55 = vadd.f32 1.0, %v4151_v47  ;;  %7173 = vst [vmem:[#allocation44_spill] sm:$0xff] %v5527_v61  ;;  %v7174_v37 = vrot.slane %v5393_v38, 2  ;;  %v1389_v9 = vrot.slane %v5337_v49, 2 }
 0x1eb   : > { %v4155_v48 = vpop.eup %4154  ;;  %v3626_v6 = vpack.i.bf16 %v5517_v42, %v5511_v3  ;;  %3722 = vrot.lane.b32.xlu0 %v3721_v60, %s4478_s17  ;;  %v939_v7 = vadd.f32 1.0, %v4153_v31  ;;  %v5539_v47 = vsel %vm1248_vm5, %v1261_v1, %v1262_v30  ;;  %v3731_v60 = vpack.i.bf16 %v5359_v46, %v5500_v62 }
 0x1ec   : > { %v5532_v50 = vsel %vm1326_vm6, %v7174_v37, %v1397_v16  ;;  %7176 = vst [vmem:[#allocation46_spill] sm:$0xff] %v5539_v47  ;;  %v780_v54 = vmul.f32 %v5068_v10, %v742_v12  ;;  %v4157_v22 = vpop.eup %4156  ;;  %4168 = vrcp.f32 %v959_v55  ;;  %v940_v11 = vadd.f32 1.0, %v4155_v48 }
 0x1ed   : > { %7175 = vst [vmem:[#allocation45_spill] sm:$0xff] %v5532_v50  ;;  %v5543_v16 = vsel %vm1248_vm5, %v1262_v30, %v1264_v29  ;;  %v5546_v37 = vadd.f32 %v5080_v32, %v779_v13  ;;  %v4159_v49 = vpop.eup %4158  ;;  %3627 = vrot.lane.b32.xlu1 %v3626_v6, %s4477_s7  ;;  %4170 = vrcp.f32 %v939_v7  ;;  %v941_v1 = vadd.f32 1.0, %v4157_v22 }
 0x1ee   : > { %7177 = vst [vmem:[#allocation47_spill] sm:$0xff] %v5543_v16  ;;  %v5552_v31 = vadd.f32 %v5080_v32, %v780_v54  ;;  %v4161_v12 = vpop.eup %4160  ;;  %4172 = vrcp.f32 %v940_v11  ;;  %v942_v48 = vadd.f32 1.0, %v4159_v49  ;;  %v7178_v30 = vrot.slane %v5349_v63, 2 }
 0x1ef   : > { %v3185_v13 = vmul.f32 -1.442695, %v5546_v37  ;;  %3732 = vrot.lane.b32.xlu0 %v3731_v60, %s4476_s27  ;;  %v3741_v46 = vpack.i.bf16 %v5543_v16, %v5539_v47  ;;  %4174 = vrcp.f32 %v941_v1  ;;  %v943_v55 = vadd.f32 1.0, %v4161_v12  ;;  %v4163_v7 = vpop.eup %4162 }
 0x1f0   : > { %v5557_v29 = vsel %vm1326_vm6, %v1389_v9, %v7178_v30  ;;  %v5564_v6 = vsel %vm1089_vm4, %v1133_v20, 0.0  ;;  %4176 = vrcp.f32 %v942_v48  ;;  %v3186_v49 = vmul.f32 -1.442695, %v5552_v31 }
 0x1f1   : > { %7179 = vst [vmem:[#allocation48_spill] sm:$0xff] %v5557_v29  ;;  %v7180_v9 = vsub.f32 %v4881_v18, %v5018_v40  ;;  %v7181_v22 = vsub.f32 %v4889_v25, %v5018_v40  ;;  %v944_v60 = vadd.f32 1.0, %v4163_v7  ;;  %4178 = vrcp.f32 %v943_v55 }
 0x1f2   : > { %v1321_v1 = vrot.slane %v5511_v3, 1  ;;  %v1322_v20 = vrot.slane %v5517_v42, 1  ;;  %v4165_v12 = vpop.eup %4164  ;;  %4180 = vpow2.f32 %v3185_v13  ;;  %v1324_v48 = vrot.slane %v5564_v6, 1 }
 0x1f3   : > { %v743_v54 = vmul.f32 %v5066_v23, %v7180_v9  ;;  %v744_v11 = vmul.f32 %v5066_v23, %v7181_v22  ;;  %v4167_v9 = vpop.eup %4166  ;;  %v1031_v16 = vmul.f32 %v4165_v12, %v5211_v39  ;;  %v7182_v25 = vmov 0.0   ;;  %3742 = vrot.lane.b32.xlu0 %v3741_v46, %s4477_s7 }
 0x1f4   : > { %v5582_v59 = vrot.slane %v7182_v25, 1  ;;  %4182 = vrcp.f32 %v944_v60  ;;  %v1032_v55 = vmul.f32 %v4167_v9, %v5223_v27  ;;  %v3746_v22 = vpack.i.bf16 %v5527_v61, %v5532_v50 }
 0x1f5   : > { %v781_v30 = vmul.f32 %v5068_v10, %v743_v54  ;;  %v782_v18 = vmul.f32 %v5068_v10, %v744_v11  ;;  %4184 = vpow2.f32 %v3186_v49  ;;  %v1099_v54 = vrot.slane %v1031_v16, 7 }
 0x1f6   : > { %v3756_v39 = vpack.i.bf16 %v5557_v29, %v5517_v42  ;;  %v5597_v11 = vsel %vm1248_vm5, %v1321_v1, %v1322_v20  ;;  %v4169_v46 = vpop.eup %4168  ;;  %v1100_v60 = vrot.slane %v1032_v55, 7  ;;  %v5600_v27 = vsel %vm1248_vm5, %v1322_v20, %v1324_v48 }
 0x1f7   : > { %v5587_v13 = vadd.f32 %v5080_v32, %v781_v30  ;;  %v5590_v7 = vadd.f32 %v5080_v32, %v782_v18  ;;  %7183 = vst [vmem:[#allocation49_spill] sm:$0xff] %v5597_v11  ;;  %7184 = vst [vmem:[#allocation50_spill] sm:$0xff] %v5600_v27  ;;  %v4171_v30 = vpop.eup %4170  ;;  %v5605_v16 = vsel %vm1089_vm4, 0.0, %v1099_v54  ;;  %v5608_v18 = vmul.f32 %v4169_v46, %v5227_v53 }
 0x1f8   : > { %7185 = vst [vmem:[#allocation51_spill] sm:$0xff] %v5605_v16  ;;  %3747 = vrot.lane.b32.xlu0 %v3746_v22, %s4478_s17  ;;  %v1342_v9 = vrot.slane %v5503_v36, 2  ;;  %v4173_v55 = vpop.eup %4172  ;;  %v5614_v20 = vsel %vm1089_vm4, %v1099_v54, %v1100_v60  ;;  %v1035_v48 = vmul.f32 %v4171_v30, %v5234_v45  ;;  %v1334_v61 = vrot.slane %v5297_v58, 2  ;;  %v4057_v58 = vld [vmem:[#allocation8] sm:$0xff]  }
 0x1f9   : > { %v3187_v49 = vmul.f32 -1.442695, %v5587_v13  ;;  %v3188_v12 = vmul.f32 -1.442695, %v5590_v7  ;;  %7186 = vst [vmem:[#allocation52_spill] sm:$0xff] %v5614_v20  ;;  %v4175_v25 = vpop.eup %4174  ;;  %v3631_v53 = vpack.i.bf16 %v5614_v20, %v5605_v16  ;;  %v7029_v46 = vrot.slane %v5608_v18, 7 }
 0x1fa   : > { %v5622_v22 = vmul.f32 %v4173_v55, %v5238_v51  ;;  %v4177_v36 = vpop.eup %4176  ;;  %v1105_v1 = vrot.slane %v1035_v48, 7  ;;  %v1037_v54 = vmul.f32 %v4175_v25, %v5249_v19  ;;  %v3766_v51 = vpack.i.bf16 %v5600_v27, %v5597_v11 }
 0x1fb   : > { %4186 = vpow2.f32 %v3187_v49  ;;  %v4179_v50 = vpop.eup %4178  ;;  %3632 = vrot.lane.b32.xlu1 %v3631_v53, %s4477_s7  ;;  %v5629_v45 = vsel %vm1089_vm4, 0.0, %v7029_v46  ;;  %v5633_v30 = vmul.f32 %v4177_v36, %v5265_v24  ;;  %v7188_v55 = vrot.slane %v5500_v62, 2 }
 0x1fc   : > { %4188 = vpow2.f32 %v3188_v12  ;;  %v7030_v49 = vrot.slane %v5622_v22, 7  ;;  %3757 = vrot.lane.b32.xlu0 %v3756_v39, %s4476_s27  ;;  %v4181_v12 = vpop.eup %4180  ;;  %v1108_v19 = vrot.slane %v1037_v54, 7  ;;  %v1039_v25 = vmul.f32 %v4179_v50, %v5454_v26 }
 0x1fd   : > { %7187 = vst [vmem:[#allocation53_spill] sm:$0xff] %v5633_v30  ;;  %v5642_v48 = vsel %vm1326_vm6, %v7188_v55, %v1342_v9  ;;  %v7190_v53 = vrot.slane %v5301_v21, 2  ;;  %v3636_v39 = vpack.i.bf16 %v5629_v45, %v5582_v59  ;;  %v945_v54 = vadd.f32 1.0, %v4181_v12 }
 0x1fe   : > { %7189 = vst [vmem:[#allocation54_spill] sm:$0xff] %v5642_v48  ;;  %v4183_v24 = vpop.eup %4182  ;;  %v5653_v26 = vsel %vm1089_vm4, %v1100_v60, 0.0  ;;  %v5658_v9 = vsel %vm1089_vm4, %v1105_v1, %v7030_v49  ;;  %v1111_v12 = vrot.slane %v1039_v25, 7  ;;  %v1267_v36 = vrot.slane %v5614_v20, 1  ;;  %v4210_v49 = vld [vmem:[%s4754_s12 + $0xf8] sm:$0xff] }
 0x1ff   : > { %v5647_v46 = vsel %vm1326_vm6, %v1334_v61, %v7190_v53  ;;  %v4185_v50 = vpop.eup %4184  ;;  %7192 = vst [vmem:[#allocation56_spill] sm:$0xff] %v5658_v9  ;;  %v5661_v61 = vsel %vm1089_vm4, 0.0, %v1105_v1  ;;  %v5664_v55 = vmul.f32 %v4183_v24, %v5476_v17  ;;  %v1266_v53 = vrot.slane %v5605_v16, 1  ;;  %3637 = vrot.lane.b32.xlu1 %v3636_v39, %s4477_s7 }
 0x200   : > { %7191 = vst [vmem:[#allocation55_spill] sm:$0xff] %v5647_v46  ;;  %7193 = vst [vmem:[#allocation57_spill] sm:$0xff] %v5661_v61  ;;  %v946_v60 = vadd.f32 1.0, %v4185_v50  ;;  %4190 = vrcp.f32 %v945_v54  ;;  %3767 = vrot.lane.b32.xlu0 %v3766_v51, %s4477_s7  ;;  %v694_v1 = vsub.f32 %v4210_v49, %v5018_v40  ;;  %v7194_v21 = vrot.slane %v5633_v30, 7  ;;  %v4211_v54 = vld [vmem:[%s4754_s12 + $0x40] sm:$0xff]  ;;  %s4391_s12 = scalar_lea.vmem %s4390_s19, 4096 }
 0x201   : > { %v5678_v24 = vsel %vm1089_vm4, 0.0, %v1108_v19  ;;  %v1269_v25 = vrot.slane %v5653_v26, 1  ;;  %v3641_v39 = vpack.i.bf16 %v5658_v9, %v5661_v61  ;;  %v3771_v51 = vpack.i.bf16 %v5352_v34, %v5642_v48  ;;  %v4056_v50 = vld [vmem:[#allocation8 + $0x40] sm:$0xff]   ;;  %p4393_p9 = scmp.lt.s32.totalorder %s4391_s12, %s4385_s20 }
 0x202   : > { %v5675_v17 = vsel %vm1089_vm4, %v1108_v19, %v7194_v21  ;;  %7196 = vst [vmem:[#allocation59_spill] sm:$0xff] %v5678_v24  ;;  %4192 = vrcp.f32 %v946_v60  ;;  %v671_v49 = vsub.f32 %v4211_v54, %v5018_v40  ;;  %v3781_v19 = vpack.i.bf16 %v5647_v46, %v5614_v20  ;;  %3308 = vmatprep.subr.bf16.mxu0 %v4056_v50 }
 0x203   : > { %7195 = vst [vmem:[#allocation58_spill] sm:$0xff] %v5675_v17  ;;  %v756_v15 = vmul.f32 %v5066_v23, %v694_v1  ;;  %v672_v0 = vsub.f32 %v4212_v41, %v5018_v40  ;;  %3642 = vrot.lane.b32.xlu1 %v3641_v39, %s4476_s27  ;;  %v3646_v34 = vpack.i.bf16 %v5675_v17, %v5678_v24  ;;  %v5697_v54 = vsel %vm1089_vm4, 0.0, %v1111_v12  ;;  %p4394_p2 = por %p4393_p9, %p4392_p5 }
 0x204   : > { %7197 = vst [vmem:[#allocation60_spill] sm:$0xff] %v5697_v54  ;;  %3772 = vrot.lane.b32.xlu0 %v3771_v51, %s4478_s17  ;;  %v5701_v21 = vsel %vm1248_vm5, %v1266_v53, %v1267_v36  ;;  %v5704_v1 = vsel %vm1248_vm5, %v1267_v36, %v1269_v25  ;;  %v7198_v41 = vrot.slane %v5378_v56, 7  ;;  %3474 = vmatprep.subr.bf16.mxu1 %v4056_v50  ;;  %v1402_v51 = vrot.slane %v5564_v6, 2  ;;  %v4058_v53 = vld [vmem:[#allocation8 + $0x48] sm:$0xff]  }
 0x205   : > { %v4187_v27 = vpop.eup %4186  ;;  %v794_v40 = vmul.f32 %v5068_v10, %v756_v15  ;;  %3309 = vmatpush3.bf16.msra.mxu0 %v4057_v58  ;;  %3482 = vmatpush3.bf16.msra.mxu1 %v4057_v58  ;;  %v7199_v36 = vrot.slane %v5664_v55, 7  ;;  %v4059_v50 = vld [vmem:[#allocation8 + $0x8] sm:$0xff]   ;;  %v1254_v58 = vrot.slane %v5331_v35, 1  ;;  %v3791_v35 = vpack.i.bf16 %v5704_v1, %v5701_v21  ;;  %p4395_p4 = pnand %p4394_p2, %p4388_p13 }
 0x206   : > { %v4189_v60 = vpop.eup %4188  ;;  %v947_v43 = vadd.f32 1.0, %v4187_v27  ;;  %v1212_v39 = vsel %vm1089_vm4, %v7198_v41, 0.0  ;;  %v7047_v27 = vrot.slane %v5517_v42, 2  ;;  %3310 = vmatprep.subr.bf16.mxu0 %v4058_v53  ;;  %3475 = vmatprep.subr.bf16.mxu1 %v4058_v53 }
 0x207   : > { %v948_v11 = vadd.f32 1.0, %v4189_v60  ;;  %v1309_v30 = vrot.slane %v1212_v39, 1  ;;  %v5715_v25 = vsel %vm1089_vm4, %v1111_v12, %v7199_v36  ;;  %v5718_v56 = vadd.f32 %v5080_v32, %v794_v40  ;;  %3647 = vrot.lane.b32.xlu1 %v3646_v34, %s4476_s27  ;;  %v4060_v36 = vld [vmem:[#allocation8 + $0x50] sm:$0xff]  }
 0x208   : > { %4194 = vrcp.f32 %v947_v43  ;;  %7200 = vst [vmem:[#allocation61_spill] sm:$0xff] %v5715_v25  ;;  %v1387_v15 = vrot.slane %v1212_v39, 2  ;;  %3782 = vrot.lane.b32.xlu0 %v3781_v19, %s4476_s27  ;;  %v7201_v43 = vrot.slane %v5407_v28, 1  ;;  %v733_v12 = vmul.f32 %v5066_v23, %v671_v49 }
 0x209   : > { %4196 = vrcp.f32 %v948_v11  ;;  %v3200_v11 = vmul.f32 -1.442695, %v5718_v56  ;;  %v7203_v60 = vrot.slane %v5407_v28, 2  ;;  %v734_v34 = vmul.f32 %v5066_v23, %v672_v0  ;;  %3311 = vmatpush3.bf16.msra.mxu0 %v4059_v50  ;;  %3483 = vmatpush3.bf16.msra.mxu1 %v4059_v50 }
 0x20a   : > { %v5725_v6 = vsel %vm1248_vm5, %v7201_v43, %v1309_v30  ;;  %v4191_v19 = vpop.eup %4190  ;;  %v3651_v30 = vpack.i.bf16 %v5715_v25, %v5697_v54  ;;  %v7205_v49 = vrot.slane %v5328_v5, 1  ;;  %v771_v39 = vmul.f32 %v5068_v10, %v733_v12  ;;  %3312 = vmatprep.subr.bf16.mxu0 %v4060_v36  ;;  %3476 = vmatprep.subr.bf16.mxu1 %v4060_v36 }
 0x20b   : > { %7202 = vst [vmem:[#allocation62_spill] sm:$0xff] %v5725_v6  ;;  %v5733_v40 = vsel %vm1326_vm6, %v7203_v60, %v1387_v15  ;;  %v1041_v23 = vmul.f32 %v4191_v19, %v5546_v37  ;;  %v5750_v0 = vsel %vm1326_vm6, %v7047_v27, %v1402_v51  ;;  %4198 = vpow2.f32 %v3200_v11  ;;  %v4061_v37 = vld [vmem:[#allocation8 + $0x10] sm:$0xff]  }
 0x20c   : > { %7204 = vst [vmem:[#allocation63_spill] sm:$0xff] %v5733_v40  ;;  %v5743_v41 = vsel %vm1248_vm5, %v7205_v49, %v1254_v58  ;;  %7206 = vst [vmem:[#allocation64_spill] sm:$0xff] %v5750_v0  ;;  %v4193_v53 = vpop.eup %4192  ;;  %3652 = vrot.lane.b32.xlu1 %v3651_v30, %s4476_s27  ;;  %3792 = vrot.lane.b32.xlu0 %v3791_v35, %s4477_s7  ;;  %v772_v15 = vmul.f32 %v5068_v10, %v734_v34  ;;  %v1339_v58 = vrot.slane %v5447_v14, 2 }
 0x20d   : > { %v5756_v43 = vadd.f32 %v5080_v32, %v771_v39  ;;  %v5760_v12 = vmul.f32 %v4193_v53, %v5552_v31  ;;  %v1114_v51 = vrot.slane %v1041_v23, 7  ;;  %v1314_v11 = vrot.slane %v5368_v4, 1  ;;  %3313 = vmatpush3.bf16.msra.mxu0 %v4061_v37  ;;  %v4062_v31 = vld [vmem:[#allocation8 + $0x58] sm:$0xff]   ;;  %3484 = vmatpush3.bf16.msra.mxu1 %v4061_v37 }
 0x20e   : > { %v3796_v50 = vpack.i.bf16 %v5441_v33, %v5750_v0  ;;  %v5766_v60 = vadd.f32 %v5080_v32, %v772_v15  ;;  %v7207_v34 = vrot.slane %v5500_v62, 2  ;;  %v7210_v32 = vrot.slane %v5349_v63, 1  ;;  %3314 = vmatprep.subr.bf16.mxu0 %v4062_v31  ;;  %v4063_v23 = vld [vmem:[#allocation8 + $0x18] sm:$0xff]   ;;  %3477 = vmatprep.subr.bf16.mxu1 %v4062_v31 }
 0x20f   : > { %v3177_v10 = vmul.f32 -1.442695, %v5756_v43  ;;  %v7049_v30 = vrot.slane %v5760_v12, 7  ;;  %v5776_v4 = vsel %vm1089_vm4, 0.0, %v1114_v51  ;;  %v1347_v27 = vrot.slane %v5653_v26, 2 }
 0x210   : > { %v5772_v19 = vsel %vm1326_vm6, %v1339_v58, %v7207_v34  ;;  %7209 = vst [vmem:[#allocation66_spill] sm:$0xff] %v5776_v4  ;;  %v5783_v49 = vsel %vm1248_vm5, %v7210_v32, %v1314_v11  ;;  %3797 = vrot.lane.b32.xlu0 %v3796_v50, %s4478_s17  ;;  %v3178_v36 = vmul.f32 -1.442695, %v5766_v60  ;;  %v4064_v50 = vld [vmem:[#allocation8 + $0x60] sm:$0xff]   ;;  %v1364_v62 = vrot.slane %v5697_v54, 2 }
 0x211   : > { %7208 = vst [vmem:[#allocation65_spill] sm:$0xff] %v5772_v19  ;;  %4200 = vpow2.f32 %v3177_v10  ;;  %v5790_v15 = vsel %vm1089_vm4, %v1114_v51, %v7049_v30  ;;  %3315 = vmatpush3.bf16.msra.mxu0 %v4063_v23  ;;  %3485 = vmatpush3.bf16.msra.mxu1 %v4063_v23  ;;  %v4065_v51 = vld [vmem:[#allocation8 + $0x20] sm:$0xff]   ;;  %v7214_v23 = vrot.slane %v5274_v44, 7 }
 0x212   : > { %v4195_v39 = vpop.eup %4194  ;;  %7211 = vst [vmem:[#allocation67_spill] sm:$0xff] %v5790_v15  ;;  %v3656_v37 = vpack.i.bf16 %v5790_v15, %v5776_v4  ;;  %4202 = vpow2.f32 %v3178_v36  ;;  %3316 = vmatprep.subr.bf16.mxu0 %v4064_v50  ;;  %3478 = vmatprep.subr.bf16.mxu1 %v4064_v50  ;;  %v4068_v50 = vld [vmem:[#allocation8 + $0x70] sm:$0xff]  }
 0x213   : > { %v4197_v53 = vpop.eup %4196  ;;  %v1043_v58 = vmul.f32 %v4195_v39, %v5587_v13  ;;  %v4066_v39 = vld [vmem:[#allocation8 + $0x68] sm:$0xff]  }
 0x214   : > { %v5796_v11 = vmul.f32 %v4197_v53, %v5590_v7  ;;  %3657 = vrot.lane.b32.xlu1 %v3656_v37, %s4476_s27  ;;  %v5813_v53 = vsel %vm1089_vm4, 0.0, %v7214_v23  ;;  %v1394_v23 = vrot.slane %v5283_v8, 2 }
 0x215   : > { %v1117_v10 = vrot.slane %v1043_v58, 7  ;;  %v4199_v32 = vpop.eup %4198  ;;  %3317 = vmatpush3.bf16.msra.mxu0 %v4065_v51  ;;  %3486 = vmatpush3.bf16.msra.mxu1 %v4065_v51  ;;  %7215 = vst [vmem:[#allocation70_spill] sm:$0xff] %v5813_v53  ;;  %v4067_v58 = vld [vmem:[#allocation8 + $0x28] sm:$0xff]  }
 0x216   : > { %v7048_v34 = vrot.slane %v5796_v11, 7  ;;  %v960_v31 = vadd.f32 1.0, %v4199_v32  ;;  %3318 = vmatprep.subr.bf16.mxu0 %v4066_v39  ;;  %3479 = vmatprep.subr.bf16.mxu1 %v4066_v39  ;;  %v4069_v39 = vld [vmem:[#allocation8 + $0x30] sm:$0xff]  }
 0x217   : > { %v5801_v13 = vsel %vm1089_vm4, 0.0, %v1117_v10 }
 0x218   : > { %7212 = vst [vmem:[#allocation68_spill] sm:$0xff] %v5801_v13  ;;  %v5806_v7 = vsel %vm1089_vm4, %v1117_v10, %v7048_v34  ;;  %4204 = vrcp.f32 %v960_v31  ;;  %v7216_v10 = vld [vmem:[#allocation27_spill] sm:$0xff]  ;;  %v5821_v31 = vpack.i.bf16 %v5407_v28, %v5397_v2  ;;  %v1406_v34 = vrot.slane %v5629_v45, 1 }
 0x219   : > { %7213 = vst [vmem:[#allocation69_spill] sm:$0xff] %v5806_v7  ;;  %v3661_v36 = vpack.i.bf16 %v5806_v7, %v5801_v13  ;;  %3319 = vmatpush3.bf16.msra.mxu0 %v4067_v58  ;;  %v3666_v32 = vpack.i.bf16 %v7216_v10, %v5813_v53  ;;  %3487 = vmatpush3.bf16.msra.mxu1 %v4067_v58  ;;  %v1374_v5 = vrot.slane %v5801_v13, 2  ;;  %v7235_v13 = vld [vmem:[#allocation21_spill] sm:$0xff] }
 0x21a   : > { %3320 = vmatprep.subr.bf16.mxu0 %v4068_v50  ;;  %3480 = vmatprep.subr.bf16.mxu1 %v4068_v50  ;;  %7217 = vst [vmem:[#allocation71_spill] sm:$0xff] %v5821_v31 }
 0x21b   : > { %3662 = vrot.lane.b32.xlu1 %v3661_v36, %s4476_s27  ;;  %v4201_v37 = vpop.eup %4200  ;;  %v4070_v36 = vld [vmem:[#allocation8 + $0x78] sm:$0xff]  }
 0x21c   : > { %v937_v35 = vadd.f32 1.0, %v4201_v37  ;;  %v4203_v51 = vpop.eup %4202  ;;  %v4071_v37 = vld [vmem:[#allocation8 + $0x38] sm:$0xff]  }
 0x21d   : > { %v938_v44 = vadd.f32 1.0, %v4203_v51  ;;  %3321 = vmatpush3.bf16.msra.mxu0 %v4069_v39  ;;  %3488 = vmatpush3.bf16.msra.mxu1 %v4069_v39 }
 0x21e   : > { %4206 = vrcp.f32 %v937_v35  ;;  %3322 = vmatprep.subr.bf16.mxu0 %v4070_v36  ;;  %3481 = vmatprep.subr.bf16.mxu1 %v4070_v36 }
 0x21f   : > { %3667 = vrot.lane.b32.xlu1 %v3666_v32, %s4476_s27  ;;  %4208 = vrcp.f32 %v938_v44  ;;  %v7218_v32 = vrot.slane %v5393_v38, 2  ;;  %v7052_v44 = vrot.slane %v5614_v20, 2  ;;  %v1365_v38 = vrot.slane %v5715_v25, 2 }
 0x221   : > { %v5832_v51 = vsel %vm1326_vm6, %v1394_v23, %v7218_v32  ;;  %3323 = vmatpush3.bf16.msra.mxu0 %v4071_v37  ;;  %3489 = vmatpush3.bf16.msra.mxu1 %v4071_v37 }
 0x222   : > { %v4205_v58 = vpop.eup %4204  ;;  %7219 = vst [vmem:[#allocation72_spill] sm:$0xff] %v5832_v51 }
 0x223   : > { %3672 = vrot.lane.b32.xlu1 %v5821_v31, %s4476_s27  ;;  %v1056_v50 = vmul.f32 %v4205_v58, %v5718_v56  ;;  %v3686_v56 = vpack.i.bf16 %v5557_v29, %v5582_v59  ;;  %v1443_v58 = vrot.slane %v5629_v45, 2  ;;  %v3701_v59 = vpack.i.bf16 %v5647_v46, %v5725_v6 }
 0x224   : > { %v7234_v31 = vrot.slane %v5796_v11, 7  ;;  %v1380_v11 = vrot.slane %v7216_v10, 2 }
 0x225   : > { %v1136_v35 = vrot.slane %v1056_v50, 7 }
 0x227   : > { %3677 = vrot.lane.b32.xlu1 %v5372_v57, %s4476_s27  ;;  %v7220_v57 = vrot.slane %v5608_v18, 7  ;;  %v1216_v23 = vsel %vm1089_vm4, %v1136_v35, 0.0  ;;  %v5856_v18 = vsel %vm1326_vm6, %v7052_v44, %v1347_v27  ;;  %v1354_v27 = vrot.slane %v5661_v61, 2 }
 0x228   : > { %v4207_v39 = vpop.eup %4206  ;;  %v1409_v32 = vrot.slane %v1216_v23, 1  ;;  %7221 = vst [vmem:[#allocation73_spill] sm:$0xff] %v5856_v18  ;;  %v1355_v44 = vrot.slane %v5658_v9, 2 }
 0x229   : > { %v5842_v36 = vsel %vm1089_vm4, %v7220_v57, %v1136_v35  ;;  %v1033_v37 = vmul.f32 %v4207_v39, %v5756_v43  ;;  %v4209_v30 = vpop.eup %4208  ;;  %v1446_v57 = vrot.slane %v1216_v23, 2 }
 0x22a   : > { %v3806_v26 = vpack.i.bf16 %v5832_v51, %v5842_v36  ;;  %v1407_v50 = vrot.slane %v5842_v36, 1  ;;  %v1444_v35 = vrot.slane %v5842_v36, 2  ;;  %v1034_v39 = vmul.f32 %v4209_v30, %v5766_v60 }
 0x22b   : > { %3687 = vrot.lane.b32.xlu1 %v3686_v56, %s4478_s17  ;;  %v1102_v56 = vrot.slane %v1033_v37, 7  ;;  %v3821_v30 = vpack.i.bf16 %v5539_v47, %v5856_v18  ;;  %v1399_v37 = vrot.slane %v5511_v3, 2  ;;  %v5900_v60 = vsel %vm1326_vm6, %v1354_v27, %v1355_v44 }
 0x22c   : > { %3807 = vrot.lane.b32.xlu0 %v3806_v26, %s4476_s27  ;;  %v5861_v29 = vsel %vm1248_vm5, %v1406_v34, %v1407_v50  ;;  %v5864_v43 = vsel %vm1248_vm5, %v1407_v50, %v1409_v32  ;;  %v5868_v46 = vsel %vm1326_vm6, %v1444_v35, %v1446_v57  ;;  %v5873_v23 = vsel %vm1326_vm6, %v1443_v58, %v1444_v35 }
 0x22d   : > { %7222 = vst [vmem:[#allocation74_spill] sm:$0xff] %v5861_v29  ;;  %7223 = vst [vmem:[#allocation75_spill] sm:$0xff] %v5864_v43  ;;  %v3816_v34 = vpack.i.bf16 %v5864_v43, %v5861_v29  ;;  %v3711_v26 = vpack.i.bf16 %v5447_v14, %v5733_v40  ;;  %v1103_v50 = vrot.slane %v1034_v39, 7  ;;  %v3726_v32 = vpack.i.bf16 %v5832_v51, %v5743_v41 }
 0x22e   : > { %7224 = vst [vmem:[#allocation76_spill] sm:$0xff] %v5868_v46  ;;  %7225 = vst [vmem:[#allocation77_spill] sm:$0xff] %v5873_v23  ;;  %v3736_v58 = vpack.i.bf16 %v5511_v3, %v5362_v52  ;;  %v5894_v57 = vsel %vm1089_vm4, 0.0, %v1102_v56  ;;  %v1344_v52 = vrot.slane %v5605_v16, 2  ;;  %v1359_v51 = vrot.slane %v5678_v24, 2 }
 0x22f   : > { %3702 = vrot.lane.b32.xlu1 %v3701_v59, %s4478_s17  ;;  %v5891_v35 = vsel %vm1089_vm4, %v1102_v56, %v1103_v50  ;;  %v1205_v59 = vsel %vm1089_vm4, %v1103_v50, 0.0  ;;  %7227 = vst [vmem:[#allocation79_spill] sm:$0xff] %v5900_v60  ;;  %v1360_v56 = vrot.slane %v5675_v17, 2  ;;  %v7229_v50 = vld [vmem:[#allocation53_spill] sm:$0xff]  ;;  %v7231_v27 = vrot.slane %v5664_v55, 7 }
 0x230   : > { %3817 = vrot.lane.b32.xlu0 %v3816_v34, %s4477_s7  ;;  %7226 = vst [vmem:[#allocation78_spill] sm:$0xff] %v5891_v35  ;;  %v7228_v34 = vrot.slane %v5622_v22, 7  ;;  %v7230_v29 = vrot.slane %v7229_v50, 7  ;;  %v1271_v22 = vrot.slane %v5894_v57, 1  ;;  %v1274_v14 = vrot.slane %v1205_v59, 1 }
 0x231   : > { %v5919_v43 = vsel %vm1089_vm4, %v7231_v27, 0.0  ;;  %v1370_v55 = vrot.slane %v5790_v15, 2  ;;  %v7232_v27 = vrot.slane %v5760_v12, 7  ;;  %v1350_v33 = vrot.slane %v5891_v35, 2 }
 0x232   : > { %v5907_v3 = vsel %vm1089_vm4, %v7228_v34, 0.0  ;;  %v5914_v39 = vsel %vm1089_vm4, %v7230_v29, 0.0  ;;  %v1272_v34 = vrot.slane %v5891_v35, 1  ;;  %v1369_v29 = vrot.slane %v5776_v4, 2 }
 0x233   : > { %3712 = vrot.lane.b32.xlu1 %v3711_v26, %s4476_s27  ;;  %v1357_v50 = vrot.slane %v5907_v3, 2  ;;  %v5932_v8 = vsel %vm1089_vm4, %v7232_v27, 0.0  ;;  %v1349_v26 = vrot.slane %v5894_v57, 2  ;;  %v1362_v63 = vrot.slane %v5914_v39, 2 }
 0x234   : > { %3822 = vrot.lane.b32.xlu0 %v3821_v30, %s4478_s17  ;;  %7233 = vst [vmem:[#allocation53_spill] sm:$0xff] %v5932_v8  ;;  %v1367_v47 = vrot.slane %v5919_v43, 2  ;;  %v3831_v30 = vpack.i.bf16 %v5772_v19, %v5891_v35  ;;  %v1352_v28 = vrot.slane %v1205_v59, 2  ;;  %v5944_v12 = vsel %vm1089_vm4, %v7234_v31, 0.0 }
 0x235   : > { %v5948_v27 = vsel %vm1248_vm5, %v1271_v22, %v1272_v34  ;;  %v5951_v2 = vsel %vm1248_vm5, %v1272_v34, %v1274_v14  ;;  %v1375_v40 = vrot.slane %v5806_v7, 2  ;;  %v1372_v6 = vrot.slane %v5932_v8, 2 }
 0x236   : > { %v1379_v59 = vrot.slane %v5813_v53, 2  ;;  %v1377_v31 = vrot.slane %v5944_v12, 2  ;;  %v7237_v14 = vrot.slane %v5614_v20, 2  ;;  %v5970_v8 = vsel %vm1326_vm6, %v1359_v51, %v1360_v56 }
 0x237   : > { %3727 = vrot.lane.b32.xlu1 %v3726_v32, %s4478_s17  ;;  %v7236_v32 = vrot.slane %v7235_v13, 7  ;;  %7239 = vst [vmem:[#allocation80_spill] sm:$0xff] %v5970_v8  ;;  %v5976_v10 = vsel %vm1326_vm6, %v1355_v44, %v1357_v50  ;;  %v3841_v13 = vpack.i.bf16 %v5951_v2, %v5948_v27  ;;  %v5984_v20 = vsel %vm1326_vm6, %v1350_v33, %v1352_v28 }
 0x238   : > { %3832 = vrot.lane.b32.xlu0 %v3831_v30, %s4476_s27  ;;  %v5967_v34 = vsel %vm1326_vm6, %v1344_v52, %v7237_v14  ;;  %v5973_v30 = vsel %vm1326_vm6, %v1364_v62, %v1365_v38  ;;  %7241 = vst [vmem:[#allocation82_spill] sm:$0xff] %v5976_v10  ;;  %7243 = vst [vmem:[#allocation84_spill] sm:$0xff] %v5984_v20  ;;  %v5989_v51 = vsel %vm1326_vm6, %v1369_v29, %v1370_v55 }
 0x239   : > { %v5962_v22 = vsel %vm1089_vm4, %v7236_v32, 0.0  ;;  %7238 = vst [vmem:[#allocation21_spill] sm:$0xff] %v5967_v34  ;;  %7240 = vst [vmem:[#allocation81_spill] sm:$0xff] %v5973_v30  ;;  %v5981_v32 = vsel %vm1326_vm6, %v1349_v26, %v1350_v33  ;;  %v5992_v62 = vsel %vm1326_vm6, %v1360_v56, %v1362_v63  ;;  %v5995_v44 = vsel %vm1326_vm6, %v1365_v38, %v1367_v47  ;;  %v7251_v38 = vld [vmem:[#allocation49_spill] sm:$0xff] }
 0x23a   : > { %7242 = vst [vmem:[#allocation83_spill] sm:$0xff] %v5981_v32  ;;  %v1382_v52 = vrot.slane %v5962_v22, 2  ;;  %7244 = vst [vmem:[#allocation85_spill] sm:$0xff] %v5989_v51  ;;  %v5998_v50 = vsel %vm1326_vm6, %v1370_v55, %v1372_v6  ;;  %v6002_v28 = vsel %vm1326_vm6, %v1374_v5, %v1375_v40  ;;  %v6005_v33 = vsel %vm1326_vm6, %v1379_v59, %v1380_v11 }
 0x23b   : > { %3737 = vrot.lane.b32.xlu1 %v3736_v58, %s4476_s27  ;;  %7245 = vst [vmem:[#allocation86_spill] sm:$0xff] %v5992_v62  ;;  %7246 = vst [vmem:[#allocation87_spill] sm:$0xff] %v5998_v50  ;;  %v6008_v58 = vsel %vm1326_vm6, %v1375_v40, %v1377_v31  ;;  %v3846_v47 = vpack.i.bf16 %v7251_v38, %v5868_v46  ;;  %v7252_v6 = vrot.slane %v5517_v42, 2  ;;  %v7077_v31 = vrot.slane %v5658_v9, 1  ;;  %v6066_v40 = vld [vmem:[#allocation8 + $0x80] sm:$0xff]  }
 0x23c   : > { %3842 = vrot.lane.b32.xlu0 %v3841_v13, %s4477_s7  ;;  %7247 = vst [vmem:[#allocation88_spill] sm:$0xff] %v6002_v28  ;;  %7248 = vst [vmem:[#allocation89_spill] sm:$0xff] %v6005_v33  ;;  %v6011_v63 = vsel %vm1326_vm6, %v1380_v11, %v1382_v52  ;;  %v1276_v11 = vrot.slane %v5661_v61, 1  ;;  %v3871_v29 = vpack.i.bf16 %v5900_v60, %v5704_v1  ;;  %3438 = vmatprep.subr.bf16.mxu1 %v6066_v40 }
 0x23d   : > { %7249 = vst [vmem:[#allocation90_spill] sm:$0xff] %v6008_v58  ;;  %7250 = vst [vmem:[#allocation91_spill] sm:$0xff] %v6011_v63  ;;  %v6018_v56 = vsel %vm1326_vm6, %v1399_v37, %v7252_v6  ;;  %v7254_v37 = vpack.i.bf16 %v5772_v19, %v5783_v49  ;;  %v7255_v6 = vld [vmem:[#allocation33_spill] sm:$0xff] }
 0x23e   : > { %7253 = vst [vmem:[#allocation49_spill] sm:$0xff] %v6018_v56  ;;  %v3761_v59 = vpack.i.bf16 %v5605_v16, %v7255_v6  ;;  %v6053_v14 = vsel %vm1248_vm5, %v1276_v11, %v7077_v31  ;;  %v7258_v11 = vld [vmem:[#allocation41_spill] sm:$0xff]  ;;  %v7259_v31 = vld [vmem:[#allocation38_spill] sm:$0xff] }
 0x23f   : > { %3752 = vrot.lane.b32.xlu1 %v7254_v37, %s4478_s17  ;;  %v3856_v37 = vpack.i.bf16 %v5750_v0, %v6018_v56  ;;  %v3861_v52 = vpack.i.bf16 %v6053_v14, %v5842_v36  ;;  %v6060_v55 = vpop.permute.xlu1 %3597  ;;  %v1281_v36 = vrot.slane %v5678_v24, 1  ;;  %v3801_v46 = vpack.i.bf16 %v5967_v34, %v7259_v31 }
 0x240   : > { %3847 = vrot.lane.b32.xlu0 %v3846_v47, %s4478_s17  ;;  %v7256_v47 = vld [vmem:[#allocation30_spill] sm:$0xff]  ;;  %v3876_v0 = vpack.i.bf16 %v5856_v18, %v5967_v34  ;;  %v7262_v34 = vld [vmem:[#allocation45_spill] sm:$0xff] }
 0x241   : > { %v3593_v13 = vpop.permute.xlu0 %3592  ;;  %v3776_v26 = vpack.i.bf16 %v6018_v56, %v7256_v47 }
 0x242   : > { %v3594_v19 = vunpack.i.l.bf16 %v3593_v13 }
 0x243   : > { %3762 = vrot.lane.b32.xlu1 %v3761_v59, %s4476_s27 }
 0x244   : > { %3857 = vrot.lane.b32.xlu0 %v3856_v37, %s4476_s27  ;;  %v3786_v37 = vpack.i.bf16 %v5629_v45, %v7258_v11 }
 0x245   : > { %v6064_v59 = vpop.permute.xlu0 %1707 }
 0x246   : > { %7257 = vst [vmem:[#allocation30_spill] sm:$0xff] %v6064_v59 }
 0x247   : > { %3777 = vrot.lane.b32.xlu1 %v3776_v26, %s4478_s17  ;;  %v7085_v26 = vrot.slane %v5675_v17, 1 }
 0x248   : > { %3862 = vrot.lane.b32.xlu0 %v3861_v52, %s4477_s7  ;;  %v6077_v52 = vpop.permute.xlu1 %3602 }
 0x249   : > { %v3683_v5 = vpop.permute.xlu0 %3682 }
 0x24a   : > { %v3685_v45 = vunpack.i.h.bf16 %v3683_v5  ;;  %v3684_v56 = vunpack.i.l.bf16 %v3683_v5  ;;  %v3595_v5 = vunpack.i.h.bf16 %v3593_v13 }
 0x24b   : > { %3787 = vrot.lane.b32.xlu1 %v3786_v37, %s4476_s27  ;;  %v6087_v37 = vsel %vm1248_vm5, %v1281_v36, %v7085_v26 }
 0x24c   : > { %3872 = vrot.lane.b32.xlu0 %v3871_v29, %s4478_s17  ;;  %7260 = vst [vmem:[#allocation38_spill] sm:$0xff] %v6087_v37  ;;  %v7261_v29 = vld [vmem:[#allocation40_spill] sm:$0xff]  ;;  %v2140_v6 = vsel %vm391_vm0, %v5743_v41, %v3685_v45  ;;  %v3886_v36 = vpack.i.bf16 %v6087_v37, %v5891_v35  ;;  %v6098_v26 = vpop.permute.xlu1 %3607  ;;  %v3896_v35 = vpack.i.bf16 %v5970_v8, %v5951_v2 }
 0x24d   : > { %v2139_v59 = vsel %vm391_vm0, %v7261_v29, %v3684_v56  ;;  %v3693_v11 = vpop.permute.xlu0 %3692  ;;  %v2172_v41 = vsel %vm2074_vm7, %v2140_v6, %v3595_v5  ;;  %v7263_v29 = vld [vmem:[#allocation47_spill] sm:$0xff] }
 0x24e   : > { %v3695_v18 = vunpack.i.h.bf16 %v3693_v11  ;;  %v3694_v16 = vunpack.i.l.bf16 %v3693_v11  ;;  %v2171_v56 = vsel %vm2074_vm7, %v2139_v59, %v3594_v19  ;;  %v1286_v19 = vrot.slane %v5697_v54, 1 }
 0x24f   : > { %3802 = vrot.lane.b32.xlu1 %v3801_v46, %s4478_s17  ;;  %v3811_v46 = vpack.i.bf16 %v5894_v57, %v7262_v34  ;;  %v3826_v34 = vpack.i.bf16 %v5873_v23, %v7263_v29  ;;  %v7264_v59 = vmov 0.0   ;;  %v1284_v23 = vrot.slane %v5914_v39, 1 }
 0x250   : > { %3877 = vrot.lane.b32.xlu0 %v3876_v0, %s4476_s27  ;;  %v2203_v0 = vsel %vm2106_vm8, %v2171_v56, %v3694_v16  ;;  %v2204_v13 = vsel %vm2106_vm8, %v2172_v41, %v3695_v18  ;;  %v1287_v16 = vrot.slane %v5715_v25, 1  ;;  %v6116_v18 = vpop.permute.xlu1 %3612  ;;  %v3836_v5 = vpack.i.bf16 %v7264_v59, %v5642_v48  ;;  %v7265_v56 = vld [vmem:[#allocation50_spill] sm:$0xff] }
 0x251   : > { %v6106_v45 = vpop.permute.xlu0 %3697  ;;  %v2236_v11 = vpack.c.bf16 %v2204_v13, %v2203_v0  ;;  %v3851_v41 = vpack.i.bf16 %v5981_v32, %v7265_v56 }
 0x253   : > { %3812 = vrot.lane.b32.xlu1 %v3811_v46, %s4476_s27  ;;  %2514 = vmatprep.mubr.bf16.mxu0 %v2236_v11  ;;  %v3901_v46 = vpack.i.bf16 %v5984_v20, %v5981_v32  ;;  %v7266_v11 = vrot.slane %v5658_v9, 1 }
 0x254   : > { %3887 = vrot.lane.b32.xlu0 %v3886_v36, %s4477_s7  ;;  %v1279_v36 = vrot.slane %v5907_v3, 1  ;;  %v6136_v13 = vpop.permute.xlu1 %3617  ;;  %v3866_v3 = vpack.i.bf16 %v5701_v21, %v5984_v20  ;;  %v7268_v20 = vrot.slane %v5675_v17, 1 }
 0x255   : > { %v6118_v6 = vpop.permute.xlu0 %3707 }
 0x257   : > { %3827 = vrot.lane.b32.xlu1 %v3826_v34, %s4478_s17  ;;  %v6126_v34 = vsel %vm1248_vm5, %v1286_v19, %v1287_v16  ;;  %v6142_v19 = vsel %vm1248_vm5, %v7266_v11, %v1279_v36  ;;  %v3926_v11 = vpack.i.bf16 %v5976_v10, %v5900_v60  ;;  %v6176_v60 = vsel %vm1248_vm5, %v7268_v20, %v1284_v23  ;;  %v7270_v20 = vld [vmem:[#allocation68_spill] sm:$0xff] }
 0x258   : > { %3897 = vrot.lane.b32.xlu0 %v3896_v35, %s4478_s17  ;;  %v3911_v0 = vpack.i.bf16 %v6126_v34, %v5658_v9  ;;  %v3921_v59 = vpack.i.bf16 %v5973_v30, %v6142_v19  ;;  %7269 = vst [vmem:[#allocation47_spill] sm:$0xff] %v6176_v60  ;;  %v1296_v23 = vrot.slane %v7270_v20, 1 }
 0x259   : > { %v6130_v35 = vpop.permute.xlu0 %3717 }
 0x25b   : > { %3837 = vrot.lane.b32.xlu1 %v3836_v5, %s4476_s27  ;;  %v6155_v36 = vpop.permute.xlu1 %3622 }
 0x25c   : > { %3902 = vrot.lane.b32.xlu0 %v3901_v46, %s4476_s27  ;;  %v1291_v46 = vrot.slane %v5776_v4, 1 }
 0x25d   : > { %v6149_v5 = vpop.permute.xlu0 %3722 }
 0x25f   : > { %3852 = vrot.lane.b32.xlu1 %v3851_v41, %s4478_s17  ;;  %v1292_v41 = vrot.slane %v5790_v15, 1  ;;  %v6178_v39 = vpop.permute.xlu1 %3627 }
 0x260   : > { %3912 = vrot.lane.b32.xlu0 %v3911_v0, %s4477_s7  ;;  %v3881_v0 = vpack.i.bf16 %v5894_v57, %v6142_v19 }
 0x261   : > { %v6167_v9 = vpop.permute.xlu0 %3732 }
 0x263   : > { %3867 = vrot.lane.b32.xlu1 %v3866_v3, %s4478_s17  ;;  %v6164_v3 = vsel %vm1248_vm5, %v1291_v46, %v1292_v41  ;;  %v3906_v46 = vpack.i.bf16 %v5661_v61, %v6176_v60 }
 0x264   : > { %3922 = vrot.lane.b32.xlu0 %v3921_v59, %s4478_s17  ;;  %7267 = vst [vmem:[#allocation40_spill] sm:$0xff] %v6164_v3  ;;  %v3891_v59 = vpack.i.bf16 %v5948_v27, %v5976_v10  ;;  %v3936_v32 = vpack.i.bf16 %v6164_v3, %v5675_v17  ;;  %v1297_v17 = vrot.slane %v5806_v7, 1 }
 0x265   : > { %v6187_v10 = vpop.permute.xlu0 %3742 }
 0x267   : > { %3882 = vrot.lane.b32.xlu1 %v3881_v0, %s4477_s7  ;;  %v3946_v0 = vpack.i.bf16 %v5989_v51, %v6176_v60  ;;  %v3951_v60 = vpack.i.bf16 %v5992_v62, %v5970_v8 }
 0x268   : > { %3927 = vrot.lane.b32.xlu0 %v3926_v11, %s4476_s27  ;;  %v1289_v11 = vrot.slane %v5919_v43, 1 }
 0x26a   : > { %v6200_v43 = vsel %vm1248_vm5, %v1287_v16, %v1289_v11 }
 0x26b   : > { %3892 = vrot.lane.b32.xlu1 %v3891_v59, %s4478_s17  ;;  %7271 = vst [vmem:[#allocation50_spill] sm:$0xff] %v6200_v43  ;;  %v3931_v48 = vpack.i.bf16 %v5678_v24, %v6200_v43 }
 0x26c   : > { %3937 = vrot.lane.b32.xlu0 %v3936_v32, %s4477_s7  ;;  %v3916_v32 = vpack.i.bf16 %v6053_v14, %v5992_v62  ;;  %v7273_v62 = vld [vmem:[#allocation53_spill] sm:$0xff] }
 0x26d   : > { %v6193_v59 = vpop.permute.xlu1 %3632  ;;  %v1294_v16 = vrot.slane %v7273_v62, 1  ;;  %v1301_v62 = vrot.slane %v5813_v53, 1 }
 0x26f   : > { %3907 = vrot.lane.b32.xlu1 %v3906_v46, %s4477_s7  ;;  %v6204_v46 = vsel %vm1248_vm5, %v1296_v23, %v1297_v17  ;;  %v3971_v23 = vpack.i.bf16 %v6002_v28, %v6200_v43  ;;  %v3976_v43 = vpack.i.bf16 %v5995_v44, %v5973_v30 }
 0x270   : > { %3947 = vrot.lane.b32.xlu0 %v3946_v0, %s4478_s17  ;;  %7272 = vst [vmem:[#allocation92_spill] sm:$0xff] %v6204_v46  ;;  %v6209_v0 = vpop.permute.xlu0 %3747  ;;  %v3961_v8 = vpack.i.bf16 %v6204_v46, %v5715_v25 }
 0x271   : > { %v6207_v61 = vpop.permute.xlu1 %3637 }
 0x273   : > { %3917 = vrot.lane.b32.xlu1 %v3916_v32, %s4478_s17  ;;  %v6225_v32 = vsel %vm1248_vm5, %v1292_v41, %v1294_v16  ;;  %v1299_v41 = vrot.slane %v5944_v12, 1 }
 0x274   : > { %3952 = vrot.lane.b32.xlu0 %v3951_v60, %s4476_s27  ;;  %v3941_v60 = vpack.i.bf16 %v6087_v37, %v5995_v44  ;;  %7274 = vst [vmem:[#allocation53_spill] sm:$0xff] %v6225_v32  ;;  %v6227_v24 = vpop.permute.xlu0 %3757  ;;  %v3956_v37 = vpack.i.bf16 %v5697_v54, %v6225_v32 }
 0x275   : > { %v6218_v11 = vpop.permute.xlu1 %3642  ;;  %v6254_v30 = vsel %vm1248_vm5, %v1297_v17, %v1299_v41  ;;  %v3991_v41 = vpack.i.bf16 %v6164_v3, %v6008_v58 }
 0x276   : > { %7277 = vst [vmem:[#allocation94_spill] sm:$0xff] %v6254_v30  ;;  %v3981_v12 = vpack.i.bf16 %v5776_v4, %v6254_v30 }
 0x277   : > { %3932 = vrot.lane.b32.xlu1 %v3931_v48, %s4477_s7  ;;  %v7275_v48 = vld [vmem:[#allocation27_spill] sm:$0xff] }
 0x278   : > { %3962 = vrot.lane.b32.xlu0 %v3961_v8, %s4477_s7  ;;  %v1302_v25 = vrot.slane %v7275_v48, 1 }
 0x279   : > { %v6233_v8 = vpop.permute.xlu1 %3647 }
 0x27a   : > { %v6242_v16 = vsel %vm1248_vm5, %v1301_v62, %v1302_v25  ;;  %v1304_v62 = vrot.slane %v5962_v22, 1 }
 0x27b   : > { %3942 = vrot.lane.b32.xlu1 %v3941_v60, %s4478_s17  ;;  %7276 = vst [vmem:[#allocation93_spill] sm:$0xff] %v6242_v16  ;;  %v6245_v60 = vpop.permute.xlu0 %3767  ;;  %v3986_v48 = vpack.i.bf16 %v6242_v16, %v5790_v15  ;;  %v7279_v15 = vld [vmem:[#allocation35_spill] sm:$0xff] }
 0x27c   : > { %3972 = vrot.lane.b32.xlu0 %v3971_v23, %s4478_s17  ;;  %v3966_v23 = vpack.i.bf16 %v6126_v34, %v5998_v50  ;;  %v4011_v4 = vpack.i.bf16 %v7279_v15, %v5806_v7  ;;  %v7283_v15 = vld [vmem:[#allocation62_spill] sm:$0xff] }
 0x27e   : > { %v6251_v54 = vpop.permute.xlu1 %3652 }
 0x27f   : > { %3957 = vrot.lane.b32.xlu1 %v3956_v37, %s4477_s7  ;;  %v3996_v37 = vpack.i.bf16 %v6005_v33, %v6225_v32 }
 0x280   : > { %3977 = vrot.lane.b32.xlu0 %v3976_v43, %s4476_s27  ;;  %v6262_v43 = vpop.permute.xlu0 %3772 }
 0x283   : > { %3967 = vrot.lane.b32.xlu1 %v3966_v23, %s4478_s17  ;;  %v6274_v23 = vsel %vm1248_vm5, %v1302_v25, %v1304_v62  ;;  %v4016_v62 = vpack.i.bf16 %v6204_v46, %v6011_v63  ;;  %v7285_v46 = vld [vmem:[#allocation63_spill] sm:$0xff] }
 0x284   : > { %3987 = vrot.lane.b32.xlu0 %v3986_v48, %s4477_s7  ;;  %v4001_v48 = vpack.i.bf16 %v5998_v50, %v5989_v51  ;;  %7278 = vst [vmem:[#allocation95_spill] sm:$0xff] %v6274_v23  ;;  %v6278_v22 = vpop.permute.xlu0 %3782  ;;  %v7287_v50 = vld [vmem:[#allocation32_spill] sm:$0xff] }
 0x286   : > { %v6267_v17 = vpop.permute.xlu1 %3657 }
 0x287   : > { %3982 = vrot.lane.b32.xlu1 %v3981_v12, %s4477_s7 }
 0x288   : > { %3997 = vrot.lane.b32.xlu0 %v3996_v37, %s4478_s17  ;;  %v4006_v37 = vpack.i.bf16 %v7270_v20, %v6274_v23  ;;  %v6294_v51 = vpop.permute.xlu0 %3792 }
 0x28b   : > { %3992 = vrot.lane.b32.xlu1 %v3991_v41, %s4478_s17  ;;  %v7281_v41 = vld [vmem:[#allocation36_spill] sm:$0xff] }
 0x28c   : > { %4002 = vrot.lane.b32.xlu0 %v4001_v48, %s4476_s27  ;;  %v4021_v48 = vpack.i.bf16 %v7281_v41, %v6254_v30  ;;  %v6306_v7 = vpop.permute.xlu0 %3797 }
 0x28d   : > { %v6280_v12 = vpop.permute.xlu1 %3662 }
 0x28f   : > { %4007 = vrot.lane.b32.xlu1 %v4006_v37, %s4477_s7  ;;  %v4031_v37 = vpack.i.bf16 %v5813_v53, %v7283_v15  ;;  %v3699_v53 = vunpack.i.l.bf16 %v6106_v45  ;;  %v7286_v15 = vld [vmem:[#allocation44_spill] sm:$0xff] }
 0x290   : > { %4012 = vrot.lane.b32.xlu0 %v4011_v4, %s4477_s7  ;;  %v4026_v4 = vpack.i.bf16 %v6008_v58, %v6002_v28  ;;  %v3605_v28 = vunpack.i.h.bf16 %v6077_v52  ;;  %v3604_v58 = vunpack.i.l.bf16 %v6077_v52 }
 0x291   : > { %v6288_v25 = vpop.permute.xlu1 %3667 }
 0x292   : > { %7280 = vst [vmem:[#allocation96_spill] sm:$0xff] %v6288_v25  ;;  %v3600_v25 = vunpack.i.h.bf16 %v6060_v55 }
 0x293   : > { %4017 = vrot.lane.b32.xlu1 %v4016_v62, %s4478_s17  ;;  %v4036_v62 = vpack.i.bf16 %v6242_v16, %v7285_v46  ;;  %v4041_v16 = vpack.i.bf16 %v6011_v63, %v6005_v33  ;;  %v3719_v33 = vunpack.i.l.bf16 %v6130_v35 }
 0x294   : > { %4022 = vrot.lane.b32.xlu0 %v4021_v48, %s4478_s17  ;;  %v3700_v48 = vunpack.i.h.bf16 %v6106_v45 }
 0x295   : > { %v6298_v20 = vpop.permute.xlu1 %3672 }
 0x296   : > { %7282 = vst [vmem:[#allocation97_spill] sm:$0xff] %v6298_v20  ;;  %v3709_v20 = vunpack.i.l.bf16 %v6118_v6 }
 0x297   : > { %4032 = vrot.lane.b32.xlu1 %v4031_v37, %s4477_s7  ;;  %v4046_v37 = vpack.i.bf16 %v5783_v49, %v7286_v15 }
 0x298   : > { %4027 = vrot.lane.b32.xlu0 %v4026_v4, %s4476_s27  ;;  %v3710_v4 = vunpack.i.h.bf16 %v6118_v6  ;;  %v2066_v6 = vsel %vm391_vm0, %v7287_v50, %v3700_v48 }
 0x299   : > { %v6308_v30 = vpop.permute.xlu1 %3677 }
 0x29a   : > { %7284 = vst [vmem:[#allocation98_spill] sm:$0xff] %v6308_v30  ;;  %v2098_v32 = vsel %vm2074_vm7, %v2066_v6, %v3710_v4  ;;  %v3745_v6 = vunpack.i.h.bf16 %v6187_v10 }
 0x29b   : > { %4037 = vrot.lane.b32.xlu1 %v4036_v62, %s4478_s17  ;;  %v3720_v62 = vunpack.i.h.bf16 %v6130_v35  ;;  %v3724_v35 = vunpack.i.l.bf16 %v6149_v5 }
 0x29c   : > { %1523 = vrot.lane.b32.xlu0 %v6274_v23, %s4478_s17  ;;  %v3599_v23 = vunpack.i.l.bf16 %v6060_v55  ;;  %v2164_v55 = vsel %vm391_vm0, %v5783_v49, %v3699_v53 }
 0x29d   : > { %v3688_v30 = vpop.permute.xlu1 %3687  ;;  %v2196_v48 = vsel %vm2074_vm7, %v2164_v55, %v3709_v20  ;;  %v7288_v20 = vld [vmem:[#allocation71_spill] sm:$0xff]  ;;  %v2142_v55 = vsel %vm391_vm0, %v7256_v47, %v3724_v35 }
 0x29e   : > { %v3690_v46 = vunpack.i.h.bf16 %v3688_v30  ;;  %v3689_v45 = vunpack.i.l.bf16 %v3688_v30  ;;  %v6325_v41 = vpop.permute.xlu0 %3807 }
 0x29f   : > { %4047 = vrot.lane.b32.xlu1 %v4046_v37, %s4477_s7 }
 0x2a0   : > { %v2043_v63 = vsel %vm391_vm0, 0.0, %v3689_v45  ;;  %4042 = vrot.lane.b32.xlu0 %v4041_v16, %s4476_s27  ;;  %v2163_v30 = vsel %vm391_vm0, %v7286_v15, %v3690_v46  ;;  %v2228_v15 = vsel %vm2106_vm8, %v2196_v48, %v3720_v62  ;;  %v3610_v62 = vunpack.i.h.bf16 %v6098_v26 }
 0x2a1   : > { %v2075_v52 = vsel %vm2074_vm7, %v2043_v63, %v3599_v23  ;;  %v3703_v3 = vpop.permute.xlu1 %3702  ;;  %v2195_v50 = vsel %vm2074_vm7, %v2163_v30, %v3600_v25  ;;  %v3609_v23 = vunpack.i.l.bf16 %v6098_v26  ;;  %v3734_v25 = vunpack.i.l.bf16 %v6167_v9 }
 0x2a2   : > { %v6345_v37 = vpop.permute.xlu0 %3817  ;;  %v2227_v16 = vsel %vm2106_vm8, %v2195_v50, %v3719_v33  ;;  %v2107_v46 = vsel %vm2106_vm8, %v2075_v52, %v3604_v58  ;;  %v3705_v49 = vunpack.i.h.bf16 %v3703_v3  ;;  %v3704_v53 = vunpack.i.l.bf16 %v3703_v3  ;;  %v7289_v50 = vld [vmem:[#allocation29_spill] sm:$0xff] }
 0x2a3   : > { %v2272_v4 = vpack.c.bf16 %v2228_v15, %v2227_v16  ;;  %v2108_v63 = vsel %vm2106_vm8, %v2075_v52, %v3605_v28  ;;  %v2131_v28 = vsel %vm2106_vm8, %v2098_v32, %v3609_v23  ;;  %v3744_v52 = vunpack.i.l.bf16 %v6187_v10  ;;  %v7290_v16 = vld [vmem:[#allocation34_spill] sm:$0xff] }
 0x2a4   : > { %4052 = vrot.lane.b32.xlu0 %v7288_v20, %s4477_s7  ;;  %v2235_v45 = vpack.c.bf16 %v2108_v63, %v2107_v46  ;;  %v2141_v48 = vsel %vm391_vm0, %v7289_v50, %v3705_v49  ;;  %v2067_v15 = vsel %vm391_vm0, %v7290_v16, %v3704_v53  ;;  %v3725_v26 = vunpack.i.h.bf16 %v6149_v5 }
 0x2a5   : > { %v3713_v33 = vpop.permute.xlu1 %3712  ;;  %2610 = vmatprep.mubr.bf16.mxu1 %v2272_v4  ;;  %v2174_v46 = vsel %vm2074_vm7, %v2142_v55, %v3734_v25  ;;  %v3735_v32 = vunpack.i.h.bf16 %v6167_v9  ;;  %v3749_v49 = vunpack.i.l.bf16 %v6209_v0  ;;  %v4073_v25 = vld [vmem:[#allocation8 + $0x88] sm:$0xff]   ;;  %v3759_v9 = vunpack.i.l.bf16 %v6227_v24 }
 0x2a6   : > { %v3715_v58 = vunpack.i.h.bf16 %v3713_v33  ;;  %v3714_v30 = vunpack.i.l.bf16 %v3713_v33  ;;  %v6357_v3 = vpop.permute.xlu0 %3822  ;;  %2515 = vmatmul.mubr.bf16.vlgmr.msra.gmra.mrb[0].mxu0 %v2235_v45  ;;  %v2206_v10 = vsel %vm2106_vm8, %v2174_v46, %v3745_v6  ;;  %v3615_v6 = vunpack.i.h.bf16 %v6116_v18 }
 0x2a7   : > { %v3760_v46 = vunpack.i.h.bf16 %v6227_v24 }
 0x2a8   : > { %v2099_v4 = vsel %vm2074_vm7, %v2067_v15, %v3714_v30  ;;  %v2173_v63 = vsel %vm2074_vm7, %v2141_v48, %v3715_v58  ;;  %v7291_v30 = vld [vmem:[#allocation24_spill] sm:$0xff]  ;;  %v2166_v48 = vsel %vm391_vm0, %v7259_v31, %v3749_v49  ;;  %v7294_v49 = vld [vmem:[#allocation26_spill] sm:$0xff] }
 0x2a9   : > { %v3728_v23 = vpop.permute.xlu1 %3727  ;;  %v2205_v47 = vsel %vm2106_vm8, %v2173_v63, %v3744_v52  ;;  %v2132_v35 = vsel %vm2106_vm8, %v2099_v4, %v3610_v62  ;;  %v2044_v58 = vsel %vm391_vm0, %v7291_v30, %v3725_v26  ;;  %v3614_v62 = vunpack.i.l.bf16 %v6116_v18  ;;  %v7292_v4 = vld [vmem:[#allocation37_spill] sm:$0xff] }
 0x2aa   : > { %v6376_v53 = vpop.permute.xlu0 %3832  ;;  %v2239_v5 = vpack.c.bf16 %v2206_v10, %v2205_v47  ;;  %v2271_v20 = vpack.c.bf16 %v2132_v35, %v2131_v28  ;;  %v3730_v45 = vunpack.i.h.bf16 %v3728_v23  ;;  %v3729_v33 = vunpack.i.l.bf16 %v3728_v23 }
 0x2ab   : > { %v2076_v55 = vsel %vm2074_vm7, %v2044_v58, %v3735_v32  ;;  %v3770_v52 = vunpack.i.h.bf16 %v6245_v60  ;;  %v3750_v28 = vunpack.i.h.bf16 %v6209_v0  ;;  %v3769_v18 = vunpack.i.l.bf16 %v6245_v60  ;;  %v7293_v32 = vld [vmem:[#allocation25_spill] sm:$0xff] }
 0x2ac   : > { %2522 = vmatprep.mubr.bf16.mxu0 %v2239_v5  ;;  %2611 = vmatmul.mubr.bf16.vlgmr.msra.gmra.mrb[0].mxu1 %v2271_v20  ;;  %v2165_v63 = vsel %vm391_vm0, %v7292_v4, %v3730_v45  ;;  %v2198_v0 = vsel %vm2074_vm7, %v2166_v48, %v3759_v9  ;;  %v2109_v10 = vsel %vm2106_vm8, %v2076_v55, %v3614_v62  ;;  %v3774_v58 = vunpack.i.l.bf16 %v6262_v43  ;;  %v7295_v4 = vld [vmem:[#allocation46_spill] sm:$0xff] }
 0x2ad   : > { %v3738_v50 = vpop.permute.xlu1 %3737  ;;  %3439 = vmatpush3.bf16.msra.mxu1 %v6066_v40  ;;  %v2045_v40 = vsel %vm391_vm0, %v7293_v32, %v3729_v33  ;;  %v2230_v60 = vsel %vm2106_vm8, %v2198_v0, %v3770_v52  ;;  %v2068_v5 = vsel %vm391_vm0, %v7294_v49, %v3750_v28  ;;  %v3784_v55 = vunpack.i.l.bf16 %v6278_v22  ;;  %v7296_v32 = vld [vmem:[#allocation28_spill] sm:$0xff] }
 0x2ae   : > { %v3740_v16 = vunpack.i.h.bf16 %v3738_v50  ;;  %v3739_v15 = vunpack.i.l.bf16 %v3738_v50  ;;  %v6389_v26 = vpop.permute.xlu0 %3842  ;;  %3440 = vmatprep.subr.bf16.mxu1 %v4073_v25  ;;  %v2100_v30 = vsel %vm2074_vm7, %v2068_v5, %v3760_v46  ;;  %v3620_v50 = vunpack.i.h.bf16 %v6136_v13 }
 0x2af   : > { %v2144_v46 = vsel %vm391_vm0, %v7263_v29, %v3774_v58  ;;  %v3775_v0 = vunpack.i.h.bf16 %v6262_v43  ;;  %v3799_v43 = vunpack.i.l.bf16 %v6306_v7 }
 0x2b0   : > { %v2077_v23 = vsel %vm2074_vm7, %v2045_v40, %v3739_v15  ;;  %v2197_v31 = vsel %vm2074_vm7, %v2165_v63, %v3740_v16 }
 0x2b1   : > { %v3753_v47 = vpop.permute.xlu1 %3752  ;;  %v2110_v35 = vsel %vm2106_vm8, %v2077_v23, %v3615_v6  ;;  %v2229_v24 = vsel %vm2106_vm8, %v2197_v31, %v3769_v18  ;;  %3441 = vmatpush3.bf16.msra.mxu1 %v4073_v25  ;;  %v3619_v6 = vunpack.i.l.bf16 %v6136_v13  ;;  %v3795_v25 = vunpack.i.h.bf16 %v6294_v51 }
 0x2b2   : > { %v6406_v20 = vpop.permute.xlu0 %3847  ;;  %v2238_v45 = vpack.c.bf16 %v2110_v35, %v2109_v10  ;;  %v2275_v33 = vpack.c.bf16 %v2230_v60, %v2229_v24  ;;  %v3755_v9 = vunpack.i.h.bf16 %v3753_v47  ;;  %v3754_v62 = vunpack.i.l.bf16 %v3753_v47 }
 0x2b3   : > { %v2133_v15 = vsel %vm2106_vm8, %v2100_v30, %v3619_v6  ;;  %v3794_v18 = vunpack.i.l.bf16 %v6294_v51  ;;  %v2176_v13 = vsel %vm2074_vm7, %v2144_v46, %v3784_v55  ;;  %v3785_v47 = vunpack.i.h.bf16 %v6278_v22  ;;  %v7298_v46 = vld [vmem:[#allocation23_spill] sm:$0xff] }
 0x2b4   : > { %2523 = vmatmul.mubr.bf16.gmra.mrb[4].mxu0 %v2238_v45  ;;  %2618 = vmatprep.mubr.bf16.mxu1 %v2275_v33  ;;  %v2143_v63 = vsel %vm391_vm0, %v7295_v4, %v3755_v9  ;;  %v2069_v40 = vsel %vm391_vm0, %v7296_v32, %v3754_v62  ;;  %v2208_v51 = vsel %vm2106_vm8, %v2176_v13, %v3795_v25  ;;  %v7297_v33 = vld [vmem:[#allocation22_spill] sm:$0xff]  ;;  %v3809_v22 = vunpack.i.l.bf16 %v6325_v41 }
 0x2b5   : > { %v3763_v52 = vpop.permute.xlu1 %3762  ;;  %v2046_v30 = vsel %vm391_vm0, %v7297_v33, %v3775_v0  ;;  %v3820_v9 = vunpack.i.h.bf16 %v6345_v37  ;;  %v3625_v6 = vunpack.i.h.bf16 %v6155_v36  ;;  %v3624_v55 = vunpack.i.l.bf16 %v6155_v36 }
 0x2b6   : > { %v3765_v28 = vunpack.i.h.bf16 %v3763_v52  ;;  %v3764_v48 = vunpack.i.l.bf16 %v3763_v52  ;;  %v6414_v16 = vpop.permute.xlu0 %3857  ;;  %v2078_v58 = vsel %vm2074_vm7, %v2046_v30, %v3785_v47  ;;  %v3810_v13 = vunpack.i.h.bf16 %v6325_v41 }
 0x2b7   : > { %v2111_v32 = vsel %vm2106_vm8, %v2078_v58, %v3624_v55  ;;  %v3845_v41 = vunpack.i.h.bf16 %v6389_v26  ;;  %v3825_v33 = vunpack.i.h.bf16 %v6357_v3 }
 0x2b8   : > { %v2101_v23 = vsel %vm2074_vm7, %v2069_v40, %v3764_v48  ;;  %v2175_v31 = vsel %vm2074_vm7, %v2143_v63, %v3765_v28  ;;  %v2168_v28 = vsel %vm391_vm0, %v7265_v56, %v3799_v43  ;;  %v3819_v48 = vunpack.i.l.bf16 %v6345_v37 }
 0x2b9   : > { %v3778_v10 = vpop.permute.xlu1 %3777  ;;  %v2207_v29 = vsel %vm2106_vm8, %v2175_v31, %v3794_v18  ;;  %v2134_v35 = vsel %vm2106_vm8, %v2101_v23, %v3620_v50  ;;  %v2200_v4 = vsel %vm2074_vm7, %v2168_v28, %v3809_v22  ;;  %v3800_v40 = vunpack.i.h.bf16 %v6306_v7 }
 0x2ba   : > { %v6432_v24 = vpop.permute.xlu0 %3862  ;;  %v2242_v60 = vpack.c.bf16 %v2208_v51, %v2207_v29  ;;  %v2274_v49 = vpack.c.bf16 %v2134_v35, %v2133_v15  ;;  %v3780_v5 = vunpack.i.h.bf16 %v3778_v10  ;;  %v3779_v45 = vunpack.i.l.bf16 %v3778_v10 }
 0x2bb   : > { %v3824_v10 = vunpack.i.l.bf16 %v6357_v3  ;;  %v3834_v35 = vunpack.i.l.bf16 %v6376_v53  ;;  %v3630_v7 = vunpack.i.h.bf16 %v6178_v39 }
 0x2bc   : > { %2530 = vmatprep.mubr.bf16.mxu0 %v2242_v60  ;;  %2619 = vmatmul.mubr.bf16.gmra.mrb[4].mxu1 %v2274_v49  ;;  %v2167_v15 = vsel %vm391_vm0, %v7251_v38, %v3780_v5  ;;  %v2047_v18 = vsel %vm391_vm0, %v7298_v46, %v3779_v45  ;;  %v2232_v38 = vsel %vm2106_vm8, %v2200_v4, %v3820_v9  ;;  %v3629_v60 = vunpack.i.l.bf16 %v6178_v39  ;;  %v7299_v49 = vld [vmem:[#allocation20_spill] sm:$0xff] }
 0x2bd   : > { %v3788_v62 = vpop.permute.xlu1 %3787  ;;  %v2070_v43 = vsel %vm391_vm0, %v7299_v49, %v3800_v40  ;;  %v2146_v9 = vsel %vm391_vm0, %v5704_v1, %v3824_v10  ;;  %v7304_v49 = vld [vmem:[#allocation42_spill] sm:$0xff] }
 0x2be   : > { %v3790_v25 = vunpack.i.h.bf16 %v3788_v62  ;;  %v3789_v52 = vunpack.i.l.bf16 %v3788_v62  ;;  %v6442_v50 = vpop.permute.xlu0 %3872  ;;  %v2102_v45 = vsel %vm2074_vm7, %v2070_v43, %v3810_v13  ;;  %v3844_v62 = vunpack.i.l.bf16 %v6389_v26 }
 0x2bf   : > { %v2135_v26 = vsel %vm2106_vm8, %v2102_v45, %v3629_v60  ;;  %v7303_v60 = vld [vmem:[#allocation74_spill] sm:$0xff] }
 0x2c0   : > { %v2079_v63 = vsel %vm2074_vm7, %v2047_v18, %v3789_v52  ;;  %v2199_v36 = vsel %vm2074_vm7, %v2167_v15, %v3790_v25  ;;  %v3835_v25 = vunpack.i.h.bf16 %v6376_v53  ;;  %v2178_v52 = vsel %vm2074_vm7, %v2146_v9, %v3834_v35  ;;  %v7301_v53 = vld [vmem:[#allocation39_spill] sm:$0xff] }
 0x2c1   : > { %v3803_v0 = vpop.permute.xlu1 %3802  ;;  %v2112_v56 = vsel %vm2106_vm8, %v2079_v63, %v3625_v6  ;;  %v2231_v37 = vsel %vm2106_vm8, %v2199_v36, %v3819_v48  ;;  %v7300_v6 = vld [vmem:[#allocation31_spill] sm:$0xff]  ;;  %v2210_v1 = vsel %vm2106_vm8, %v2178_v52, %v3845_v41  ;;  %v2048_v63 = vsel %vm391_vm0, %v7301_v53, %v3825_v33 }
 0x2c2   : > { %v6460_v23 = vpop.permute.xlu0 %3877  ;;  %v2241_v31 = vpack.c.bf16 %v2112_v56, %v2111_v32  ;;  %v2278_v47 = vpack.c.bf16 %v2232_v38, %v2231_v37  ;;  %v3805_v29 = vunpack.i.h.bf16 %v3803_v0  ;;  %v3804_v51 = vunpack.i.l.bf16 %v3803_v0  ;;  %v7302_v35 = vld [vmem:[#allocation75_spill] sm:$0xff] }
 0x2c3   : > { %v3849_v36 = vunpack.i.l.bf16 %v6406_v20  ;;  %v2080_v0 = vsel %vm2074_vm7, %v2048_v63, %v3835_v25  ;;  %v3850_v56 = vunpack.i.h.bf16 %v6406_v20  ;;  %v3634_v37 = vunpack.i.l.bf16 %v6193_v59 }
 0x2c4   : > { %2531 = vmatmul.mubr.bf16.gmra.mrb[8].mxu0 %v2241_v31  ;;  %2626 = vmatprep.mubr.bf16.mxu1 %v2278_v47  ;;  %v2145_v39 = vsel %vm391_vm0, %v5701_v21, %v3805_v29  ;;  %v2071_v55 = vsel %vm391_vm0, %v7300_v6, %v3804_v51  ;;  %v3859_v38 = vunpack.i.l.bf16 %v6414_v16  ;;  %v3635_v31 = vunpack.i.h.bf16 %v6193_v59 }
 0x2c5   : > { %v3813_v5 = vpop.permute.xlu1 %3812  ;;  %v3639_v47 = vunpack.i.l.bf16 %v6207_v61  ;;  %v2113_v41 = vsel %vm2106_vm8, %v2080_v0, %v3634_v37  ;;  %v7306_v37 = vld [vmem:[#allocation51_spill] sm:$0xff] }
 0x2c6   : > { %v3815_v30 = vunpack.i.h.bf16 %v3813_v5  ;;  %v3814_v22 = vunpack.i.l.bf16 %v3813_v5  ;;  %v6471_v58 = vpop.permute.xlu0 %3887  ;;  %v7305_v5 = vld [vmem:[#allocation43_spill] sm:$0xff] }
 0x2c7   : > { %v2072_v59 = vsel %vm391_vm0, %v7305_v5, %v3850_v56  ;;  %v3889_v56 = vunpack.i.l.bf16 %v6471_v58 }
 0x2c8   : > { %v2103_v3 = vsel %vm2074_vm7, %v2071_v55, %v3814_v22  ;;  %v2177_v28 = vsel %vm2074_vm7, %v2145_v39, %v3815_v30  ;;  %v2104_v22 = vsel %vm2074_vm7, %v2072_v59, %v3859_v38 }
 0x2c9   : > { %v3828_v48 = vpop.permute.xlu1 %3827  ;;  %v2209_v15 = vsel %vm2106_vm8, %v2177_v28, %v3844_v62  ;;  %v2136_v21 = vsel %vm2106_vm8, %v2103_v3, %v3630_v7  ;;  %v2170_v7 = vsel %vm391_vm0, %v7302_v35, %v3849_v36 }
 0x2ca   : > { %v6488_v46 = vpop.permute.xlu0 %3897  ;;  %v2245_v18 = vpack.c.bf16 %v2210_v1, %v2209_v15  ;;  %v2277_v4 = vpack.c.bf16 %v2136_v21, %v2135_v26  ;;  %v3830_v32 = vunpack.i.h.bf16 %v3828_v48  ;;  %v3829_v40 = vunpack.i.l.bf16 %v3828_v48 }
 0x2cb   : > { %v3640_v48 = vunpack.i.h.bf16 %v6207_v61  ;;  %v3860_v15 = vunpack.i.h.bf16 %v6414_v16  ;;  %v3864_v1 = vunpack.i.l.bf16 %v6432_v24  ;;  %v3874_v21 = vunpack.i.l.bf16 %v6442_v50 }
 0x2cc   : > { %2538 = vmatprep.mubr.bf16.mxu0 %v2245_v18  ;;  %2627 = vmatmul.mubr.bf16.gmra.mrb[8].mxu1 %v2277_v4  ;;  %v2169_v20 = vsel %vm391_vm0, %v7303_v60, %v3830_v32  ;;  %v2049_v43 = vsel %vm391_vm0, %v7304_v49, %v3829_v40  ;;  %v3880_v40 = vunpack.i.h.bf16 %v6460_v23  ;;  %v3865_v60 = vunpack.i.h.bf16 %v6432_v24 }
 0x2cd   : > { %v3838_v13 = vpop.permute.xlu1 %3837  ;;  %v2137_v53 = vsel %vm2106_vm8, %v2104_v22, %v3640_v48  ;;  %v3890_v48 = vunpack.i.h.bf16 %v6471_v58  ;;  %v7313_v58 = vld [vmem:[#allocation78_spill] sm:$0xff] }
 0x2ce   : > { %v3840_v10 = vunpack.i.h.bf16 %v3838_v13  ;;  %v3839_v29 = vunpack.i.l.bf16 %v3838_v13  ;;  %v6499_v51 = vpop.permute.xlu0 %3902 }
 0x2d0   : > { %v2081_v45 = vsel %vm2074_vm7, %v2049_v43, %v3839_v29  ;;  %v2201_v33 = vsel %vm2074_vm7, %v2169_v20, %v3840_v10  ;;  %v2202_v30 = vsel %vm2074_vm7, %v2170_v7, %v3840_v10  ;;  %v3645_v10 = vunpack.i.h.bf16 %v6218_v11  ;;  %v7309_v20 = vld [vmem:[#allocation52_spill] sm:$0xff] }
 0x2d1   : > { %v3853_v9 = vpop.permute.xlu1 %3852  ;;  %v2114_v62 = vsel %vm2106_vm8, %v2081_v45, %v3635_v31  ;;  %v2233_v39 = vsel %vm2106_vm8, %v2201_v33, %v3639_v47  ;;  %v2234_v6 = vsel %vm2106_vm8, %v2202_v30, %v3639_v47  ;;  %v7308_v31 = vld [vmem:[#allocation41_spill] sm:$0xff]  ;;  %v3879_v29 = vunpack.i.l.bf16 %v6460_v23 }
 0x2d2   : > { %v3855_v55 = vunpack.i.h.bf16 %v3853_v9  ;;  %v3854_v25 = vunpack.i.l.bf16 %v3853_v9  ;;  %v6517_v52 = vpop.permute.xlu0 %3912  ;;  %v2244_v3 = vpack.c.bf16 %v2114_v62, %v2113_v41  ;;  %v2281_v28 = vpack.c.bf16 %v2234_v6, %v2233_v39 }
 0x2d3   : > { %v2051_v49 = vsel %vm391_vm0, %v7309_v20, %v3874_v21  ;;  %v3899_v39 = vunpack.i.l.bf16 %v6488_v46  ;;  %v3650_v21 = vunpack.i.h.bf16 %v6233_v8  ;;  %v3654_v20 = vunpack.i.l.bf16 %v6251_v54 }
 0x2d4   : > { %v2073_v26 = vsel %vm391_vm0, %v5517_v42, %v3854_v25  ;;  %2539 = vmatmul.mubr.bf16.gmra.mrb[12].mxu0 %v2244_v3  ;;  %2634 = vmatprep.mubr.bf16.mxu1 %v2281_v28  ;;  %v2147_v63 = vsel %vm391_vm0, %v5948_v27, %v3855_v55  ;;  %v3644_v42 = vunpack.i.l.bf16 %v6218_v11  ;;  %v7307_v27 = vld [vmem:[#allocation55_spill] sm:$0xff]  ;;  %v2083_v11 = vsel %vm2074_vm7, %v2051_v49, %v3880_v40  ;;  %v7317_v49 = vld [vmem:[#allocation38_spill] sm:$0xff] }
 0x2d5   : > { %v3868_v18 = vpop.permute.xlu1 %3867  ;;  %v2105_v4 = vsel %vm2074_vm7, %v2073_v26, %v3860_v15  ;;  %v2237_v47 = vpack.c.bf16 %v7308_v31, %v7307_v27  ;;  %v2116_v30 = vsel %vm2106_vm8, %v2083_v11, %v3889_v56  ;;  %v3649_v25 = vunpack.i.l.bf16 %v6233_v8 }
 0x2d6   : > { %v3870_v61 = vunpack.i.h.bf16 %v3868_v18  ;;  %v3869_v36 = vunpack.i.l.bf16 %v3868_v18  ;;  %v6529_v16 = vpop.permute.xlu0 %3922  ;;  %v2138_v32 = vsel %vm2106_vm8, %v2105_v4, %v3864_v1  ;;  %v2179_v7 = vsel %vm2074_vm7, %v2147_v63, %v3644_v42  ;;  %v7314_v42 = vld [vmem:[#allocation73_spill] sm:$0xff] }
 0x2d7   : > { %v2280_v0 = vpack.c.bf16 %v2138_v32, %v2137_v53  ;;  %v2211_v45 = vsel %vm2106_vm8, %v2179_v7, %v3865_v60  ;;  %v3905_v28 = vunpack.i.h.bf16 %v6499_v51  ;;  %v3914_v15 = vunpack.i.l.bf16 %v6517_v52  ;;  %v7311_v53 = vld [vmem:[#allocation65_spill] sm:$0xff] }
 0x2d8   : > { %v2050_v38 = vsel %vm391_vm0, %v7306_v37, %v3870_v61  ;;  %v2148_v13 = vsel %vm391_vm0, %v5951_v2, %v3869_v36  ;;  %v3875_v2 = vunpack.i.h.bf16 %v6442_v50  ;;  %v3904_v18 = vunpack.i.l.bf16 %v6499_v51 }
 0x2d9   : > { %v3883_v35 = vpop.permute.xlu1 %3882  ;;  %2635 = vmatmul.mubr.bf16.gmra.mrb[12].mxu1 %v2280_v0  ;;  %v2180_v23 = vsel %vm2074_vm7, %v2148_v13, %v3645_v10  ;;  %v2082_v59 = vsel %vm2074_vm7, %v2050_v38, %v3879_v29  ;;  %v2053_v61 = vsel %vm391_vm0, %v7313_v58, %v3899_v39  ;;  %v3900_v51 = vunpack.i.h.bf16 %v6488_v46 }
 0x2da   : > { %v3885_v43 = vunpack.i.h.bf16 %v3883_v35  ;;  %v3884_v41 = vunpack.i.l.bf16 %v3883_v35  ;;  %v6547_v5 = vpop.permute.xlu0 %3927  ;;  %3442 = vmatprep.mubr.msk.bf16.mxu1 %vm391_vm0, %v2237_v47  ;;  %v2149_v3 = vsel %vm391_vm0, %v6053_v14, %v3875_v2  ;;  %v7310_v14 = vld [vmem:[#allocation54_spill] sm:$0xff]  ;;  %v2085_v0 = vsel %vm2074_vm7, %v2053_v61, %v3905_v28 }
 0x2db   : > { %v7312_v63 = vpack.c.bf16 %v7310_v14, %v7311_v53  ;;  %v2181_v8 = vsel %vm2074_vm7, %v2149_v3, %v3649_v25  ;;  %v2118_v31 = vsel %vm2106_vm8, %v2085_v0, %v3914_v15  ;;  %v3924_v35 = vunpack.i.l.bf16 %v6529_v16  ;;  %v7324_v28 = vld [vmem:[#allocation82_spill] sm:$0xff] }
 0x2dc   : > { %v2212_v24 = vsel %vm2106_vm8, %v2180_v23, %v3884_v41  ;;  %v2115_v33 = vsel %vm2106_vm8, %v2082_v59, %v3885_v43  ;;  %v2213_v38 = vsel %vm2106_vm8, %v2181_v8, %v3890_v48  ;;  %v2151_v43 = vsel %vm391_vm0, %v7317_v49, %v3900_v51  ;;  %v7318_v23 = vld [vmem:[#allocation57_spill] sm:$0xff]  ;;  %v7325_v48 = vld [vmem:[#allocation79_spill] sm:$0xff] }
 0x2dd   : > { %v3893_v22 = vpop.permute.xlu1 %3892  ;;  %v2248_v9 = vpack.c.bf16 %v2212_v24, %v2211_v45  ;;  %v2247_v62 = vpack.c.bf16 %v2116_v30, %v2115_v33  ;;  %v3930_v41 = vunpack.i.h.bf16 %v6547_v5  ;;  %v3915_v2 = vunpack.i.h.bf16 %v6517_v52  ;;  %v7319_v45 = vld [vmem:[#allocation47_spill] sm:$0xff]  ;;  %v7323_v52 = vld [vmem:[#allocation56_spill] sm:$0xff]  ;;  %v7333_v49 = vld [vmem:[#allocation81_spill] sm:$0xff] }
 0x2de   : > { %v3895_v50 = vunpack.i.h.bf16 %v3893_v22  ;;  %v3894_v6 = vunpack.i.l.bf16 %v3893_v22  ;;  %v6559_v55 = vpop.permute.xlu0 %3937  ;;  %v3655_v33 = vunpack.i.h.bf16 %v6251_v54  ;;  %v3929_v30 = vunpack.i.l.bf16 %v6547_v5 }
 0x2df   : > { %2546 = vmatprep.mubr.bf16.mxu0 %v2248_v9  ;;  %v3939_v11 = vunpack.i.l.bf16 %v6559_v55  ;;  %v7320_v9 = vld [vmem:[#allocation84_spill] sm:$0xff]  ;;  %v7326_v15 = vpack.c.bf16 %v7324_v28, %v7325_v48  ;;  %v2183_v54 = vsel %vm2074_vm7, %v2151_v43, %v3654_v20  ;;  %v3925_v5 = vunpack.i.h.bf16 %v6529_v16 }
 0x2e0   : > { %v2052_v1 = vsel %vm391_vm0, %v5894_v57, %v3895_v50  ;;  %v2150_v26 = vsel %vm391_vm0, %v6142_v19, %v3894_v6  ;;  %2547 = vmatmul.mubr.bf16.gmra.mrb[16].mxu0 %v2247_v62  ;;  %v7315_v19 = vld [vmem:[#allocation21_spill] sm:$0xff]  ;;  %v7321_v62 = vld [vmem:[#allocation83_spill] sm:$0xff]  ;;  %v2055_v50 = vsel %vm391_vm0, %v7323_v52, %v3924_v35  ;;  %v3940_v51 = vunpack.i.h.bf16 %v6559_v55  ;;  %v7332_v35 = vld [vmem:[#allocation58_spill] sm:$0xff] }
 0x2e1   : > { %v3908_v4 = vpop.permute.xlu1 %3907  ;;  %3443 = vmatmul.mubr.msk.bf16.vlgmr.msra.gmra.mrb[16].mxu1 %vm391_vm0, %v7312_v63  ;;  %v7316_v40 = vpack.c.bf16 %v7314_v42, %v7315_v19  ;;  %v2182_v56 = vsel %vm2074_vm7, %v2150_v26, %v3650_v21  ;;  %v2084_v37 = vsel %vm2074_vm7, %v2052_v1, %v3904_v18  ;;  %v7322_v39 = vpack.c.bf16 %v7320_v9, %v7321_v62  ;;  %v7335_v52 = vld [vmem:[#allocation40_spill] sm:$0xff] }
 0x2e2   : > { %v3910_v36 = vunpack.i.h.bf16 %v3908_v4  ;;  %v3909_v32 = vunpack.i.l.bf16 %v3908_v4  ;;  %v6579_v57 = vpop.permute.xlu0 %3947  ;;  %v2087_v1 = vsel %vm2074_vm7, %v2055_v50, %v3930_v41  ;;  %v2215_v18 = vsel %vm2106_vm8, %v2183_v54, %v3915_v2  ;;  %v7336_v28 = vld [vmem:[#allocation60_spill] sm:$0xff] }
 0x2e3   : > { %3446 = vmatprep.mubr.msk.bf16.mxu1 %vm391_vm0, %v7316_v40  ;;  %v2120_v53 = vsel %vm2106_vm8, %v2087_v1, %v3939_v11  ;;  %v3659_v19 = vunpack.i.l.bf16 %v6267_v17  ;;  %v2153_v40 = vsel %vm391_vm0, %v6126_v34, %v3925_v5  ;;  %v7334_v43 = vpack.c.bf16 %v5995_v44, %v7333_v49 }
 0x2e4   : > { %v2214_v13 = vsel %vm2106_vm8, %v2182_v56, %v3909_v32  ;;  %v2117_v27 = vsel %vm2106_vm8, %v2084_v37, %v3910_v36  ;;  %v3949_v36 = vunpack.i.l.bf16 %v6579_v57  ;;  %v7327_v56 = vld [vmem:[#allocation59_spill] sm:$0xff]  ;;  %v3665_v1 = vunpack.i.h.bf16 %v6280_v12 }
 0x2e5   : > { %v3918_v47 = vpop.permute.xlu1 %3917  ;;  %v2251_v10 = vpack.c.bf16 %v2214_v13, %v2213_v38  ;;  %v2250_v29 = vpack.c.bf16 %v2118_v31, %v2117_v27  ;;  %v7328_v38 = vld [vmem:[#allocation50_spill] sm:$0xff]  ;;  %v3660_v27 = vunpack.i.h.bf16 %v6267_v17  ;;  %v2185_v17 = vsel %vm2074_vm7, %v2153_v40, %v3659_v19 }
 0x2e6   : > { %v3920_v46 = vunpack.i.h.bf16 %v3918_v47  ;;  %v3919_v7 = vunpack.i.l.bf16 %v3918_v47  ;;  %v3953_v60 = vpop.permute.xlu0 %3952  ;;  %v2057_v55 = vsel %vm391_vm0, %v7332_v35, %v3949_v36  ;;  %v7342_v36 = vld [vmem:[#allocation90_spill] sm:$0xff] }
 0x2e7   : > { %2554 = vmatprep.mubr.bf16.mxu0 %v2251_v10  ;;  %v3955_v8 = vunpack.i.h.bf16 %v3953_v60  ;;  %v3954_v31 = vunpack.i.l.bf16 %v3953_v60  ;;  %v7329_v10 = vld [vmem:[#allocation86_spill] sm:$0xff]  ;;  %v3950_v60 = vunpack.i.h.bf16 %v6579_v57 }
 0x2e8   : > { %v2054_v59 = vsel %vm391_vm0, %v7318_v23, %v3920_v46  ;;  %v2152_v24 = vsel %vm391_vm0, %v7319_v45, %v3919_v7  ;;  %2555 = vmatmul.mubr.bf16.gmra.mrb[20].mxu0 %v2250_v29  ;;  %v7330_v29 = vld [vmem:[#allocation80_spill] sm:$0xff]  ;;  %v2217_v23 = vsel %vm2106_vm8, %v2185_v17, %v3940_v51 }
 0x2e9   : > { %v3933_v22 = vpop.permute.xlu1 %3932  ;;  %3447 = vmatmul.mubr.msk.bf16.gmra.mrb[20].mxu1 %vm391_vm0, %v7322_v39  ;;  %v2184_v26 = vsel %vm2074_vm7, %v2152_v24, %v3655_v33  ;;  %v2086_v21 = vsel %vm2074_vm7, %v2054_v59, %v3929_v30  ;;  %v7331_v34 = vpack.c.bf16 %v7329_v10, %v7330_v29  ;;  %v2089_v41 = vsel %vm2074_vm7, %v2057_v55, %v3955_v8  ;;  %v7345_v29 = vld [vmem:[#allocation36_spill] sm:$0xff] }
 0x2ea   : > { %v3935_v6 = vunpack.i.h.bf16 %v3933_v22  ;;  %v3934_v25 = vunpack.i.l.bf16 %v3933_v22  ;;  %v6613_v3 = vpop.permute.xlu0 %3962  ;;  %3450 = vmatprep.mubr.msk.bf16.mxu1 %vm391_vm0, %v7326_v15  ;;  %v3664_v39 = vunpack.i.l.bf16 %v6280_v12  ;;  %v2155_v50 = vsel %vm391_vm0, %v7335_v52, %v3950_v60  ;;  %v7337_v15 = vld [vmem:[#allocation53_spill] sm:$0xff]  ;;  %v7347_v55 = vld [vmem:[#allocation96_spill] sm:$0xff]  ;;  %v7349_v60 = vld [vmem:[#allocation66_spill] sm:$0xff] }
 0x2eb   : > { %v3964_v0 = vunpack.i.l.bf16 %v6613_v3 }
 0x2ec   : > { %v2216_v4 = vsel %vm2106_vm8, %v2184_v26, %v3934_v25  ;;  %v2119_v14 = vsel %vm2106_vm8, %v2086_v21, %v3935_v6  ;;  %v3965_v25 = vunpack.i.h.bf16 %v6613_v3  ;;  %v2187_v12 = vsel %vm2074_vm7, %v2155_v50, %v3664_v39  ;;  %v7354_v39 = vld [vmem:[#allocation67_spill] sm:$0xff] }
 0x2ed   : > { %v3943_v63 = vpop.permute.xlu1 %3942  ;;  %v2254_v58 = vpack.c.bf16 %v2216_v4, %v2215_v18  ;;  %v2253_v61 = vpack.c.bf16 %v2120_v53, %v2119_v14  ;;  %v2122_v44 = vsel %vm2106_vm8, %v2089_v41, %v3964_v0  ;;  %v7338_v18 = vld [vmem:[#allocation87_spill] sm:$0xff]  ;;  %v7339_v4 = vld [vmem:[#allocation85_spill] sm:$0xff] }
 0x2ee   : > { %v3945_v16 = vunpack.i.h.bf16 %v3943_v63  ;;  %v3944_v32 = vunpack.i.l.bf16 %v3943_v63  ;;  %v6629_v42 = vpop.permute.xlu0 %3972  ;;  %v7340_v14 = vpack.c.bf16 %v7338_v18, %v7339_v4  ;;  %v7341_v53 = vld [vmem:[#allocation61_spill] sm:$0xff]  ;;  %v2219_v0 = vsel %vm2106_vm8, %v2187_v12, %v3965_v25 }
 0x2ef   : > { %2562 = vmatprep.mubr.bf16.mxu0 %v2254_v58  ;;  %v3974_v22 = vunpack.i.l.bf16 %v6629_v42  ;;  %v3975_v19 = vunpack.i.h.bf16 %v6629_v42  ;;  %v7360_v12 = vld [vmem:[#allocation97_spill] sm:$0xff] }
 0x2f0   : > { %v2056_v37 = vsel %vm391_vm0, %v7327_v56, %v3945_v16  ;;  %v2154_v13 = vsel %vm391_vm0, %v7328_v38, %v3944_v32  ;;  %2563 = vmatmul.mubr.bf16.gmra.mrb[24].mxu0 %v2253_v61  ;;  %v7343_v16 = vld [vmem:[#allocation88_spill] sm:$0xff] }
 0x2f1   : > { %v3958_v47 = vpop.permute.xlu1 %3957  ;;  %3451 = vmatmul.mubr.msk.bf16.gmra.mrb[24].mxu1 %vm391_vm0, %v7331_v34  ;;  %v2186_v2 = vsel %vm2074_vm7, %v2154_v13, %v3660_v27  ;;  %v2088_v11 = vsel %vm2074_vm7, %v2056_v37, %v3954_v31  ;;  %v2059_v3 = vsel %vm391_vm0, %v7341_v53, %v3974_v22  ;;  %v7344_v32 = vpack.c.bf16 %v7342_v36, %v7343_v16  ;;  %v7346_v34 = vld [vmem:[#allocation63_spill] sm:$0xff]  ;;  %v7358_v36 = vld [vmem:[#allocation72_spill] sm:$0xff]  ;;  %v7359_v16 = vld [vmem:[#allocation45_spill] sm:$0xff] }
 0x2f2   : > { %v3960_v46 = vunpack.i.h.bf16 %v3958_v47  ;;  %v3959_v7 = vunpack.i.l.bf16 %v3958_v47  ;;  %v3978_v20 = vpop.permute.xlu0 %3977  ;;  %3454 = vmatprep.mubr.msk.bf16.mxu1 %vm391_vm0, %v7334_v43  ;;  %v2267_v35 = vpack.c.bf16 %v7346_v34, %v7345_v29  ;;  %v7362_v34 = vld [vmem:[#allocation68_spill] sm:$0xff] }
 0x2f3   : > { %v3980_v6 = vunpack.i.h.bf16 %v3978_v20  ;;  %v3979_v26 = vunpack.i.l.bf16 %v3978_v20 }
 0x2f4   : > { %v2218_v59 = vsel %vm2106_vm8, %v2186_v2, %v3959_v7  ;;  %v2121_v45 = vsel %vm2106_vm8, %v2088_v11, %v3960_v46  ;;  %v3669_v46 = vunpack.i.l.bf16 %v7347_v55  ;;  %v7348_v7 = vld [vmem:[#allocation92_spill] sm:$0xff]  ;;  %v7350_v2 = vld [vmem:[#allocation94_spill] sm:$0xff] }
 0x2f5   : > { %v3968_v24 = vpop.permute.xlu1 %3967  ;;  %v2257_v33 = vpack.c.bf16 %v2218_v59, %v2217_v23  ;;  %v2256_v30 = vpack.c.bf16 %v2122_v44, %v2121_v45  ;;  %v2091_v40 = vsel %vm2074_vm7, %v2059_v3, %v3980_v6  ;;  %v2157_v20 = vsel %vm391_vm0, %v7348_v7, %v3975_v19  ;;  %v7351_v44 = vld [vmem:[#allocation91_spill] sm:$0xff] }
 0x2f6   : > { %v3970_v57 = vunpack.i.h.bf16 %v3968_v24  ;;  %v3969_v9 = vunpack.i.l.bf16 %v3968_v24  ;;  %v3988_v62 = vpop.permute.xlu0 %3987  ;;  %v3670_v59 = vunpack.i.h.bf16 %v7347_v55  ;;  %v7352_v24 = vld [vmem:[#allocation89_spill] sm:$0xff]  ;;  %v3674_v19 = vunpack.i.l.bf16 %v7360_v12 }
 0x2f7   : > { %2570 = vmatprep.mubr.bf16.mxu0 %v2257_v33  ;;  %v3989_v5 = vunpack.i.l.bf16 %v3988_v62  ;;  %v3990_v17 = vunpack.i.h.bf16 %v3988_v62  ;;  %v7353_v33 = vpack.c.bf16 %v7351_v44, %v7352_v24  ;;  %v2189_v62 = vsel %vm2074_vm7, %v2157_v20, %v3669_v46  ;;  %v7363_v46 = vld [vmem:[#allocation69_spill] sm:$0xff]  ;;  %v7365_v44 = vld [vmem:[#allocation35_spill] sm:$0xff] }
 0x2f8   : > { %v2058_v48 = vsel %vm391_vm0, %v7336_v28, %v3970_v57  ;;  %v2156_v54 = vsel %vm391_vm0, %v7337_v15, %v3969_v9  ;;  %2571 = vmatmul.mubr.bf16.gmra.mrb[28].mxu0 %v2256_v30 }
 0x2f9   : > { %v3983_v21 = vpop.permute.xlu1 %3982  ;;  %3455 = vmatmul.mubr.msk.bf16.gmra.mrb[28].mxu1 %vm391_vm0, %v7340_v14  ;;  %v2188_v8 = vsel %vm2074_vm7, %v2156_v54, %v3665_v1  ;;  %v2090_v51 = vsel %vm2074_vm7, %v2058_v48, %v3979_v26  ;;  %v2124_v38 = vsel %vm2106_vm8, %v2091_v40, %v3989_v5  ;;  %v2221_v48 = vsel %vm2106_vm8, %v2189_v62, %v3990_v17  ;;  %v7355_v14 = vld [vmem:[#allocation93_spill] sm:$0xff] }
 0x2fa   : > { %v3985_v63 = vunpack.i.h.bf16 %v3983_v21  ;;  %v3984_v58 = vunpack.i.l.bf16 %v3983_v21  ;;  %v3998_v61 = vpop.permute.xlu0 %3997  ;;  %3458 = vmatprep.mubr.msk.bf16.mxu1 %vm391_vm0, %v7344_v32  ;;  %v2273_v32 = vpack.c.bf16 %v7359_v16, %v7358_v36  ;;  %v7376_v16 = vld [vmem:[#allocation27_spill] sm:$0xff] }
 0x2fb   : > { %v3999_v49 = vunpack.i.l.bf16 %v3998_v61  ;;  %v4000_v30 = vunpack.i.h.bf16 %v3998_v61 }
 0x2fc   : > { %v2220_v56 = vsel %vm2106_vm8, %v2188_v8, %v3984_v58  ;;  %v2123_v37 = vsel %vm2106_vm8, %v2090_v51, %v3985_v63  ;;  %v7356_v63 = vld [vmem:[#allocation48_spill] sm:$0xff]  ;;  %v7357_v58 = vld [vmem:[#allocation33_spill] sm:$0xff]  ;;  %v7361_v8 = vld [vmem:[#allocation95_spill] sm:$0xff] }
 0x2fd   : > { %v3993_v13 = vpop.permute.xlu1 %3992  ;;  %v2260_v27 = vpack.c.bf16 %v2220_v56, %v2219_v0  ;;  %v2259_v31 = vpack.c.bf16 %v2124_v38, %v2123_v37  ;;  %v2061_v52 = vsel %vm391_vm0, %v7354_v39, %v3999_v49  ;;  %v2159_v53 = vsel %vm391_vm0, %v7355_v14, %v4000_v30  ;;  %v7368_v39 = vld [vmem:[#allocation64_spill] sm:$0xff] }
 0x2fe   : > { %v3995_v47 = vunpack.i.h.bf16 %v3993_v13  ;;  %v3994_v10 = vunpack.i.l.bf16 %v3993_v13  ;;  %v4003_v42 = vpop.permute.xlu0 %4002  ;;  %v2270_v61 = vpack.c.bf16 %v7357_v58, %v7356_v63  ;;  %v3675_v56 = vunpack.i.h.bf16 %v7360_v12 }
 0x2ff   : > { %v4004_v43 = vunpack.i.l.bf16 %v4003_v42  ;;  %2578 = vmatprep.mubr.bf16.mxu0 %v2260_v27  ;;  %v4005_v23 = vunpack.i.h.bf16 %v4003_v42 }
 0x300   : > { %v2060_v41 = vsel %vm391_vm0, %v7349_v60, %v3995_v47  ;;  %v2158_v11 = vsel %vm391_vm0, %v7350_v2, %v3994_v10  ;;  %2579 = vmatmul.mubr.bf16.gmra.mrb[32].mxu0 %v2259_v31  ;;  %v2191_v31 = vsel %vm2074_vm7, %v2159_v53, %v3674_v19 }
 0x301   : > { %v4008_v45 = vpop.permute.xlu1 %4007  ;;  %3459 = vmatmul.mubr.msk.bf16.gmra.mrb[32].mxu1 %vm391_vm0, %v7353_v33  ;;  %v2092_v50 = vsel %vm2074_vm7, %v2060_v41, %v4004_v43  ;;  %v2190_v25 = vsel %vm2074_vm7, %v2158_v11, %v3670_v59  ;;  %v2093_v28 = vsel %vm2074_vm7, %v2061_v52, %v4005_v23  ;;  %v7364_v23 = vld [vmem:[#allocation30_spill] sm:$0xff]  ;;  %v7369_v52 = vld [vmem:[#allocation49_spill] sm:$0xff] }
 0x302   : > { %v4010_v22 = vunpack.i.h.bf16 %v4008_v45  ;;  %v4009_v57 = vunpack.i.l.bf16 %v4008_v45  ;;  %v4013_v9 = vpop.permute.xlu0 %4012  ;;  %3462 = vmatprep.mubr.msk.bf16.mxu1 %vm391_vm0, %v2267_v35  ;;  %v7366_v33 = vld [vmem:[#allocation62_spill] sm:$0xff] }
 0x303   : > { %v4014_v6 = vunpack.i.l.bf16 %v4013_v9  ;;  %v4015_v3 = vunpack.i.h.bf16 %v4013_v9 }
 0x304   : > { %v2222_v15 = vsel %vm2106_vm8, %v2190_v25, %v4009_v57  ;;  %v2125_v54 = vsel %vm2106_vm8, %v2092_v50, %v4010_v22  ;;  %v7367_v22 = vld [vmem:[#allocation98_spill] sm:$0xff]  ;;  %v7370_v50 = vpack.c.bf16 %v7368_v39, %v7369_v52 }
 0x305   : > { %v4018_v5 = vpop.permute.xlu1 %4017  ;;  %v2263_v1 = vpack.c.bf16 %v2222_v15, %v2221_v48  ;;  %v2126_v26 = vsel %vm2106_vm8, %v2093_v28, %v4014_v6  ;;  %v2223_v29 = vsel %vm2106_vm8, %v2191_v31, %v4015_v3  ;;  %v3680_v57 = vunpack.i.h.bf16 %v7367_v22  ;;  %v7371_v48 = vld [vmem:[#allocation76_spill] sm:$0xff]  ;;  %v7372_v15 = vld [vmem:[#allocation77_spill] sm:$0xff]  ;;  %v7374_v3 = vld [vmem:[#allocation19_spill] sm:$0xff] }
 0x306   : > { %v4019_v21 = vunpack.i.l.bf16 %v4018_v5  ;;  %v4023_v18 = vpop.permute.xlu0 %4022  ;;  %v2262_v4 = vpack.c.bf16 %v2126_v26, %v2125_v54  ;;  %v4020_v40 = vunpack.i.h.bf16 %v4018_v5  ;;  %v3679_v9 = vunpack.i.l.bf16 %v7367_v22 }
 0x307   : > { %2586 = vmatprep.mubr.bf16.mxu0 %v2263_v1  ;;  %v4024_v0 = vunpack.i.l.bf16 %v4023_v18  ;;  %v4025_v55 = vunpack.i.h.bf16 %v4023_v18  ;;  %v7373_v54 = vpack.c.bf16 %v7371_v48, %v7372_v15  ;;  %v2282_v63 = vpack.c.bf16 %v7374_v3, %v7374_v3 }
 0x308   : > { %v2160_v51 = vsel %vm391_vm0, %v7361_v8, %v4019_v21  ;;  %2587 = vmatmul.mubr.bf16.gmra.mrb[36].mxu0 %v2262_v4  ;;  %v2062_v35 = vsel %vm391_vm0, %v7362_v34, %v4020_v40 }
 0x309   : > { %v4033_v37 = vpop.permute.xlu1 %4032  ;;  %3463 = vmatmul.mubr.msk.bf16.gmra.mrb[36].mxu1 %vm391_vm0, %v2270_v61  ;;  %v2192_v42 = vsel %vm2074_vm7, %v2160_v51, %v3675_v56  ;;  %v2063_v7 = vsel %vm391_vm0, %v7363_v46, %v4024_v0  ;;  %v2161_v24 = vsel %vm391_vm0, %v7365_v44, %v4025_v55  ;;  %v7375_v61 = vld [vmem:[#allocation70_spill] sm:$0xff] }
 0x30a   : > { %v4035_v38 = vunpack.i.h.bf16 %v4033_v37  ;;  %v4034_v13 = vunpack.i.l.bf16 %v4033_v37  ;;  %v4028_v27 = vpop.permute.xlu0 %4027  ;;  %3466 = vmatprep.mubr.msk.bf16.mxu1 %vm391_vm0, %v2273_v32  ;;  %v2193_v1 = vsel %vm2074_vm7, %v2161_v24, %v3679_v9 }
 0x30b   : > { %v4030_v47 = vunpack.i.h.bf16 %v4028_v27  ;;  %v4029_v10 = vunpack.i.l.bf16 %v4028_v27 }
 0x30c   : > { %v2224_v20 = vsel %vm2106_vm8, %v2192_v42, %v4034_v13 }
 0x30d   : > { %v2094_v49 = vsel %vm2074_vm7, %v2062_v35, %v4029_v10  ;;  %v2095_v43 = vsel %vm2074_vm7, %v2063_v7, %v4030_v47  ;;  %v4038_v17 = vpop.permute.xlu1 %4037  ;;  %v2266_v60 = vpack.c.bf16 %v2224_v20, %v2223_v29 }
 0x30e   : > { %v4039_v41 = vunpack.i.l.bf16 %v4038_v17  ;;  %v1524_v2 = vpop.permute.xlu0 %1523  ;;  %v2127_v11 = vsel %vm2106_vm8, %v2094_v49, %v4035_v38  ;;  %v2128_v59 = vsel %vm2106_vm8, %v2095_v43, %v7364_v23  ;;  %v4040_v5 = vunpack.i.h.bf16 %v4038_v17 }
 0x30f   : > { %2594 = vmatprep.mubr.bf16.mxu0 %v2266_v60  ;;  %v2265_v45 = vpack.c.bf16 %v2128_v59, %v2127_v11  ;;  %v2065_v32 = vsel %vm391_vm0, %v7376_v16, %v1524_v2 }
 0x310   : > { %v2162_v30 = vsel %vm391_vm0, %v7366_v33, %v4039_v41  ;;  %v2064_v36 = vsel %vm391_vm0, %v7375_v61, %v4040_v5  ;;  %v6791_v61 = vld [vmem:[%s323_s29] ss:$0 sm:$0xff] }
 0x311   : > { %2595 = vmatmul.mubr.bf16.gmra.mrb[40].mxu0 %v2265_v45  ;;  %v4048_v62 = vpop.permute.xlu1 %4047  ;;  %3467 = vmatmul.mubr.msk.bf16.gmra.mrb[40].mxu1 %vm391_vm0, %v7370_v50  ;;  %v2194_v26 = vsel %vm2074_vm7, %v2162_v30, %v3680_v57 }
 0x312   : > { %v4050_v6 = vunpack.i.h.bf16 %v4048_v62  ;;  %v4049_v25 = vunpack.i.l.bf16 %v4048_v62  ;;  %v4043_v28 = vpop.permute.xlu0 %4042  ;;  %3470 = vmatprep.mubr.msk.bf16.mxu1 %vm391_vm0, %v7373_v54 }
 0x313   : > { %v4045_v21 = vunpack.i.h.bf16 %v4043_v28  ;;  %v4044_v18 = vunpack.i.l.bf16 %v4043_v28 }
 0x314   : > { %v2225_v4 = vsel %vm2106_vm8, %v2193_v1, %v4049_v25  ;;  %v2226_v14 = vsel %vm2106_vm8, %v2194_v26, %v4050_v6 }
 0x315   : > { %v2269_v53 = vpack.c.bf16 %v2226_v14, %v2225_v4  ;;  %v2097_v40 = vsel %vm2074_vm7, %v2065_v32, %v4045_v21  ;;  %v2096_v8 = vsel %vm2074_vm7, %v2064_v36, %v4044_v18  ;;  %v6786_v14 = vld [vmem:[#allocation10] ss:$0 sm:$0xff] }
 0x316   : > { %v4053_v58 = vpop.permute.xlu0 %4052 }
 0x317   : > { %v4055_v12 = vunpack.i.h.bf16 %v4053_v58  ;;  %v4054_v19 = vunpack.i.l.bf16 %v4053_v58  ;;  %2602 = vmatprep.mubr.bf16.mxu0 %v2269_v53 }
 0x319   : > { %3471 = vmatmul.mubr.msk.bf16.gmra.mrb[44].mxu1 %vm391_vm0, %v2282_v63  ;;  %v2129_v51 = vsel %vm2106_vm8, %v2096_v8, %v4054_v19  ;;  %v2130_v0 = vsel %vm2106_vm8, %v2097_v40, %v4055_v12 }
 0x31a   : > { %v2268_v56 = vpack.c.bf16 %v2130_v0, %v2129_v51 }
 0x31c   : > { %2603 = vmatmul.mubr.bf16.gmra.mrb[44].mxu0 %v2268_v56 }
 0x379   : > { %v3324_v37 = vpop.f32.mrb[0].mxu0 }
 0x37a   : > { %v3325_v38 = vpop.f32.mrb[1].mxu0 }
 0x37b   : > { %v3326_v13 = vadd.f32 %v3325_v38, %v3324_v37  ;;  %v3327_v27 = vpop.f32.mrb[2].mxu0 }
 0x37c   : > { %v3328_v31 = vpop.f32.mrb[3].mxu0 }
 0x37d   : > { %v3329_v47 = vadd.f32 %v3328_v31, %v3327_v27  ;;  %v2517_v36 = vadd.f32 %v3326_v13, %v6786_v14 }
 0x37f   : > { %v3396_v10 = vpop.f32.mrb[0].mxu1  ;;  %v2520_v56 = vadd.f32 %v3329_v47, %v6786_v14 }
 0x380   : > { %v3397_v42 = vpop.f32.mrb[1].mxu1 }
 0x381   : > { %v6768_v29 = vadd.f32 %v3397_v42, %v3396_v10  ;;  %v3399_v34 = vpop.f32.mrb[2].mxu1 }
 0x382   : > { %v3400_v35 = vpop.f32.mrb[3].mxu1 }
 0x383   : > { %v6770_v55 = vadd.f32 %v3400_v35, %v3399_v34 }
 0x387   : > { %v3330_v46 = vpop.f32.mrb[4].mxu0 }
 0x388   : > { %v3331_v7 = vpop.f32.mrb[5].mxu0 }
 0x389   : > { %v3332_v20 = vadd.f32 %v3331_v7, %v3330_v46  ;;  %v3333_v49 = vpop.f32.mrb[6].mxu0 }
 0x38a   : > { %v3334_v43 = vpop.f32.mrb[7].mxu0 }
 0x38b   : > { %v3335_v17 = vadd.f32 %v3334_v43, %v3333_v49  ;;  %v2525_v3 = vadd.f32 %v3332_v20, %v6786_v14 }
 0x38d   : > { %v2528_v40 = vadd.f32 %v3335_v17, %v6786_v14 }
 0x38f   : > { %v3402_v60 = vpop.f32.mrb[4].mxu1 }
 0x390   : > { %v3403_v41 = vpop.f32.mrb[5].mxu1 }
 0x391   : > { %v6772_v2 = vadd.f32 %v3403_v41, %v3402_v60  ;;  %v3405_v11 = vpop.f32.mrb[6].mxu1 }
 0x392   : > { %v3406_v23 = vpop.f32.mrb[7].mxu1 }
 0x393   : > { %v6774_v59 = vadd.f32 %v3406_v23, %v3405_v11 }
 0x397   : > { %v3336_v45 = vpop.f32.mrb[8].mxu0 }
 0x398   : > { %v3337_v44 = vpop.f32.mrb[9].mxu0 }
 0x399   : > { %v3338_v24 = vadd.f32 %v3337_v44, %v3336_v45  ;;  %v3339_v33 = vpop.f32.mrb[10].mxu0 }
 0x39a   : > { %v3340_v30 = vpop.f32.mrb[11].mxu0 }
 0x39b   : > { %v6776_v22 = vadd.f32 %v3340_v30, %v3339_v33  ;;  %v2533_v60 = vadd.f32 %v3338_v24, %v6786_v14 }
 0x39f   : > { %v3408_v57 = vpop.f32.mrb[8].mxu1 }
 0x3a0   : > { %v3409_v9 = vpop.f32.mrb[9].mxu1 }
 0x3a1   : > { %v6778_v62 = vadd.f32 %v3409_v9, %v3408_v57  ;;  %v3411_v39 = vpop.f32.mrb[10].mxu1  ;;  %v2536_v9 = vadd.f32 %v6776_v22, %v6786_v14 }
 0x3a2   : > { %v3412_v52 = vpop.f32.mrb[11].mxu1 }
 0x3a3   : > { %v6780_v50 = vadd.f32 %v3412_v52, %v3411_v39 }
 0x3a7   : > { %v3342_v6 = vpop.f32.mrb[12].mxu0 }
 0x3a8   : > { %v3343_v25 = vpop.f32.mrb[13].mxu0 }
 0x3a9   : > { %v3344_v28 = vadd.f32 %v3343_v25, %v3342_v6  ;;  %v3345_v48 = vpop.f32.mrb[14].mxu0 }
 0x3aa   : > { %v3346_v15 = vpop.f32.mrb[15].mxu0 }
 0x3ab   : > { %v3347_v54 = vadd.f32 %v3346_v15, %v3345_v48  ;;  %v2541_v20 = vadd.f32 %v3344_v28, %v6786_v14 }
 0x3ac   : > { %v3414_v5 = vpop.f32.mrb[12].mxu1 }
 0x3ad   : > { %v3415_v1 = vpop.f32.mrb[13].mxu1  ;;  %v2544_v44 = vadd.f32 %v3347_v54, %v6786_v14 }
 0x3ae   : > { %v6782_v26 = vadd.f32 %v3415_v1, %v3414_v5  ;;  %v3417_v21 = vpop.f32.mrb[14].mxu1 }
 0x3af   : > { %v3418_v18 = vpop.f32.mrb[15].mxu1 }
 0x3b0   : > { %v6784_v4 = vadd.f32 %v3418_v18, %v3417_v21 }
 0x3b3   : > { %v3348_v53 = vpop.f32.mrb[16].mxu0 }
 0x3b4   : > { %v3349_v63 = vpop.f32.mrb[17].mxu0  ;;  %v3444_v58 = vpop.f32.mrb[16].mxu1 }
 0x3b5   : > { %v3350_v16 = vadd.f32 %v3349_v63, %v3348_v53  ;;  %v2686_v32 = vadd.f32 %v3444_v58, %v2525_v3  ;;  %v3351_v12 = vpop.f32.mrb[18].mxu0  ;;  %v2677_v19 = vpop.f32.mrb[17].mxu1 }
 0x3b6   : > { %v2678_v8 = vadd.f32 %v2677_v19, %v2517_v36  ;;  %v3352_v51 = vpop.f32.mrb[19].mxu0  ;;  %v3445_v0 = vpop.f32.mrb[18].mxu1 }
 0x3b7   : > { %v2813_v37 = vadd.f32 %v6791_v61, %v2686_v32  ;;  %v3353_v38 = vadd.f32 %v3352_v51, %v3351_v12  ;;  %v2689_v27 = vadd.f32 %v3445_v0, %v2528_v40  ;;  %v2680_v31 = vpop.f32.mrb[19].mxu1  ;;  %v2549_v63 = vadd.f32 %v3350_v16, %v6786_v14 }
 0x3b8   : > { %v2811_v13 = vadd.f32 %v6791_v61, %v2678_v8  ;;  %v2681_v10 = vadd.f32 %v2680_v31, %v2520_v56 }
 0x3b9   : > { %v3277_v42 = vpack.c.bf16 %v2813_v37, %v2813_v37  ;;  %v2814_v34 = vadd.f32 %v6791_v61, %v2689_v27  ;;  %v2552_v0 = vadd.f32 %v3353_v38, %v6786_v14 }
 0x3ba   : > { %v3275_v35 = vpack.c.bf16 %v2811_v13, %v2811_v13  ;;  %v2812_v46 = vadd.f32 %v6791_v61, %v2681_v10 }
 0x3bb   : > { %2974 = vst.msk [vmem:[%s6801_s9 + $0x8] sm:$0xf] %vm2971_vm9, %v3277_v42  ;;  %v3278_v47 = vpack.c.bf16 %v2814_v34, %v2814_v34  ;;  %v3354_v7 = vpop.f32.mrb[20].mxu0 }
 0x3bc   : > { %2972 = vst.msk [vmem:[%s6801_s9] sm:$0xf] %vm2971_vm9, %v3275_v35  ;;  %v3276_v49 = vpack.c.bf16 %v2812_v46, %v2812_v46  ;;  %v3355_v43 = vpop.f32.mrb[21].mxu0  ;;  %v3448_v17 = vpop.f32.mrb[20].mxu1 }
 0x3bd   : > { %2975 = vst.msk [vmem:[%s6801_s9 + $0xc] sm:$0xf] %vm2971_vm9, %v3278_v47  ;;  %v3356_v41 = vadd.f32 %v3355_v43, %v3354_v7  ;;  %v2702_v11 = vadd.f32 %v3448_v17, %v2541_v20  ;;  %v3357_v23 = vpop.f32.mrb[22].mxu0  ;;  %v2693_v45 = vpop.f32.mrb[21].mxu1 }
 0x3be   : > { %2973 = vst.msk [vmem:[%s6801_s9 + $0x4] sm:$0xf] %vm2971_vm9, %v3276_v49  ;;  %v2694_v33 = vadd.f32 %v2693_v45, %v2533_v60  ;;  %v3358_v30 = vpop.f32.mrb[23].mxu0  ;;  %v3449_v57 = vpop.f32.mrb[22].mxu1 }
 0x3bf   : > { %v2817_v24 = vadd.f32 %v6791_v61, %v2702_v11  ;;  %v3359_v39 = vadd.f32 %v3358_v30, %v3357_v23  ;;  %v2705_v52 = vadd.f32 %v3449_v57, %v2544_v44  ;;  %v2696_v6 = vpop.f32.mrb[23].mxu1  ;;  %v2557_v21 = vadd.f32 %v3356_v41, %v6786_v14 }
 0x3c0   : > { %v2815_v25 = vadd.f32 %v6791_v61, %v2694_v33  ;;  %v2697_v28 = vadd.f32 %v2696_v6, %v2536_v9 }
 0x3c1   : > { %v3281_v48 = vpack.c.bf16 %v2817_v24, %v2817_v24  ;;  %v2818_v15 = vadd.f32 %v6791_v61, %v2705_v52  ;;  %v2560_v19 = vadd.f32 %v3359_v39, %v6786_v14 }
 0x3c2   : > { %v3279_v54 = vpack.c.bf16 %v2815_v25, %v2815_v25  ;;  %v2816_v5 = vadd.f32 %v6791_v61, %v2697_v28 }
 0x3c3   : > { %2978 = vst.msk [vmem:[%s6801_s9 + $0x18] sm:$0xf] %vm2971_vm9, %v3281_v48  ;;  %v3282_v1 = vpack.c.bf16 %v2818_v15, %v2818_v15  ;;  %v3360_v22 = vpop.f32.mrb[24].mxu0 }
 0x3c4   : > { %2976 = vst.msk [vmem:[%s6801_s9 + $0x10] sm:$0xf] %vm2971_vm9, %v3279_v54  ;;  %v3280_v18 = vpack.c.bf16 %v2816_v5, %v2816_v5  ;;  %v3361_v53 = vpop.f32.mrb[25].mxu0  ;;  %v3452_v3 = vpop.f32.mrb[24].mxu1 }
 0x3c5   : > { %2979 = vst.msk [vmem:[%s6801_s9 + $0x1c] sm:$0xf] %vm2971_vm9, %v3282_v1  ;;  %v3362_v58 = vadd.f32 %v3361_v53, %v3360_v22  ;;  %v2718_v36 = vadd.f32 %v3452_v3, %v2557_v21  ;;  %v3363_v32 = vpop.f32.mrb[26].mxu0  ;;  %v2709_v12 = vpop.f32.mrb[25].mxu1 }
 0x3c6   : > { %2977 = vst.msk [vmem:[%s6801_s9 + $0x14] sm:$0xf] %vm2971_vm9, %v3280_v18  ;;  %v2710_v40 = vadd.f32 %v2709_v12, %v2549_v63  ;;  %v3364_v8 = vpop.f32.mrb[27].mxu0  ;;  %v3453_v51 = vpop.f32.mrb[26].mxu1 }
 0x3c7   : > { %v2821_v56 = vadd.f32 %v6791_v61, %v2718_v36  ;;  %v3365_v16 = vadd.f32 %v3364_v8, %v3363_v32  ;;  %v2721_v37 = vadd.f32 %v3453_v51, %v2560_v19  ;;  %v2712_v27 = vpop.f32.mrb[27].mxu1  ;;  %v2565_v49 = vadd.f32 %v3362_v58, %v6786_v14 }
 0x3c8   : > { %v2819_v31 = vadd.f32 %v6791_v61, %v2710_v40  ;;  %v2713_v13 = vadd.f32 %v2712_v27, %v2552_v0 }
 0x3c9   : > { %v3285_v10 = vpack.c.bf16 %v2821_v56, %v2821_v56  ;;  %v2822_v42 = vadd.f32 %v6791_v61, %v2721_v37  ;;  %v2568_v45 = vadd.f32 %v3365_v16, %v6786_v14 }
 0x3ca   : > { %v3283_v34 = vpack.c.bf16 %v2819_v31, %v2819_v31  ;;  %v2820_v35 = vadd.f32 %v6791_v61, %v2713_v13 }
 0x3cb   : > { %2982 = vst.msk [vmem:[%s6801_s9 + $0x28] sm:$0xf] %vm2971_vm9, %v3285_v10  ;;  %v3286_v46 = vpack.c.bf16 %v2822_v42, %v2822_v42  ;;  %v3366_v38 = vpop.f32.mrb[28].mxu0 }
 0x3cc   : > { %2980 = vst.msk [vmem:[%s6801_s9 + $0x20] sm:$0xf] %vm2971_vm9, %v3283_v34  ;;  %v3284_v47 = vpack.c.bf16 %v2820_v35, %v2820_v35  ;;  %v3367_v7 = vpop.f32.mrb[29].mxu0  ;;  %v3456_v20 = vpop.f32.mrb[28].mxu1 }
 0x3cd   : > { %2983 = vst.msk [vmem:[%s6801_s9 + $0x2c] sm:$0xf] %vm2971_vm9, %v3286_v46  ;;  %v3368_v43 = vadd.f32 %v3367_v7, %v3366_v38  ;;  %v3369_v17 = vpop.f32.mrb[30].mxu0  ;;  %v2725_v60 = vpop.f32.mrb[29].mxu1 }
 0x3ce   : > { %2981 = vst.msk [vmem:[%s6801_s9 + $0x24] sm:$0xf] %vm2971_vm9, %v3284_v47  ;;  %v2726_v41 = vadd.f32 %v2725_v60, %v2565_v49  ;;  %v3370_v11 = vpop.f32.mrb[31].mxu0  ;;  %v3457_v23 = vpop.f32.mrb[30].mxu1 }
 0x3cf   : > { %v2573_v44 = vadd.f32 %v3368_v43, %v6786_v14  ;;  %v3371_v33 = vadd.f32 %v3370_v11, %v3369_v17  ;;  %v2728_v30 = vpop.f32.mrb[31].mxu1  ;;  %v2621_v17 = vadd.f32 %v6772_v2, %v6786_v14  ;;  %v2613_v11 = vadd.f32 %v6768_v29, %v6786_v14 }
 0x3d0   : > { %v2823_v57 = vadd.f32 %v6791_v61, %v2726_v41  ;;  %v2729_v9 = vadd.f32 %v2728_v30, %v2568_v45  ;;  %v2616_v2 = vadd.f32 %v6770_v55, %v6786_v14 }
 0x3d1   : > { %v2734_v24 = vadd.f32 %v3456_v20, %v2573_v44  ;;  %v2576_v39 = vadd.f32 %v3371_v33, %v6786_v14 }
 0x3d2   : > { %v3287_v52 = vpack.c.bf16 %v2823_v57, %v2823_v57  ;;  %v2824_v6 = vadd.f32 %v6791_v61, %v2729_v9  ;;  %v2624_v57 = vadd.f32 %v6774_v59, %v6786_v14 }
 0x3d3   : > { %v2825_v25 = vadd.f32 %v6791_v61, %v2734_v24  ;;  %v2737_v28 = vadd.f32 %v3457_v23, %v2576_v39  ;;  %v3372_v48 = vpop.f32.mrb[32].mxu0 }
 0x3d4   : > { %2984 = vst.msk [vmem:[%s6801_s9 + $0x30] sm:$0xf] %vm2971_vm9, %v3287_v52  ;;  %v3288_v15 = vpack.c.bf16 %v2824_v6, %v2824_v6  ;;  %v3373_v54 = vpop.f32.mrb[33].mxu0  ;;  %v3460_v5 = vpop.f32.mrb[32].mxu1 }
 0x3d5   : > { %v3289_v1 = vpack.c.bf16 %v2825_v25, %v2825_v25  ;;  %v2826_v22 = vadd.f32 %v6791_v61, %v2737_v28  ;;  %v3374_v21 = vadd.f32 %v3373_v54, %v3372_v48  ;;  %v3375_v18 = vpop.f32.mrb[34].mxu0  ;;  %v2741_v53 = vpop.f32.mrb[33].mxu1 }
 0x3d6   : > { %2985 = vst.msk [vmem:[%s6801_s9 + $0x34] sm:$0xf] %vm2971_vm9, %v3288_v15  ;;  %v3376_v3 = vpop.f32.mrb[35].mxu0  ;;  %v3461_v63 = vpop.f32.mrb[34].mxu1 }
 0x3d7   : > { %2986 = vst.msk [vmem:[%s6801_s9 + $0x38] sm:$0xf] %vm2971_vm9, %v3289_v1  ;;  %v3290_v58 = vpack.c.bf16 %v2826_v22, %v2826_v22  ;;  %v2581_v36 = vadd.f32 %v3374_v21, %v6786_v14  ;;  %v3377_v32 = vadd.f32 %v3376_v3, %v3375_v18  ;;  %v2744_v12 = vpop.f32.mrb[35].mxu1 }
 0x3d9   : > { %2987 = vst.msk [vmem:[%s6801_s9 + $0x3c] sm:$0xf] %vm2971_vm9, %v3290_v58  ;;  %v2742_v19 = vadd.f32 %v2741_v53, %v2581_v36  ;;  %v2584_v40 = vadd.f32 %v3377_v32, %v6786_v14 }
 0x3db   : > { %v2827_v8 = vadd.f32 %v6791_v61, %v2742_v19  ;;  %v2745_v51 = vadd.f32 %v2744_v12, %v2584_v40  ;;  %v3378_v0 = vpop.f32.mrb[36].mxu0  ;;  %v2629_v19 = vadd.f32 %v6778_v62, %v6786_v14 }
 0x3dc   : > { %v3379_v56 = vpop.f32.mrb[37].mxu0  ;;  %v6863_v16 = vpop.f32.mrb[36].mxu1 }
 0x3dd   : > { %v3291_v37 = vpack.c.bf16 %v2827_v8, %v2827_v8  ;;  %v2828_v27 = vadd.f32 %v6791_v61, %v2745_v51  ;;  %v3380_v31 = vadd.f32 %v3379_v56, %v3378_v0  ;;  %v3381_v13 = vpop.f32.mrb[38].mxu0  ;;  %v2757_v10 = vpop.f32.mrb[37].mxu1  ;;  %v2640_v51 = vadd.f32 %v6784_v4, %v6786_v14 }
 0x3de   : > { %v3382_v42 = vpop.f32.mrb[39].mxu0  ;;  %v6866_v34 = vpop.f32.mrb[38].mxu1 }
 0x3df   : > { %2988 = vst.msk [vmem:[%s6801_s9 + $0x40] sm:$0xf] %vm2971_vm9, %v3291_v37  ;;  %v3292_v35 = vpack.c.bf16 %v2828_v27, %v2828_v27  ;;  %v2589_v46 = vadd.f32 %v3380_v31, %v6786_v14  ;;  %v3383_v38 = vadd.f32 %v3382_v42, %v3381_v13  ;;  %v2760_v47 = vpop.f32.mrb[39].mxu1  ;;  %v2632_v27 = vadd.f32 %v6780_v50, %v6786_v14 }
 0x3e1   : > { %2989 = vst.msk [vmem:[%s6801_s9 + $0x44] sm:$0xf] %vm2971_vm9, %v3292_v35  ;;  %v2750_v7 = vadd.f32 %v3460_v5, %v2589_v46  ;;  %v2592_v20 = vadd.f32 %v3383_v38, %v6786_v14 }
 0x3e3   : > { %v2829_v49 = vadd.f32 %v6791_v61, %v2750_v7  ;;  %v2753_v43 = vadd.f32 %v3461_v63, %v2592_v20  ;;  %v2637_v63 = vadd.f32 %v6782_v26, %v6786_v14 }
 0x3e4   : > { %v3384_v60 = vpop.f32.mrb[40].mxu0  ;;  %v3468_v41 = vpop.f32.mrb[40].mxu1 }
 0x3e5   : > { %v3293_v23 = vpack.c.bf16 %v2829_v49, %v2829_v49  ;;  %v2830_v45 = vadd.f32 %v6791_v61, %v2753_v43  ;;  %v3385_v44 = vpop.f32.mrb[41].mxu0  ;;  %v2782_v33 = vadd.f32 %v3468_v41, %v2621_v17  ;;  %v2773_v30 = vpop.f32.mrb[41].mxu1 }
 0x3e6   : > { %v3386_v9 = vadd.f32 %v3385_v44, %v3384_v60  ;;  %v3387_v24 = vpop.f32.mrb[42].mxu0  ;;  %v2774_v39 = vadd.f32 %v2773_v30, %v2613_v11  ;;  %v3469_v52 = vpop.f32.mrb[42].mxu1 }
 0x3e7   : > { %2990 = vst.msk [vmem:[%s6801_s9 + $0x48] sm:$0xf] %vm2971_vm9, %v3293_v23  ;;  %v3294_v29 = vpack.c.bf16 %v2830_v45, %v2830_v45  ;;  %v2837_v6 = vadd.f32 %v6791_v61, %v2782_v33  ;;  %v3388_v25 = vpop.f32.mrb[43].mxu0  ;;  %v2785_v28 = vadd.f32 %v3469_v52, %v2624_v57  ;;  %v2776_v48 = vpop.f32.mrb[43].mxu1 }
 0x3e8   : > { %v2597_v59 = vadd.f32 %v3386_v9, %v6786_v14  ;;  %v2835_v15 = vadd.f32 %v6791_v61, %v2774_v39  ;;  %v3389_v54 = vadd.f32 %v3388_v25, %v3387_v24  ;;  %v2777_v5 = vadd.f32 %v2776_v48, %v2616_v2 }
 0x3e9   : > { %2991 = vst.msk [vmem:[%s6801_s9 + $0x4c] sm:$0xf] %vm2971_vm9, %v3294_v29  ;;  %v3301_v55 = vpack.c.bf16 %v2837_v6, %v2837_v6  ;;  %v2838_v1 = vadd.f32 %v6791_v61, %v2785_v28 }
 0x3ea   : > { %v2758_v22 = vadd.f32 %v2757_v10, %v2597_v59  ;;  %v3299_v21 = vpack.c.bf16 %v2835_v15, %v2835_v15  ;;  %v2600_v18 = vadd.f32 %v3389_v54, %v6786_v14  ;;  %v2836_v53 = vadd.f32 %v6791_v61, %v2777_v5 }
 0x3eb   : > { %2998 = vst.msk [vmem:[%s6801_s9 + $0x68] sm:$0xf] %vm2971_vm9, %v3301_v55  ;;  %v3302_v3 = vpack.c.bf16 %v2838_v1, %v2838_v1 }
 0x3ec   : > { %v2831_v58 = vadd.f32 %v6791_v61, %v2758_v22  ;;  %2996 = vst.msk [vmem:[%s6801_s9 + $0x60] sm:$0xf] %vm2971_vm9, %v3299_v21  ;;  %v2761_v36 = vadd.f32 %v2760_v47, %v2600_v18  ;;  %v3300_v32 = vpack.c.bf16 %v2836_v53, %v2836_v53  ;;  %v3472_v12 = vpop.f32.mrb[44].mxu1 }
 0x3ed   : > { %2999 = vst.msk [vmem:[%s6801_s9 + $0x6c] sm:$0xf] %vm2971_vm9, %v3302_v3  ;;  %v2798_v40 = vadd.f32 %v3472_v12, %v2637_v63  ;;  %v2789_v8 = vpop.f32.mrb[45].mxu1 }
 0x3ee   : > { %v3295_v0 = vpack.c.bf16 %v2831_v58, %v2831_v58  ;;  %v2832_v26 = vadd.f32 %v6791_v61, %v2761_v36  ;;  %2997 = vst.msk [vmem:[%s6801_s9 + $0x64] sm:$0xf] %vm2971_vm9, %v3300_v32  ;;  %v2790_v56 = vadd.f32 %v2789_v8, %v2629_v19  ;;  %v3473_v37 = vpop.f32.mrb[46].mxu1 }
 0x3ef   : > { %v2841_v62 = vadd.f32 %v6791_v61, %v2798_v40  ;;  %v3390_v31 = vpop.f32.mrb[44].mxu0  ;;  %v2801_v13 = vadd.f32 %v3473_v37, %v2640_v51  ;;  %v2792_v10 = vpop.f32.mrb[47].mxu1 }
 0x3f0   : > { %2992 = vst.msk [vmem:[%s6801_s9 + $0x50] sm:$0xf] %vm2971_vm9, %v3295_v0  ;;  %v3296_v4 = vpack.c.bf16 %v2832_v26, %v2832_v26  ;;  %v2839_v42 = vadd.f32 %v6791_v61, %v2790_v56  ;;  %v3391_v35 = vpop.f32.mrb[45].mxu0  ;;  %v2793_v46 = vadd.f32 %v2792_v10, %v2632_v27 }
 0x3f1   : > { %v3305_v38 = vpack.c.bf16 %v2841_v62, %v2841_v62  ;;  %v2842_v47 = vadd.f32 %v6791_v61, %v2801_v13  ;;  %v3392_v50 = vadd.f32 %v3391_v35, %v3390_v31  ;;  %v3393_v7 = vpop.f32.mrb[46].mxu0 }
 0x3f2   : > { %2993 = vst.msk [vmem:[%s6801_s9 + $0x54] sm:$0xf] %vm2971_vm9, %v3296_v4  ;;  %v3303_v20 = vpack.c.bf16 %v2839_v42, %v2839_v42  ;;  %v2840_v49 = vadd.f32 %v6791_v61, %v2793_v46  ;;  %v3394_v43 = vpop.f32.mrb[47].mxu0 }
 0x3f3   : > { %3002 = vst.msk [vmem:[%s6801_s9 + $0x78] sm:$0xf] %vm2971_vm9, %v3305_v38  ;;  %v3306_v17 = vpack.c.bf16 %v2842_v47, %v2842_v47  ;;  %v2605_v60 = vadd.f32 %v3392_v50, %v6786_v14  ;;  %v3395_v41 = vadd.f32 %v3394_v43, %v3393_v7 }
 0x3f4   : > { %3000 = vst.msk [vmem:[%s6801_s9 + $0x70] sm:$0xf] %vm2971_vm9, %v3303_v20  ;;  %v3304_v11 = vpack.c.bf16 %v2840_v49, %v2840_v49 }
 0x3f5   : > { %3003 = vst.msk [vmem:[%s6801_s9 + $0x7c] sm:$0xf] %vm2971_vm9, %v3306_v17  ;;  %v2766_v23 = vadd.f32 %v6863_v16, %v2605_v60  ;;  %v2608_v45 = vadd.f32 %v3395_v41, %v6786_v14 }
 0x3f6   : > { %3001 = vst.msk [vmem:[%s6801_s9 + $0x74] sm:$0xf] %vm2971_vm9, %v3304_v11 }
 0x3f7   : > { %v2833_v44 = vadd.f32 %v6791_v61, %v2766_v23  ;;  %v2769_v33 = vadd.f32 %v6866_v34, %v2608_v45 }
 0x3f9   : > { %v3297_v30 = vpack.c.bf16 %v2833_v44, %v2833_v44  ;;  %v2834_v57 = vadd.f32 %v6791_v61, %v2769_v33 }
 0x3fb   : > { %2994 = vst.msk [vmem:[%s6801_s9 + $0x58] sm:$0xf] %vm2971_vm9, %v3297_v30  ;;  %v3298_v14 = vpack.c.bf16 %v2834_v57, %v2834_v57 }
 0x3fd   : > { %2995 = vst.msk [vmem:[%s6801_s9 + $0x5c] sm:$0xf] %vm2971_vm9, %v3298_v14 }
 0x3fe   : > { %4398 = shalt.err (!%p4395_p4)
}
 0x3ff   : > { %s4399_s0 = scalar_lea.hbm %s6939_s16, 2048  ;;  %s4403_s17 = scalar_lea.hbm %s6997_s6, 4096 }
 0x400   : > { %p4400_p12 = scmp.ne.s32.totalorder %s6939_s16, %s4399_s0  ;;  %p4404_p0 = scmp.lt.u32.totalorder %s6939_s16, %s6997_s6 }
 0x401   : > { %p4405_p6 = scmp.lt.u32.totalorder %s4403_s17, %s4399_s0  ;;  %p4407_p3 = scmp.lt.u32.totalorder %s4399_s0, %s6939_s16 }
 0x402   : > { %p4401_p1 = pnand %p4400_p12, %p7377_p7 }
 0x403   : > { %p4406_p8 = por %p4405_p6, %p4404_p0 }
 0x404   : > { %p4402_p11 = pneg %p4401_p1 }
 0x405   : > { %p4408_p10 = por %p4407_p3, %p4406_p8 }
 0x407   : > { %p4409_p13 = pnand %p4408_p10, %p4402_p11 }
 0x409   : > { %4412 = shalt.err (!%p4409_p13)
}
 0x40a   : > { %s4480_s26 = smov 4  }
 0x40b   : > { %3510 = dma.vmem_to_hbm [thread:$0]  (%p7377_p7), %s6943_s11, 2048, %s6939_s16, %s3005_s25, %s4476_s27, %s4476_s27, %s4480_s26  }
 0x40c PF: > { %s3033_s14 = sand.u32 1, %s4451_s21   ;;  %p7378_p5 = scmp.ne.s32.totalorder %s7128_s28, 0 }
 0x40d   : > { %p7379_p9 = scmp.ge.s32.totalorder %s4463_s24, 2  ;;  %s3034_s15 = scalar_lea.sflag [#allocation4], %s3033_s14 }
 0x40f   : > { %p3533_p2 = pnand %p7379_p9, %p7378_p5 }
 0x411   : > { %4446 = dma.done.wait (!%p3533_p2), %s3034_s15, 2048  }
 0x412   : > { %4448 = vsyncadd (!%p3533_p2), %s3034_s15, 4294965248  ;;  %p24_p4 = scmp.ge.s32.totalorder %s4658_s18, 4   ;;  %s7380_s21 = smov %s4455_s22 }
 0x413   : > { %s7381_s22 = smov %s4459_s23  ;;  %s7382_s23 = smov %s4674_s13 }
 0x414   : > { %s7383_s24 = smov %s4658_s18  ;;  %26 = sbr.rel (!%p24_p4) target bundleno = 12 (0xc), region = 118 }
 0x41b   :  { %3039 = vsyncpa [#allocation3], 1 }
 0x41c   :  { %3041 = vsyncpa [#allocation3 + $0x1], 1 }
 0x41d   :  { %3042 = vsyncpa [#allocation6], 1 }
 0x41e   :  { %3043 = vsyncpa [#allocation9], 1 }
 0x41f   :  { %3044 = vsyncpa [#allocation12], 1 }
 0x420   :  { %3046 = vsyncpa [#allocation12 + $0x1], 1 }
 0x421   :  { %3047 = vsyncpa [#allocation4], 1 }
 0x422   :  { %3049 = vsyncpa [#allocation4 + $0x1], 1 }

</bundles_post_ra>
